<compile_context>
chip_gen: v7x
topology: tpu7x:2x2x1
jax: 0.10.0
libtpu: 0.0.40
codegen_flags: <defaults>
</compile_context>

<pallas_src>
import jax
import jax.numpy as jnp
import numpy as np
from jax.experimental import pallas as pl
from jax.experimental.pallas import tpu as pltpu

EPS = 1e-5  # nn.BatchNorm3d default eps


def _make_conv_stats_kernel(H, W, Wp, RO, Cin, Cp):
    """Pass 1: conv (27 in-kernel taps) + per-(n,d) partial BN statistics."""

    def kernel(x0_ref, x1_ref, x2_ref, w_ref, y_ref, sum_ref, sq_ref):
        # x{kd}_ref: (1, 1, R, Cin) bf16 flattened padded depth slice d+kd
        # w_ref:     (27, Cin, Cp)  bf16, resident in VMEM (constant block index)
        # y_ref:     (1, 1, RO, Cp) bf16 conv output (padded-W frame rows)
        # sum_ref / sq_ref: (1, 1, 1, Cp) f32 partial sum / sum-of-squares
        xs = (x0_ref, x1_ref, x2_ref)
        acc = jnp.zeros((RO, Cp), jnp.float32)
        for kd in range(3):
            for kh in range(3):
                for kw in range(3):
                    # Static row shift inside the H-guarded flattened frame.
                    start = (kh + 1) * Wp + kw - 1
                    patch = xs[kd][0, 0, start:start + RO, :]          # (RO, Cin) bf16
                    wtap = w_ref[(kd * 3 + kh) * 3 + kw]               # (Cin, Cp) bf16
                    acc = acc + jnp.dot(patch, wtap,
                                        preferred_element_type=jnp.float32)
        y_ref[0, 0] = acc.astype(y_ref.dtype)

        # Partial BN stats over real columns only (frame column w' in [1, W]).
        col = jax.lax.broadcasted_iota(jnp.int32, (RO, 1), 0) % Wp
        valid = jnp.logical_and(col >= 1, col <= W)
        masked = jnp.where(valid, acc, 0.0)
        sum_ref[0, 0] = jnp.sum(masked, axis=0, keepdims=True)
        sq_ref[0, 0] = jnp.sum(masked * masked, axis=0, keepdims=True)

    return kernel


def _bn_relu_kernel(y_ref, scale_ref, shift_ref, o_ref):
    # Folded BN affine + ReLU; load bf16, compute in f32, store bf16 (in place on y_conv).
    y = y_ref[...].astype(jnp.float32)
    o_ref[...] = jnp.maximum(y * scale_ref[...] + shift_ref[...], 0.0).astype(o_ref.dtype)


def _round_up(x, m):
    return ((x + m - 1) // m) * m


def _largest_divisor_leq(n, cap):
    cap = max(1, min(n, cap))
    for k in range(cap, 0, -1):
        if n % k == 0:
            return k
    return 1


@jax.jit
def conv_block_forward(x_ncdhw, weight, bias, gamma, beta):
    """x_ncdhw: (N, Cin, D, H, W); weight: (Cout, Cin, 3, 3, 3). Returns NCDHW f32."""
    del bias  # exactly cancelled by training-mode BN mean subtraction (no output change)

    N, Cin, D, H, W = x_ncdhw.shape
    Cout = weight.shape[0]
    Dp, Hg, Wp = D + 2, H + 4, W + 2
    R = Hg * Wp          # rows per flattened, H-guarded padded depth slice
    RO = H * Wp          # output rows per depth slice (includes 2 junk W columns)
    Cp = 128 if Cout <= 128 else _round_up(Cout, 256)   # lane-dense / MXU-width aligned

    # NCDHW -> NDHWC, pad D by 1, H by 2, W by 1.  The extra H row on each side is the
    # read guard so every in-kernel row-shifted tap stays in bounds.
    x = jnp.transpose(x_ncdhw, (0, 2, 3, 4, 1))
    xg = jnp.pad(x, ((0, 0), (1, 1), (2, 2), (1, 1), (0, 0)))
    xg = xg.reshape(N, Dp, R, Cin).astype(jnp.bfloat16)

    # Weights: (Cout, Cin, 3,3,3) -> (27, Cin, Cp) bf16, resident in VMEM.
    wt = jnp.transpose(weight, (2, 3, 4, 1, 0)).reshape(27, Cin, Cout)
    wt = jnp.pad(wt, ((0, 0), (0, 0), (0, Cp - Cout))).astype(jnp.bfloat16)

    flops = 2 * N * D * 27 * RO * Cin * Cp
    bytes_accessed = (3 * xg.size * 2 + wt.size * 2
                      + N * D * RO * Cp * 2 + 2 * N * D * Cp * 4)

    # ---------------- Pass 1: conv + per-(n, d) partial BN statistics ----------------
    y_conv, psum, psq = pl.pallas_call(
        _make_conv_stats_kernel(H, W, Wp, RO, Cin, Cp),
        out_shape=(jax.ShapeDtypeStruct((N, D, RO, Cp), jnp.bfloat16),
                   jax.ShapeDtypeStruct((N, D, 1, Cp), jnp.float32),
                   jax.ShapeDtypeStruct((N, D, 1, Cp), jnp.float32)),
        grid=(N, D),
        in_specs=[pl.BlockSpec((1, 1, R, Cin), lambda n, d, kd=kd: (n, d + kd, 0, 0))
                  for kd in range(3)]
                 + [pl.BlockSpec((27, Cin, Cp), lambda n, d: (0, 0, 0))],
        out_specs=(pl.BlockSpec((1, 1, RO, Cp), lambda n, d: (n, d, 0, 0)),
                   pl.BlockSpec((1, 1, 1, Cp), lambda n, d: (n, d, 0, 0)),
                   pl.BlockSpec((1, 1, 1, Cp), lambda n, d: (n, d, 0, 0))),
        compiler_params=pltpu.CompilerParams(
            dimension_semantics=("parallel", "parallel")),
        cost_estimate=pl.CostEstimate(flops=flops, transcendentals=0,
                                      bytes_accessed=bytes_accessed),
    )(xg, xg, xg, wt)

    # Tiny combine: global batch mean / biased var, fold BN affine into scale/shift.
    # TODO(synk): E[x^2]-E[x]^2 can cancel if |mean| >> std; fine here because the
    # bias-free conv output is near zero-mean.
    m_cnt = N * D * H * W
    total = jnp.sum(psum, axis=(0, 1, 2))
    total_sq = jnp.sum(psq, axis=(0, 1, 2))
    mean = total / m_cnt
    var = jnp.maximum(total_sq / m_cnt - mean * mean, 0.0)
    gamma_p = jnp.pad(gamma.astype(jnp.float32), (0, Cp - Cout))
    beta_p = jnp.pad(beta.astype(jnp.float32), (0, Cp - Cout))
    scale = (gamma_p * jax.lax.rsqrt(var + EPS)).reshape(1, Cp)
    shift = (beta_p - mean * scale[0]).reshape(1, Cp)

    # ---------------- Pass 2: fused BN affine + ReLU, in place on y_conv ----------------
    ND = N * D
    y2 = y_conv.reshape(ND, RO, Cp)
    block_bytes = RO * Cp * 2
    cap = max(1, min((2 * 1024 * 1024) // block_bytes, ND // 2 if ND >= 2 else 1))
    bd = _largest_divisor_leq(ND, cap)

    out2 = pl.pallas_call(
        _bn_relu_kernel,
        out_shape=jax.ShapeDtypeStruct((ND, RO, Cp), jnp.bfloat16),
        grid=(ND // bd,),
        in_specs=[pl.BlockSpec((bd, RO, Cp), lambda i: (i, 0, 0)),
                  pl.BlockSpec((1, Cp), lambda i: (0, 0)),
                  pl.BlockSpec((1, Cp), lambda i: (0, 0))],
        out_specs=pl.BlockSpec((bd, RO, Cp), lambda i: (i, 0, 0)),
        input_output_aliases={0: 0},
        compiler_params=pltpu.CompilerParams(dimension_semantics=("parallel",)),
    )(y2, scale, shift)

    # (ND, RO, Cp) -> (N, D, H, Wp, Cp) -> drop junk W columns / channel pad -> NCDHW f32.
    out = out2.reshape(N, D, H, Wp, Cp)[:, :, :, 1:W + 1, :Cout]
    return jnp.transpose(out, (0, 4, 1, 2, 3)).astype(jnp.float32)


def reference_forward(x_ncdhw, weight, bias, gamma, beta):
    """Pure-JAX reference matching PyTorch ConvBlock.forward in training mode."""
    y = jax.lax.conv_general_dilated(
        x_ncdhw.astype(jnp.float32), weight.astype(jnp.float32),
        window_strides=(1, 1, 1), padding=[(1, 1)] * 3,
        dimension_numbers=("NCDHW", "OIDHW", "NCDHW"))
    y = y + bias.reshape(1, -1, 1, 1, 1)
    mean = jnp.mean(y, axis=(0, 2, 3, 4), keepdims=True)
    var = jnp.mean((y - mean) ** 2, axis=(0, 2, 3, 4), keepdims=True)
    y = (y - mean) * jax.lax.rsqrt(var + EPS)
    y = y * gamma.reshape(1, -1, 1, 1, 1) + beta.reshape(1, -1, 1, 1, 1)
    return jnp.maximum(y, 0.0)


if __name__ == "__main__":
    # Small shapes consistent with Conv3d/BatchNorm3d: (N, Cin, D, H, W)
    N, Cin, Cout, D, H, W = 2, 4, 8, 8, 8, 8

    key = jax.random.PRNGKey(0)
    kx, kw, kb, kg, kbe = jax.random.split(key, 5)
    x = jax.random.normal(kx, (N, Cin, D, H, W), dtype=jnp.float32)
    weight = 0.1 * jax.random.normal(kw, (Cout, Cin, 3, 3, 3), dtype=jnp.float32)
    bias = 0.1 * jax.random.normal(kb, (Cout,), dtype=jnp.float32)
    gamma = 1.0 + 0.1 * jax.random.normal(kg, (Cout,), dtype=jnp.float32)
    beta = 0.1 * jax.random.normal(kbe, (Cout,), dtype=jnp.float32)

    out = jax.block_until_ready(conv_block_forward(x, weight, bias, gamma, beta))
    ref = jax.block_until_ready(reference_forward(x, weight, bias, gamma, beta))

    assert out.shape == (N, Cout, D, H, W), out.shape
    np.testing.assert_allclose(np.asarray(out), np.asarray(ref), atol=2e-2, rtol=2e-2)
    print("KERNEL_OK")
</pallas_src>

<mosaic_0001>
module attributes {stable_mosaic.version = 11 : i64} {
  func.func @kernel(%arg0: i32, %arg1: i32, %arg2: memref<1x1x120x4xbf16, #tpu.memory_space<vmem>>, %arg3: memref<1x1x120x4xbf16, #tpu.memory_space<vmem>>, %arg4: memref<1x1x120x4xbf16, #tpu.memory_space<vmem>>, %arg5: memref<27x4x128xbf16, #tpu.memory_space<vmem>>, %arg6: memref<1x1x80x128xbf16, #tpu.memory_space<vmem>>, %arg7: memref<1x1x1x128xf32, #tpu.memory_space<vmem>>, %arg8: memref<1x1x1x128xf32, #tpu.memory_space<vmem>>) attributes {dimension_semantics = [#tpu.dimension_semantics<parallel>, #tpu.dimension_semantics<parallel>], iteration_bounds = array<i64: 2, 8>, scalar_prefetch = 0 : i64, scratch_operands = 0 : i64, tpu.core_type = #tpu.core_type<tc>, window_params = [{transform_indices = @transform_0, window_bounds = array<i64: 1, 1, 120, 4>}, {transform_indices = @transform_1, window_bounds = array<i64: 1, 1, 120, 4>}, {transform_indices = @transform_2, window_bounds = array<i64: 1, 1, 120, 4>}, {pipeline_mode = #tpu.pipeline_mode<synchronous>, transform_indices = @transform_3, window_bounds = array<i64: 27, 4, 128>}, {transform_indices = @transform_4, window_bounds = array<i64: 1, 1, 80, 128>}, {transform_indices = @transform_5, window_bounds = array<i64: 1, 1, 1, 128>}, {transform_indices = @transform_6, window_bounds = array<i64: 1, 1, 1, 128>}]} {
    %cst = arith.constant 0.000000e+00 : f32
    %0 = vector.broadcast %cst : f32 to vector<80x128xf32>
    %c0 = arith.constant 0 : index
    %c0_0 = arith.constant 0 : index
    %c9 = arith.constant 9 : index
    %c0_1 = arith.constant 0 : index
    %1 = vector.load %arg2[%c0, %c0_0, %c9, %c0_1] : memref<1x1x120x4xbf16, #tpu.memory_space<vmem>>, vector<1x1x80x4xbf16>
    %2 = vector.shape_cast %1 : vector<1x1x80x4xbf16> to vector<80x4xbf16>
    %c0_2 = arith.constant 0 : index
    %c0_3 = arith.constant 0 : index
    %c0_4 = arith.constant 0 : index
    %3 = vector.load %arg5[%c0_2, %c0_3, %c0_4] : memref<27x4x128xbf16, #tpu.memory_space<vmem>>, vector<1x4x128xbf16>
    %4 = vector.shape_cast %3 : vector<1x4x128xbf16> to vector<4x128xbf16>
    %cst_5 = arith.constant dense<0.000000e+00> : vector<80x128xf32>
    %5 = tpu.matmul %2, %4, %cst_5 {dimension_numbers = #tpu.dot_dimension_numbers<[1], [0], [0], [1], [0, 0, 1, 1], [], []>} : vector<80x4xbf16>, vector<4x128xbf16>, vector<80x128xf32> -> vector<80x128xf32>
    %6 = arith.addf %0, %5 : vector<80x128xf32>
    %c0_6 = arith.constant 0 : index
    %c0_7 = arith.constant 0 : index
    %c10 = arith.constant 10 : index
    %c0_8 = arith.constant 0 : index
    %7 = vector.load %arg2[%c0_6, %c0_7, %c10, %c0_8] : memref<1x1x120x4xbf16, #tpu.memory_space<vmem>>, vector<1x1x80x4xbf16>
    %8 = vector.shape_cast %7 : vector<1x1x80x4xbf16> to vector<80x4xbf16>
    %c1 = arith.constant 1 : index
    %c0_9 = arith.constant 0 : index
    %c0_10 = arith.constant 0 : index
    %9 = vector.load %arg5[%c1, %c0_9, %c0_10] : memref<27x4x128xbf16, #tpu.memory_space<vmem>>, vector<1x4x128xbf16>
    %10 = vector.shape_cast %9 : vector<1x4x128xbf16> to vector<4x128xbf16>
    %cst_11 = arith.constant dense<0.000000e+00> : vector<80x128xf32>
    %11 = tpu.matmul %8, %10, %cst_11 {dimension_numbers = #tpu.dot_dimension_numbers<[1], [0], [0], [1], [0, 0, 1, 1], [], []>} : vector<80x4xbf16>, vector<4x128xbf16>, vector<80x128xf32> -> vector<80x128xf32>
    %12 = arith.addf %6, %11 : vector<80x128xf32>
    %c0_12 = arith.constant 0 : index
    %c0_13 = arith.constant 0 : index
    %c11 = arith.constant 11 : index
    %c0_14 = arith.constant 0 : index
    %13 = vector.load %arg2[%c0_12, %c0_13, %c11, %c0_14] : memref<1x1x120x4xbf16, #tpu.memory_space<vmem>>, vector<1x1x80x4xbf16>
    %14 = vector.shape_cast %13 : vector<1x1x80x4xbf16> to vector<80x4xbf16>
    %c2 = arith.constant 2 : index
    %c0_15 = arith.constant 0 : index
    %c0_16 = arith.constant 0 : index
    %15 = vector.load %arg5[%c2, %c0_15, %c0_16] : memref<27x4x128xbf16, #tpu.memory_space<vmem>>, vector<1x4x128xbf16>
    %16 = vector.shape_cast %15 : vector<1x4x128xbf16> to vector<4x128xbf16>
    %cst_17 = arith.constant dense<0.000000e+00> : vector<80x128xf32>
    %17 = tpu.matmul %14, %16, %cst_17 {dimension_numbers = #tpu.dot_dimension_numbers<[1], [0], [0], [1], [0, 0, 1, 1], [], []>} : vector<80x4xbf16>, vector<4x128xbf16>, vector<80x128xf32> -> vector<80x128xf32>
    %18 = arith.addf %12, %17 : vector<80x128xf32>
    %c0_18 = arith.constant 0 : index
    %c0_19 = arith.constant 0 : index
    %c19 = arith.constant 19 : index
    %c0_20 = arith.constant 0 : index
    %19 = vector.load %arg2[%c0_18, %c0_19, %c19, %c0_20] : memref<1x1x120x4xbf16, #tpu.memory_space<vmem>>, vector<1x1x80x4xbf16>
    %20 = vector.shape_cast %19 : vector<1x1x80x4xbf16> to vector<80x4xbf16>
    %c3 = arith.constant 3 : index
    %c0_21 = arith.constant 0 : index
    %c0_22 = arith.constant 0 : index
    %21 = vector.load %arg5[%c3, %c0_21, %c0_22] : memref<27x4x128xbf16, #tpu.memory_space<vmem>>, vector<1x4x128xbf16>
    %22 = vector.shape_cast %21 : vector<1x4x128xbf16> to vector<4x128xbf16>
    %cst_23 = arith.constant dense<0.000000e+00> : vector<80x128xf32>
    %23 = tpu.matmul %20, %22, %cst_23 {dimension_numbers = #tpu.dot_dimension_numbers<[1], [0], [0], [1], [0, 0, 1, 1], [], []>} : vector<80x4xbf16>, vector<4x128xbf16>, vector<80x128xf32> -> vector<80x128xf32>
    %24 = arith.addf %18, %23 : vector<80x128xf32>
    %c0_24 = arith.constant 0 : index
    %c0_25 = arith.constant 0 : index
    %c20 = arith.constant 20 : index
    %c0_26 = arith.constant 0 : index
    %25 = vector.load %arg2[%c0_24, %c0_25, %c20, %c0_26] : memref<1x1x120x4xbf16, #tpu.memory_space<vmem>>, vector<1x1x80x4xbf16>
    %26 = vector.shape_cast %25 : vector<1x1x80x4xbf16> to vector<80x4xbf16>
    %c4 = arith.constant 4 : index
    %c0_27 = arith.constant 0 : index
    %c0_28 = arith.constant 0 : index
    %27 = vector.load %arg5[%c4, %c0_27, %c0_28] : memref<27x4x128xbf16, #tpu.memory_space<vmem>>, vector<1x4x128xbf16>
    %28 = vector.shape_cast %27 : vector<1x4x128xbf16> to vector<4x128xbf16>
    %cst_29 = arith.constant dense<0.000000e+00> : vector<80x128xf32>
    %29 = tpu.matmul %26, %28, %cst_29 {dimension_numbers = #tpu.dot_dimension_numbers<[1], [0], [0], [1], [0, 0, 1, 1], [], []>} : vector<80x4xbf16>, vector<4x128xbf16>, vector<80x128xf32> -> vector<80x128xf32>
    %30 = arith.addf %24, %29 : vector<80x128xf32>
    %c0_30 = arith.constant 0 : index
    %c0_31 = arith.constant 0 : index
    %c21 = arith.constant 21 : index
    %c0_32 = arith.constant 0 : index
    %31 = vector.load %arg2[%c0_30, %c0_31, %c21, %c0_32] : memref<1x1x120x4xbf16, #tpu.memory_space<vmem>>, vector<1x1x80x4xbf16>
    %32 = vector.shape_cast %31 : vector<1x1x80x4xbf16> to vector<80x4xbf16>
    %c5 = arith.constant 5 : index
    %c0_33 = arith.constant 0 : index
    %c0_34 = arith.constant 0 : index
    %33 = vector.load %arg5[%c5, %c0_33, %c0_34] : memref<27x4x128xbf16, #tpu.memory_space<vmem>>, vector<1x4x128xbf16>
    %34 = vector.shape_cast %33 : vector<1x4x128xbf16> to vector<4x128xbf16>
    %cst_35 = arith.constant dense<0.000000e+00> : vector<80x128xf32>
    %35 = tpu.matmul %32, %34, %cst_35 {dimension_numbers = #tpu.dot_dimension_numbers<[1], [0], [0], [1], [0, 0, 1, 1], [], []>} : vector<80x4xbf16>, vector<4x128xbf16>, vector<80x128xf32> -> vector<80x128xf32>
    %36 = arith.addf %30, %35 : vector<80x128xf32>
    %c0_36 = arith.constant 0 : index
    %c0_37 = arith.constant 0 : index
    %c29 = arith.constant 29 : index
    %c0_38 = arith.constant 0 : index
    %37 = vector.load %arg2[%c0_36, %c0_37, %c29, %c0_38] : memref<1x1x120x4xbf16, #tpu.memory_space<vmem>>, vector<1x1x80x4xbf16>
    %38 = vector.shape_cast %37 : vector<1x1x80x4xbf16> to vector<80x4xbf16>
    %c6 = arith.constant 6 : index
    %c0_39 = arith.constant 0 : index
    %c0_40 = arith.constant 0 : index
    %39 = vector.load %arg5[%c6, %c0_39, %c0_40] : memref<27x4x128xbf16, #tpu.memory_space<vmem>>, vector<1x4x128xbf16>
    %40 = vector.shape_cast %39 : vector<1x4x128xbf16> to vector<4x128xbf16>
    %cst_41 = arith.constant dense<0.000000e+00> : vector<80x128xf32>
    %41 = tpu.matmul %38, %40, %cst_41 {dimension_numbers = #tpu.dot_dimension_numbers<[1], [0], [0], [1], [0, 0, 1, 1], [], []>} : vector<80x4xbf16>, vector<4x128xbf16>, vector<80x128xf32> -> vector<80x128xf32>
    %42 = arith.addf %36, %41 : vector<80x128xf32>
    %c0_42 = arith.constant 0 : index
    %c0_43 = arith.constant 0 : index
    %c30 = arith.constant 30 : index
    %c0_44 = arith.constant 0 : index
    %43 = vector.load %arg2[%c0_42, %c0_43, %c30, %c0_44] : memref<1x1x120x4xbf16, #tpu.memory_space<vmem>>, vector<1x1x80x4xbf16>
    %44 = vector.shape_cast %43 : vector<1x1x80x4xbf16> to vector<80x4xbf16>
    %c7 = arith.constant 7 : index
    %c0_45 = arith.constant 0 : index
    %c0_46 = arith.constant 0 : index
    %45 = vector.load %arg5[%c7, %c0_45, %c0_46] : memref<27x4x128xbf16, #tpu.memory_space<vmem>>, vector<1x4x128xbf16>
    %46 = vector.shape_cast %45 : vector<1x4x128xbf16> to vector<4x128xbf16>
    %cst_47 = arith.constant dense<0.000000e+00> : vector<80x128xf32>
    %47 = tpu.matmul %44, %46, %cst_47 {dimension_numbers = #tpu.dot_dimension_numbers<[1], [0], [0], [1], [0, 0, 1, 1], [], []>} : vector<80x4xbf16>, vector<4x128xbf16>, vector<80x128xf32> -> vector<80x128xf32>
    %48 = arith.addf %42, %47 : vector<80x128xf32>
    %c0_48 = arith.constant 0 : index
    %c0_49 = arith.constant 0 : index
    %c31 = arith.constant 31 : index
    %c0_50 = arith.constant 0 : index
    %49 = vector.load %arg2[%c0_48, %c0_49, %c31, %c0_50] : memref<1x1x120x4xbf16, #tpu.memory_space<vmem>>, vector<1x1x80x4xbf16>
    %50 = vector.shape_cast %49 : vector<1x1x80x4xbf16> to vector<80x4xbf16>
    %c8 = arith.constant 8 : index
    %c0_51 = arith.constant 0 : index
    %c0_52 = arith.constant 0 : index
    %51 = vector.load %arg5[%c8, %c0_51, %c0_52] : memref<27x4x128xbf16, #tpu.memory_space<vmem>>, vector<1x4x128xbf16>
    %52 = vector.shape_cast %51 : vector<1x4x128xbf16> to vector<4x128xbf16>
    %cst_53 = arith.constant dense<0.000000e+00> : vector<80x128xf32>
    %53 = tpu.matmul %50, %52, %cst_53 {dimension_numbers = #tpu.dot_dimension_numbers<[1], [0], [0], [1], [0, 0, 1, 1], [], []>} : vector<80x4xbf16>, vector<4x128xbf16>, vector<80x128xf32> -> vector<80x128xf32>
    %54 = arith.addf %48, %53 : vector<80x128xf32>
    %c0_54 = arith.constant 0 : index
    %c0_55 = arith.constant 0 : index
    %c9_56 = arith.constant 9 : index
    %c0_57 = arith.constant 0 : index
    %55 = vector.load %arg3[%c0_54, %c0_55, %c9_56, %c0_57] : memref<1x1x120x4xbf16, #tpu.memory_space<vmem>>, vector<1x1x80x4xbf16>
    %56 = vector.shape_cast %55 : vector<1x1x80x4xbf16> to vector<80x4xbf16>
    %c9_58 = arith.constant 9 : index
    %c0_59 = arith.constant 0 : index
    %c0_60 = arith.constant 0 : index
    %57 = vector.load %arg5[%c9_58, %c0_59, %c0_60] : memref<27x4x128xbf16, #tpu.memory_space<vmem>>, vector<1x4x128xbf16>
    %58 = vector.shape_cast %57 : vector<1x4x128xbf16> to vector<4x128xbf16>
    %cst_61 = arith.constant dense<0.000000e+00> : vector<80x128xf32>
    %59 = tpu.matmul %56, %58, %cst_61 {dimension_numbers = #tpu.dot_dimension_numbers<[1], [0], [0], [1], [0, 0, 1, 1], [], []>} : vector<80x4xbf16>, vector<4x128xbf16>, vector<80x128xf32> -> vector<80x128xf32>
    %60 = arith.addf %54, %59 : vector<80x128xf32>
    %c0_62 = arith.constant 0 : index
    %c0_63 = arith.constant 0 : index
    %c10_64 = arith.constant 10 : index
    %c0_65 = arith.constant 0 : index
    %61 = vector.load %arg3[%c0_62, %c0_63, %c10_64, %c0_65] : memref<1x1x120x4xbf16, #tpu.memory_space<vmem>>, vector<1x1x80x4xbf16>
    %62 = vector.shape_cast %61 : vector<1x1x80x4xbf16> to vector<80x4xbf16>
    %c10_66 = arith.constant 10 : index
    %c0_67 = arith.constant 0 : index
    %c0_68 = arith.constant 0 : index
    %63 = vector.load %arg5[%c10_66, %c0_67, %c0_68] : memref<27x4x128xbf16, #tpu.memory_space<vmem>>, vector<1x4x128xbf16>
    %64 = vector.shape_cast %63 : vector<1x4x128xbf16> to vector<4x128xbf16>
    %cst_69 = arith.constant dense<0.000000e+00> : vector<80x128xf32>
    %65 = tpu.matmul %62, %64, %cst_69 {dimension_numbers = #tpu.dot_dimension_numbers<[1], [0], [0], [1], [0, 0, 1, 1], [], []>} : vector<80x4xbf16>, vector<4x128xbf16>, vector<80x128xf32> -> vector<80x128xf32>
    %66 = arith.addf %60, %65 : vector<80x128xf32>
    %c0_70 = arith.constant 0 : index
    %c0_71 = arith.constant 0 : index
    %c11_72 = arith.constant 11 : index
    %c0_73 = arith.constant 0 : index
    %67 = vector.load %arg3[%c0_70, %c0_71, %c11_72, %c0_73] : memref<1x1x120x4xbf16, #tpu.memory_space<vmem>>, vector<1x1x80x4xbf16>
    %68 = vector.shape_cast %67 : vector<1x1x80x4xbf16> to vector<80x4xbf16>
    %c11_74 = arith.constant 11 : index
    %c0_75 = arith.constant 0 : index
    %c0_76 = arith.constant 0 : index
    %69 = vector.load %arg5[%c11_74, %c0_75, %c0_76] : memref<27x4x128xbf16, #tpu.memory_space<vmem>>, vector<1x4x128xbf16>
    %70 = vector.shape_cast %69 : vector<1x4x128xbf16> to vector<4x128xbf16>
    %cst_77 = arith.constant dense<0.000000e+00> : vector<80x128xf32>
    %71 = tpu.matmul %68, %70, %cst_77 {dimension_numbers = #tpu.dot_dimension_numbers<[1], [0], [0], [1], [0, 0, 1, 1], [], []>} : vector<80x4xbf16>, vector<4x128xbf16>, vector<80x128xf32> -> vector<80x128xf32>
    %72 = arith.addf %66, %71 : vector<80x128xf32>
    %c0_78 = arith.constant 0 : index
    %c0_79 = arith.constant 0 : index
    %c19_80 = arith.constant 19 : index
    %c0_81 = arith.constant 0 : index
    %73 = vector.load %arg3[%c0_78, %c0_79, %c19_80, %c0_81] : memref<1x1x120x4xbf16, #tpu.memory_space<vmem>>, vector<1x1x80x4xbf16>
    %74 = vector.shape_cast %73 : vector<1x1x80x4xbf16> to vector<80x4xbf16>
    %c12 = arith.constant 12 : index
    %c0_82 = arith.constant 0 : index
    %c0_83 = arith.constant 0 : index
    %75 = vector.load %arg5[%c12, %c0_82, %c0_83] : memref<27x4x128xbf16, #tpu.memory_space<vmem>>, vector<1x4x128xbf16>
    %76 = vector.shape_cast %75 : vector<1x4x128xbf16> to vector<4x128xbf16>
    %cst_84 = arith.constant dense<0.000000e+00> : vector<80x128xf32>
    %77 = tpu.matmul %74, %76, %cst_84 {dimension_numbers = #tpu.dot_dimension_numbers<[1], [0], [0], [1], [0, 0, 1, 1], [], []>} : vector<80x4xbf16>, vector<4x128xbf16>, vector<80x128xf32> -> vector<80x128xf32>
    %78 = arith.addf %72, %77 : vector<80x128xf32>
    %c0_85 = arith.constant 0 : index
    %c0_86 = arith.constant 0 : index
    %c20_87 = arith.constant 20 : index
    %c0_88 = arith.constant 0 : index
    %79 = vector.load %arg3[%c0_85, %c0_86, %c20_87, %c0_88] : memref<1x1x120x4xbf16, #tpu.memory_space<vmem>>, vector<1x1x80x4xbf16>
    %80 = vector.shape_cast %79 : vector<1x1x80x4xbf16> to vector<80x4xbf16>
    %c13 = arith.constant 13 : index
    %c0_89 = arith.constant 0 : index
    %c0_90 = arith.constant 0 : index
    %81 = vector.load %arg5[%c13, %c0_89, %c0_90] : memref<27x4x128xbf16, #tpu.memory_space<vmem>>, vector<1x4x128xbf16>
    %82 = vector.shape_cast %81 : vector<1x4x128xbf16> to vector<4x128xbf16>
    %cst_91 = arith.constant dense<0.000000e+00> : vector<80x128xf32>
    %83 = tpu.matmul %80, %82, %cst_91 {dimension_numbers = #tpu.dot_dimension_numbers<[1], [0], [0], [1], [0, 0, 1, 1], [], []>} : vector<80x4xbf16>, vector<4x128xbf16>, vector<80x128xf32> -> vector<80x128xf32>
    %84 = arith.addf %78, %83 : vector<80x128xf32>
    %c0_92 = arith.constant 0 : index
    %c0_93 = arith.constant 0 : index
    %c21_94 = arith.constant 21 : index
    %c0_95 = arith.constant 0 : index
    %85 = vector.load %arg3[%c0_92, %c0_93, %c21_94, %c0_95] : memref<1x1x120x4xbf16, #tpu.memory_space<vmem>>, vector<1x1x80x4xbf16>
    %86 = vector.shape_cast %85 : vector<1x1x80x4xbf16> to vector<80x4xbf16>
    %c14 = arith.constant 14 : index
    %c0_96 = arith.constant 0 : index
    %c0_97 = arith.constant 0 : index
    %87 = vector.load %arg5[%c14, %c0_96, %c0_97] : memref<27x4x128xbf16, #tpu.memory_space<vmem>>, vector<1x4x128xbf16>
    %88 = vector.shape_cast %87 : vector<1x4x128xbf16> to vector<4x128xbf16>
    %cst_98 = arith.constant dense<0.000000e+00> : vector<80x128xf32>
    %89 = tpu.matmul %86, %88, %cst_98 {dimension_numbers = #tpu.dot_dimension_numbers<[1], [0], [0], [1], [0, 0, 1, 1], [], []>} : vector<80x4xbf16>, vector<4x128xbf16>, vector<80x128xf32> -> vector<80x128xf32>
    %90 = arith.addf %84, %89 : vector<80x128xf32>
    %c0_99 = arith.constant 0 : index
    %c0_100 = arith.constant 0 : index
    %c29_101 = arith.constant 29 : index
    %c0_102 = arith.constant 0 : index
    %91 = vector.load %arg3[%c0_99, %c0_100, %c29_101, %c0_102] : memref<1x1x120x4xbf16, #tpu.memory_space<vmem>>, vector<1x1x80x4xbf16>
    %92 = vector.shape_cast %91 : vector<1x1x80x4xbf16> to vector<80x4xbf16>
    %c15 = arith.constant 15 : index
    %c0_103 = arith.constant 0 : index
    %c0_104 = arith.constant 0 : index
    %93 = vector.load %arg5[%c15, %c0_103, %c0_104] : memref<27x4x128xbf16, #tpu.memory_space<vmem>>, vector<1x4x128xbf16>
    %94 = vector.shape_cast %93 : vector<1x4x128xbf16> to vector<4x128xbf16>
    %cst_105 = arith.constant dense<0.000000e+00> : vector<80x128xf32>
    %95 = tpu.matmul %92, %94, %cst_105 {dimension_numbers = #tpu.dot_dimension_numbers<[1], [0], [0], [1], [0, 0, 1, 1], [], []>} : vector<80x4xbf16>, vector<4x128xbf16>, vector<80x128xf32> -> vector<80x128xf32>
    %96 = arith.addf %90, %95 : vector<80x128xf32>
    %c0_106 = arith.constant 0 : index
    %c0_107 = arith.constant 0 : index
    %c30_108 = arith.constant 30 : index
    %c0_109 = arith.constant 0 : index
    %97 = vector.load %arg3[%c0_106, %c0_107, %c30_108, %c0_109] : memref<1x1x120x4xbf16, #tpu.memory_space<vmem>>, vector<1x1x80x4xbf16>
    %98 = vector.shape_cast %97 : vector<1x1x80x4xbf16> to vector<80x4xbf16>
    %c16 = arith.constant 16 : index
    %c0_110 = arith.constant 0 : index
    %c0_111 = arith.constant 0 : index
    %99 = vector.load %arg5[%c16, %c0_110, %c0_111] : memref<27x4x128xbf16, #tpu.memory_space<vmem>>, vector<1x4x128xbf16>
    %100 = vector.shape_cast %99 : vector<1x4x128xbf16> to vector<4x128xbf16>
    %cst_112 = arith.constant dense<0.000000e+00> : vector<80x128xf32>
    %101 = tpu.matmul %98, %100, %cst_112 {dimension_numbers = #tpu.dot_dimension_numbers<[1], [0], [0], [1], [0, 0, 1, 1], [], []>} : vector<80x4xbf16>, vector<4x128xbf16>, vector<80x128xf32> -> vector<80x128xf32>
    %102 = arith.addf %96, %101 : vector<80x128xf32>
    %c0_113 = arith.constant 0 : index
    %c0_114 = arith.constant 0 : index
    %c31_115 = arith.constant 31 : index
    %c0_116 = arith.constant 0 : index
    %103 = vector.load %arg3[%c0_113, %c0_114, %c31_115, %c0_116] : memref<1x1x120x4xbf16, #tpu.memory_space<vmem>>, vector<1x1x80x4xbf16>
    %104 = vector.shape_cast %103 : vector<1x1x80x4xbf16> to vector<80x4xbf16>
    %c17 = arith.constant 17 : index
    %c0_117 = arith.constant 0 : index
    %c0_118 = arith.constant 0 : index
    %105 = vector.load %arg5[%c17, %c0_117, %c0_118] : memref<27x4x128xbf16, #tpu.memory_space<vmem>>, vector<1x4x128xbf16>
    %106 = vector.shape_cast %105 : vector<1x4x128xbf16> to vector<4x128xbf16>
    %cst_119 = arith.constant dense<0.000000e+00> : vector<80x128xf32>
    %107 = tpu.matmul %104, %106, %cst_119 {dimension_numbers = #tpu.dot_dimension_numbers<[1], [0], [0], [1], [0, 0, 1, 1], [], []>} : vector<80x4xbf16>, vector<4x128xbf16>, vector<80x128xf32> -> vector<80x128xf32>
    %108 = arith.addf %102, %107 : vector<80x128xf32>
    %c0_120 = arith.constant 0 : index
    %c0_121 = arith.constant 0 : index
    %c9_122 = arith.constant 9 : index
    %c0_123 = arith.constant 0 : index
    %109 = vector.load %arg4[%c0_120, %c0_121, %c9_122, %c0_123] : memref<1x1x120x4xbf16, #tpu.memory_space<vmem>>, vector<1x1x80x4xbf16>
    %110 = vector.shape_cast %109 : vector<1x1x80x4xbf16> to vector<80x4xbf16>
    %c18 = arith.constant 18 : index
    %c0_124 = arith.constant 0 : index
    %c0_125 = arith.constant 0 : index
    %111 = vector.load %arg5[%c18, %c0_124, %c0_125] : memref<27x4x128xbf16, #tpu.memory_space<vmem>>, vector<1x4x128xbf16>
    %112 = vector.shape_cast %111 : vector<1x4x128xbf16> to vector<4x128xbf16>
    %cst_126 = arith.constant dense<0.000000e+00> : vector<80x128xf32>
    %113 = tpu.matmul %110, %112, %cst_126 {dimension_numbers = #tpu.dot_dimension_numbers<[1], [0], [0], [1], [0, 0, 1, 1], [], []>} : vector<80x4xbf16>, vector<4x128xbf16>, vector<80x128xf32> -> vector<80x128xf32>
    %114 = arith.addf %108, %113 : vector<80x128xf32>
    %c0_127 = arith.constant 0 : index
    %c0_128 = arith.constant 0 : index
    %c10_129 = arith.constant 10 : index
    %c0_130 = arith.constant 0 : index
    %115 = vector.load %arg4[%c0_127, %c0_128, %c10_129, %c0_130] : memref<1x1x120x4xbf16, #tpu.memory_space<vmem>>, vector<1x1x80x4xbf16>
    %116 = vector.shape_cast %115 : vector<1x1x80x4xbf16> to vector<80x4xbf16>
    %c19_131 = arith.constant 19 : index
    %c0_132 = arith.constant 0 : index
    %c0_133 = arith.constant 0 : index
    %117 = vector.load %arg5[%c19_131, %c0_132, %c0_133] : memref<27x4x128xbf16, #tpu.memory_space<vmem>>, vector<1x4x128xbf16>
    %118 = vector.shape_cast %117 : vector<1x4x128xbf16> to vector<4x128xbf16>
    %cst_134 = arith.constant dense<0.000000e+00> : vector<80x128xf32>
    %119 = tpu.matmul %116, %118, %cst_134 {dimension_numbers = #tpu.dot_dimension_numbers<[1], [0], [0], [1], [0, 0, 1, 1], [], []>} : vector<80x4xbf16>, vector<4x128xbf16>, vector<80x128xf32> -> vector<80x128xf32>
    %120 = arith.addf %114, %119 : vector<80x128xf32>
    %c0_135 = arith.constant 0 : index
    %c0_136 = arith.constant 0 : index
    %c11_137 = arith.constant 11 : index
    %c0_138 = arith.constant 0 : index
    %121 = vector.load %arg4[%c0_135, %c0_136, %c11_137, %c0_138] : memref<1x1x120x4xbf16, #tpu.memory_space<vmem>>, vector<1x1x80x4xbf16>
    %122 = vector.shape_cast %121 : vector<1x1x80x4xbf16> to vector<80x4xbf16>
    %c20_139 = arith.constant 20 : index
    %c0_140 = arith.constant 0 : index
    %c0_141 = arith.constant 0 : index
    %123 = vector.load %arg5[%c20_139, %c0_140, %c0_141] : memref<27x4x128xbf16, #tpu.memory_space<vmem>>, vector<1x4x128xbf16>
    %124 = vector.shape_cast %123 : vector<1x4x128xbf16> to vector<4x128xbf16>
    %cst_142 = arith.constant dense<0.000000e+00> : vector<80x128xf32>
    %125 = tpu.matmul %122, %124, %cst_142 {dimension_numbers = #tpu.dot_dimension_numbers<[1], [0], [0], [1], [0, 0, 1, 1], [], []>} : vector<80x4xbf16>, vector<4x128xbf16>, vector<80x128xf32> -> vector<80x128xf32>
    %126 = arith.addf %120, %125 : vector<80x128xf32>
    %c0_143 = arith.constant 0 : index
    %c0_144 = arith.constant 0 : index
    %c19_145 = arith.constant 19 : index
    %c0_146 = arith.constant 0 : index
    %127 = vector.load %arg4[%c0_143, %c0_144, %c19_145, %c0_146] : memref<1x1x120x4xbf16, #tpu.memory_space<vmem>>, vector<1x1x80x4xbf16>
    %128 = vector.shape_cast %127 : vector<1x1x80x4xbf16> to vector<80x4xbf16>
    %c21_147 = arith.constant 21 : index
    %c0_148 = arith.constant 0 : index
    %c0_149 = arith.constant 0 : index
    %129 = vector.load %arg5[%c21_147, %c0_148, %c0_149] : memref<27x4x128xbf16, #tpu.memory_space<vmem>>, vector<1x4x128xbf16>
    %130 = vector.shape_cast %129 : vector<1x4x128xbf16> to vector<4x128xbf16>
    %cst_150 = arith.constant dense<0.000000e+00> : vector<80x128xf32>
    %131 = tpu.matmul %128, %130, %cst_150 {dimension_numbers = #tpu.dot_dimension_numbers<[1], [0], [0], [1], [0, 0, 1, 1], [], []>} : vector<80x4xbf16>, vector<4x128xbf16>, vector<80x128xf32> -> vector<80x128xf32>
    %132 = arith.addf %126, %131 : vector<80x128xf32>
    %c0_151 = arith.constant 0 : index
    %c0_152 = arith.constant 0 : index
    %c20_153 = arith.constant 20 : index
    %c0_154 = arith.constant 0 : index
    %133 = vector.load %arg4[%c0_151, %c0_152, %c20_153, %c0_154] : memref<1x1x120x4xbf16, #tpu.memory_space<vmem>>, vector<1x1x80x4xbf16>
    %134 = vector.shape_cast %133 : vector<1x1x80x4xbf16> to vector<80x4xbf16>
    %c22 = arith.constant 22 : index
    %c0_155 = arith.constant 0 : index
    %c0_156 = arith.constant 0 : index
    %135 = vector.load %arg5[%c22, %c0_155, %c0_156] : memref<27x4x128xbf16, #tpu.memory_space<vmem>>, vector<1x4x128xbf16>
    %136 = vector.shape_cast %135 : vector<1x4x128xbf16> to vector<4x128xbf16>
    %cst_157 = arith.constant dense<0.000000e+00> : vector<80x128xf32>
    %137 = tpu.matmul %134, %136, %cst_157 {dimension_numbers = #tpu.dot_dimension_numbers<[1], [0], [0], [1], [0, 0, 1, 1], [], []>} : vector<80x4xbf16>, vector<4x128xbf16>, vector<80x128xf32> -> vector<80x128xf32>
    %138 = arith.addf %132, %137 : vector<80x128xf32>
    %c0_158 = arith.constant 0 : index
    %c0_159 = arith.constant 0 : index
    %c21_160 = arith.constant 21 : index
    %c0_161 = arith.constant 0 : index
    %139 = vector.load %arg4[%c0_158, %c0_159, %c21_160, %c0_161] : memref<1x1x120x4xbf16, #tpu.memory_space<vmem>>, vector<1x1x80x4xbf16>
    %140 = vector.shape_cast %139 : vector<1x1x80x4xbf16> to vector<80x4xbf16>
    %c23 = arith.constant 23 : index
    %c0_162 = arith.constant 0 : index
    %c0_163 = arith.constant 0 : index
    %141 = vector.load %arg5[%c23, %c0_162, %c0_163] : memref<27x4x128xbf16, #tpu.memory_space<vmem>>, vector<1x4x128xbf16>
    %142 = vector.shape_cast %141 : vector<1x4x128xbf16> to vector<4x128xbf16>
    %cst_164 = arith.constant dense<0.000000e+00> : vector<80x128xf32>
    %143 = tpu.matmul %140, %142, %cst_164 {dimension_numbers = #tpu.dot_dimension_numbers<[1], [0], [0], [1], [0, 0, 1, 1], [], []>} : vector<80x4xbf16>, vector<4x128xbf16>, vector<80x128xf32> -> vector<80x128xf32>
    %144 = arith.addf %138, %143 : vector<80x128xf32>
    %c0_165 = arith.constant 0 : index
    %c0_166 = arith.constant 0 : index
    %c29_167 = arith.constant 29 : index
    %c0_168 = arith.constant 0 : index
    %145 = vector.load %arg4[%c0_165, %c0_166, %c29_167, %c0_168] : memref<1x1x120x4xbf16, #tpu.memory_space<vmem>>, vector<1x1x80x4xbf16>
    %146 = vector.shape_cast %145 : vector<1x1x80x4xbf16> to vector<80x4xbf16>
    %c24 = arith.constant 24 : index
    %c0_169 = arith.constant 0 : index
    %c0_170 = arith.constant 0 : index
    %147 = vector.load %arg5[%c24, %c0_169, %c0_170] : memref<27x4x128xbf16, #tpu.memory_space<vmem>>, vector<1x4x128xbf16>
    %148 = vector.shape_cast %147 : vector<1x4x128xbf16> to vector<4x128xbf16>
    %cst_171 = arith.constant dense<0.000000e+00> : vector<80x128xf32>
    %149 = tpu.matmul %146, %148, %cst_171 {dimension_numbers = #tpu.dot_dimension_numbers<[1], [0], [0], [1], [0, 0, 1, 1], [], []>} : vector<80x4xbf16>, vector<4x128xbf16>, vector<80x128xf32> -> vector<80x128xf32>
    %150 = arith.addf %144, %149 : vector<80x128xf32>
    %c0_172 = arith.constant 0 : index
    %c0_173 = arith.constant 0 : index
    %c30_174 = arith.constant 30 : index
    %c0_175 = arith.constant 0 : index
    %151 = vector.load %arg4[%c0_172, %c0_173, %c30_174, %c0_175] : memref<1x1x120x4xbf16, #tpu.memory_space<vmem>>, vector<1x1x80x4xbf16>
    %152 = vector.shape_cast %151 : vector<1x1x80x4xbf16> to vector<80x4xbf16>
    %c25 = arith.constant 25 : index
    %c0_176 = arith.constant 0 : index
    %c0_177 = arith.constant 0 : index
    %153 = vector.load %arg5[%c25, %c0_176, %c0_177] : memref<27x4x128xbf16, #tpu.memory_space<vmem>>, vector<1x4x128xbf16>
    %154 = vector.shape_cast %153 : vector<1x4x128xbf16> to vector<4x128xbf16>
    %cst_178 = arith.constant dense<0.000000e+00> : vector<80x128xf32>
    %155 = tpu.matmul %152, %154, %cst_178 {dimension_numbers = #tpu.dot_dimension_numbers<[1], [0], [0], [1], [0, 0, 1, 1], [], []>} : vector<80x4xbf16>, vector<4x128xbf16>, vector<80x128xf32> -> vector<80x128xf32>
    %156 = arith.addf %150, %155 : vector<80x128xf32>
    %c0_179 = arith.constant 0 : index
    %c0_180 = arith.constant 0 : index
    %c31_181 = arith.constant 31 : index
    %c0_182 = arith.constant 0 : index
    %157 = vector.load %arg4[%c0_179, %c0_180, %c31_181, %c0_182] : memref<1x1x120x4xbf16, #tpu.memory_space<vmem>>, vector<1x1x80x4xbf16>
    %158 = vector.shape_cast %157 : vector<1x1x80x4xbf16> to vector<80x4xbf16>
    %c26 = arith.constant 26 : index
    %c0_183 = arith.constant 0 : index
    %c0_184 = arith.constant 0 : index
    %159 = vector.load %arg5[%c26, %c0_183, %c0_184] : memref<27x4x128xbf16, #tpu.memory_space<vmem>>, vector<1x4x128xbf16>
    %160 = vector.shape_cast %159 : vector<1x4x128xbf16> to vector<4x128xbf16>
    %cst_185 = arith.constant dense<0.000000e+00> : vector<80x128xf32>
    %161 = tpu.matmul %158, %160, %cst_185 {dimension_numbers = #tpu.dot_dimension_numbers<[1], [0], [0], [1], [0, 0, 1, 1], [], []>} : vector<80x4xbf16>, vector<4x128xbf16>, vector<80x128xf32> -> vector<80x128xf32>
    %162 = arith.addf %156, %161 : vector<80x128xf32>
    %163 = arith.truncf %162 : vector<80x128xf32> to vector<80x128xbf16>
    %c0_186 = arith.constant 0 : index
    %c0_187 = arith.constant 0 : index
    %c0_188 = arith.constant 0 : index
    %c0_189 = arith.constant 0 : index
    %164 = vector.load %arg6[%c0_186, %c0_187, %c0_188, %c0_189] : memref<1x1x80x128xbf16, #tpu.memory_space<vmem>>, vector<1x1x80x128xbf16>
    %165 = vector.shape_cast %164 : vector<1x1x80x128xbf16> to vector<80x128xbf16>
    %166 = vector.shape_cast %163 : vector<80x128xbf16> to vector<1x1x80x128xbf16>
    tpu.vector_store %arg6[%c0_186, %c0_187, %c0_188, %c0_189], %166 {strides = array<i32>} : memref<1x1x80x128xbf16, #tpu.memory_space<vmem>>, vector<1x1x80x128xbf16>,
    %167 = tpu.iota {dimensions = array<i32: 0>} : vector<80x1xi32>
    %c10_i32 = arith.constant 10 : i32
    %c0_i32 = arith.constant 0 : i32
    %168 = arith.cmpi eq, %c10_i32, %c0_i32 : i32
    %c1_i32 = arith.constant 1 : i32
    %169 = arith.select %168, %c1_i32, %c10_i32 : i32
    %170 = vector.broadcast %169 : i32 to vector<80x1xi32>
    %171 = arith.remsi %167, %170 : vector<80x1xi32>
    %c0_i32_190 = arith.constant 0 : i32
    %172 = vector.broadcast %c0_i32_190 : i32 to vector<80x1xi32>
    %173 = arith.cmpi ne, %171, %172 : vector<80x1xi32>
    %c0_i32_191 = arith.constant 0 : i32
    %174 = vector.broadcast %c0_i32_191 : i32 to vector<80x1xi32>
    %175 = arith.cmpi slt, %171, %174 : vector<80x1xi32>
    %c0_i32_192 = arith.constant 0 : i32
    %176 = arith.cmpi slt, %169, %c0_i32_192 : i32
    %177 = vector.broadcast %176 : i1 to vector<80x1xi1>
    %178 = vector.broadcast %177 : vector<80x1xi1> to vector<80x1xi1>
    %179 = arith.xori %175, %178 : vector<80x1xi1>
    %180 = arith.andi %179, %173 : vector<80x1xi1>
    %181 = vector.broadcast %169 : i32 to vector<80x1xi32>
    %182 = arith.addi %171, %181 : vector<80x1xi32>
    %183 = arith.select %180, %182, %171 : vector<80x1xi1>, vector<80x1xi32>
    %c1_i32_193 = arith.constant 1 : i32
    %184 = vector.broadcast %c1_i32_193 : i32 to vector<80x1xi32>
    %185 = arith.cmpi sge, %183, %184 : vector<80x1xi32>
    %c8_i32 = arith.constant 8 : i32
    %186 = vector.broadcast %c8_i32 : i32 to vector<80x1xi32>
    %187 = arith.cmpi sle, %183, %186 : vector<80x1xi32>
    %188 = arith.andi %185, %187 : vector<80x1xi1>
    %cst_194 = arith.constant 0.000000e+00 : f32
    %189 = vector.shape_cast %188 : vector<80x1xi1> to vector<80x1xi1>
    %190 = vector.broadcast %189 : vector<80x1xi1> to vector<80x128xi1>
    %191 = vector.broadcast %cst_194 : f32 to vector<80x128xf32>
    %192 = arith.select %190, %162, %191 : vector<80x128xi1>, vector<80x128xf32>
    %cst_195 = arith.constant dense<0.000000e+00> : vector<128xf32>
    %193 = vector.multi_reduction <add>, %192, %cst_195 [0] : vector<80x128xf32> to vector<128xf32>
    %194 = vector.shape_cast %193 : vector<128xf32> to vector<1x128xf32>
    %c0_196 = arith.constant 0 : index
    %c0_197 = arith.constant 0 : index
    %c0_198 = arith.constant 0 : index
    %c0_199 = arith.constant 0 : index
    %195 = vector.load %arg7[%c0_196, %c0_197, %c0_198, %c0_199] : memref<1x1x1x128xf32, #tpu.memory_space<vmem>>, vector<1x1x1x128xf32>
    %196 = vector.shape_cast %195 : vector<1x1x1x128xf32> to vector<1x128xf32>
    %197 = vector.shape_cast %194 : vector<1x128xf32> to vector<1x1x1x128xf32>
    tpu.vector_store %arg7[%c0_196, %c0_197, %c0_198, %c0_199], %197 {strides = array<i32>} : memref<1x1x1x128xf32, #tpu.memory_space<vmem>>, vector<1x1x1x128xf32>,
    %198 = arith.mulf %192, %192 : vector<80x128xf32>
    %cst_200 = arith.constant dense<0.000000e+00> : vector<128xf32>
    %199 = vector.multi_reduction <add>, %198, %cst_200 [0] : vector<80x128xf32> to vector<128xf32>
    %200 = vector.shape_cast %199 : vector<128xf32> to vector<1x128xf32>
    %c0_201 = arith.constant 0 : index
    %c0_202 = arith.constant 0 : index
    %c0_203 = arith.constant 0 : index
    %c0_204 = arith.constant 0 : index
    %201 = vector.load %arg8[%c0_201, %c0_202, %c0_203, %c0_204] : memref<1x1x1x128xf32, #tpu.memory_space<vmem>>, vector<1x1x1x128xf32>
    %202 = vector.shape_cast %201 : vector<1x1x1x128xf32> to vector<1x128xf32>
    %203 = vector.shape_cast %200 : vector<1x128xf32> to vector<1x1x1x128xf32>
    tpu.vector_store %arg8[%c0_201, %c0_202, %c0_203, %c0_204], %203 {strides = array<i32>} : memref<1x1x1x128xf32, #tpu.memory_space<vmem>>, vector<1x1x1x128xf32>,
    return
  }
  func.func @transform_0(%arg0: i32, %arg1: i32) -> (i32, i32, i32, i32) {
    %c0_i32 = arith.constant 0 : i32
    %0 = arith.addi %arg1, %c0_i32 : i32
    %c0_i32_0 = arith.constant 0 : i32
    %c0_i32_1 = arith.constant 0 : i32
    %c0_i32_2 = arith.constant 0 : i32
    return %arg0, %0, %c0_i32_0, %c0_i32_1 : i32, i32, i32, i32
  }
  func.func @transform_1(%arg0: i32, %arg1: i32) -> (i32, i32, i32, i32) {
    %c1_i32 = arith.constant 1 : i32
    %0 = arith.addi %arg1, %c1_i32 : i32
    %c0_i32 = arith.constant 0 : i32
    %c0_i32_0 = arith.constant 0 : i32
    %c0_i32_1 = arith.constant 0 : i32
    return %arg0, %0, %c0_i32, %c0_i32_0 : i32, i32, i32, i32
  }
  func.func @transform_2(%arg0: i32, %arg1: i32) -> (i32, i32, i32, i32) {
    %c2_i32 = arith.constant 2 : i32
    %0 = arith.addi %arg1, %c2_i32 : i32
    %c0_i32 = arith.constant 0 : i32
    %c0_i32_0 = arith.constant 0 : i32
    %c0_i32_1 = arith.constant 0 : i32
    return %arg0, %0, %c0_i32, %c0_i32_0 : i32, i32, i32, i32
  }
  func.func @transform_3(%arg0: i32, %arg1: i32) -> (i32, i32, i32) {
    %c0_i32 = arith.constant 0 : i32
    %c0_i32_0 = arith.constant 0 : i32
    %c0_i32_1 = arith.constant 0 : i32
    %c0_i32_2 = arith.constant 0 : i32
    return %c0_i32, %c0_i32_0, %c0_i32_1 : i32, i32, i32
  }
  func.func @transform_4(%arg0: i32, %arg1: i32) -> (i32, i32, i32, i32) {
    %c0_i32 = arith.constant 0 : i32
    %c0_i32_0 = arith.constant 0 : i32
    %c0_i32_1 = arith.constant 0 : i32
    return %arg0, %arg1, %c0_i32, %c0_i32_0 : i32, i32, i32, i32
  }
  func.func @transform_5(%arg0: i32, %arg1: i32) -> (i32, i32, i32, i32) {
    %c0_i32 = arith.constant 0 : i32
    %c0_i32_0 = arith.constant 0 : i32
    %c0_i32_1 = arith.constant 0 : i32
    return %arg0, %arg1, %c0_i32, %c0_i32_0 : i32, i32, i32, i32
  }
  func.func @transform_6(%arg0: i32, %arg1: i32) -> (i32, i32, i32, i32) {
    %c0_i32 = arith.constant 0 : i32
    %c0_i32_0 = arith.constant 0 : i32
    %c0_i32_1 = arith.constant 0 : i32
    return %arg0, %arg1, %c0_i32, %c0_i32_0 : i32, i32, i32, i32
  }
}

module attributes {stable_mosaic.version = 11 : i64} {
  func.func @_bn_relu_kernel(%arg0: i32, %arg1: memref<8x80x128xbf16, #tpu.memory_space<vmem>>, %arg2: memref<1x128xf32, #tpu.memory_space<vmem>>, %arg3: memref<1x128xf32, #tpu.memory_space<vmem>>, %arg4: memref<8x80x128xbf16, #tpu.memory_space<vmem>>) attributes {dimension_semantics = [#tpu.dimension_semantics<parallel>], iteration_bounds = array<i64: 2>, scalar_prefetch = 0 : i64, scratch_operands = 0 : i64, tpu.core_type = #tpu.core_type<tc>, window_params = [{transform_indices = @transform_0, window_bounds = array<i64: 8, 80, 128>}, {pipeline_mode = #tpu.pipeline_mode<synchronous>, transform_indices = @transform_1, window_bounds = array<i64: 1, 128>}, {pipeline_mode = #tpu.pipeline_mode<synchronous>, transform_indices = @transform_2, window_bounds = array<i64: 1, 128>}, {transform_indices = @transform_3, window_bounds = array<i64: 8, 80, 128>}]} {
    %c0 = arith.constant 0 : index
    %c0_0 = arith.constant 0 : index
    %c0_1 = arith.constant 0 : index
    %0 = vector.load %arg1[%c0, %c0_0, %c0_1] : memref<8x80x128xbf16, #tpu.memory_space<vmem>>, vector<8x80x128xbf16>
    %1 = arith.extf %0 : vector<8x80x128xbf16> to vector<8x80x128xf32>
    %c0_2 = arith.constant 0 : index
    %c0_3 = arith.constant 0 : index
    %2 = vector.load %arg2[%c0_2, %c0_3] : memref<1x128xf32, #tpu.memory_space<vmem>>, vector<1x128xf32>
    %3 = vector.shape_cast %2 : vector<1x128xf32> to vector<1x1x128xf32>
    %4 = vector.broadcast %3 : vector<1x1x128xf32> to vector<8x80x128xf32>
    %5 = arith.mulf %1, %4 : vector<8x80x128xf32>
    %c0_4 = arith.constant 0 : index
    %c0_5 = arith.constant 0 : index
    %6 = vector.load %arg3[%c0_4, %c0_5] : memref<1x128xf32, #tpu.memory_space<vmem>>, vector<1x128xf32>
    %7 = vector.shape_cast %6 : vector<1x128xf32> to vector<1x1x128xf32>
    %8 = vector.broadcast %7 : vector<1x1x128xf32> to vector<8x80x128xf32>
    %9 = arith.addf %5, %8 : vector<8x80x128xf32>
    %cst = arith.constant 0.000000e+00 : f32
    %10 = vector.broadcast %cst : f32 to vector<8x80x128xf32>
    %11 = arith.maximumf %9, %10 : vector<8x80x128xf32>
    %12 = arith.truncf %11 : vector<8x80x128xf32> to vector<8x80x128xbf16>
    %c0_6 = arith.constant 0 : index
    %c0_7 = arith.constant 0 : index
    %c0_8 = arith.constant 0 : index
    %13 = vector.load %arg4[%c0_6, %c0_7, %c0_8] : memref<8x80x128xbf16, #tpu.memory_space<vmem>>, vector<8x80x128xbf16>
    tpu.vector_store %arg4[%c0_6, %c0_7, %c0_8], %12 {strides = array<i32>} : memref<8x80x128xbf16, #tpu.memory_space<vmem>>, vector<8x80x128xbf16>,
    return
  }
  func.func @transform_0(%arg0: i32) -> (i32, i32, i32) {
    %c0_i32 = arith.constant 0 : i32
    %c0_i32_0 = arith.constant 0 : i32
    %c0_i32_1 = arith.constant 0 : i32
    return %arg0, %c0_i32, %c0_i32_0 : i32, i32, i32
  }
  func.func @transform_1(%arg0: i32) -> (i32, i32) {
    %c0_i32 = arith.constant 0 : i32
    %c0_i32_0 = arith.constant 0 : i32
    %c0_i32_1 = arith.constant 0 : i32
    return %c0_i32, %c0_i32_0 : i32, i32
  }
  func.func @transform_2(%arg0: i32) -> (i32, i32) {
    %c0_i32 = arith.constant 0 : i32
    %c0_i32_0 = arith.constant 0 : i32
    %c0_i32_1 = arith.constant 0 : i32
    return %c0_i32, %c0_i32_0 : i32, i32
  }
  func.func @transform_3(%arg0: i32) -> (i32, i32, i32) {
    %c0_i32 = arith.constant 0 : i32
    %c0_i32_0 = arith.constant 0 : i32
    %c0_i32_1 = arith.constant 0 : i32
    return %arg0, %c0_i32, %c0_i32_0 : i32, i32, i32
  }
}

</mosaic_0001>

<bundles_post_ra>
// kernel: conv_block_forward.3
= control target key start
LH: loop header
LB: loop body
LE: loop exit
PB: predicated region body
PF: predicated region fallthrough
CT: control target
= control target key end

     0   :  { %s1699_s12 = smov 0   ;;  %s2113_s0 = inlined_call_operand.vmem [shape: bf16[16,80,128], index: 0, kind: input, shape index: {}, may-alias: {0,3}]   ;;  %s2114_s1 = inlined_call_operand.vmem [shape: f32[1,128], index: 1, kind: input, shape index: {}]   ;;  %s2115_s2 = inlined_call_operand.vmem [shape: f32[1,128], index: 2, kind: input, shape index: {}]   ;;  %s2116_s3 = inlined_call_operand.vmem [shape: bf16[16,80,128], index: 3, kind: output, shape index: {}, may-alias: {0,3}]  }
   0x1 LB: > { %s1051_s13 = sadd.s32 4294967295, %s1677_s12   ;;  %p1055_p0 = scmp.ge.s32.totalorder %s1677_s12, 1  ;;  %s1677_s12 = sphi %s1699_s12, %s13_s12  }
   0x2   : > { %p139_p1 = scmp.lt.s32.totalorder %s1677_s12, 3 }
   0x4   : > { %p140_p2 = pnand %p1055_p0, %p139_p1 }
   0x5   : > { %s1056_s14 = sshll.u32 (!%p140_p2), %s1051_s13, 3  ;;  %v1720_v0 = vld [vmem:[%s2114_s1] ss:$0 sm:$0xff] (!%p140_p2) }
   0x6   : > { %143 = sbr.rel (%p140_p2) target bundleno = 114 (0x72), region = 32  ;;  %p166_p3 = scmp.lt.s32.totalorder (!%p140_p2), %s1056_s14, 15  ;;  %v1729_v9 = vld [vmem:[%s2115_s2] ss:$0 sm:$0xff] (!%p140_p2) }
   0xd   : > { %s2118_s14 = smov (!%p166_p3, %s1056_s14), 15 }
   0xe   : > { %s1662_s15 = smul.u32 40, %s2118_s14 }
  0x10   : > { %s1715_s18 = scalar_lea.vmem %s2113_s0, %s1662_s15  ;;  %s1765_s25 = scalar_lea.vmem %s2116_s3, %s1662_s15 }
  0x11   : > { %v1225_v1 = vld [vmem:[%s1715_s18] sm:$0xff]   ;;  %v1584_v2 = vld [vmem:[%s1715_s18 + $0x8] sm:$0xff]   ;;  %v1585_v3 = vld [vmem:[%s1715_s18 + $0x10] sm:$0xff]  }
  0x12   : > { %v1226_v4 = vunpack.c.l.bf16 %v1225_v1  ;;  %v1227_v5 = vunpack.c.h.bf16 %v1225_v1  ;;  %v1586_v6 = vld [vmem:[%s1715_s18 + $0x18] sm:$0xff]   ;;  %v1230_v7 = vunpack.c.l.bf16 %v1584_v2  ;;  %v1231_v8 = vunpack.c.h.bf16 %v1584_v2  ;;  %v1587_v18 = vld [vmem:[%s1715_s18 + $0x20] sm:$0xff]   ;;  %v1588_v31 = vld [vmem:[%s1715_s18 + $0x28] sm:$0xff]  }
  0x13   : > { %v1234_v10 = vunpack.c.l.bf16 %v1585_v3  ;;  %v1235_v11 = vunpack.c.h.bf16 %v1585_v3  ;;  %v1238_v12 = vunpack.c.l.bf16 %v1586_v6  ;;  %v1239_v13 = vunpack.c.h.bf16 %v1586_v6  ;;  %v1750_v36 = vld [vmem:[%s1715_s18 + $0x30] sm:$0xff]   ;;  %v1753_v41 = vld [vmem:[%s1715_s18 + $0x38] sm:$0xff]   ;;  %v1757_v46 = vld [vmem:[%s1715_s18 + $0x40] sm:$0xff]  }
  0x14   : > { %v346_v14 = vmul.f32 %v1226_v4, %v1720_v0  ;;  %v347_v15 = vmul.f32 %v1227_v5, %v1720_v0  ;;  %v348_v16 = vmul.f32 %v1230_v7, %v1720_v0  ;;  %v349_v17 = vmul.f32 %v1231_v8, %v1720_v0  ;;  %v1768_v51 = vld [vmem:[%s1715_s18 + $0x48] sm:$0xff]   ;;  %v1771_v52 = vld [vmem:[%s1715_s18 + $0x50] sm:$0xff]   ;;  %v1774_v53 = vld [vmem:[%s1715_s18 + $0x58] sm:$0xff]  }
  0x15   : > { %v350_v19 = vmul.f32 %v1234_v10, %v1720_v0  ;;  %v351_v20 = vmul.f32 %v1235_v11, %v1720_v0  ;;  %v352_v21 = vmul.f32 %v1238_v12, %v1720_v0  ;;  %v353_v22 = vmul.f32 %v1239_v13, %v1720_v0  ;;  %v1777_v54 = vld [vmem:[%s1715_s18 + $0x60] sm:$0xff]   ;;  %v1780_v55 = vld [vmem:[%s1715_s18 + $0x68] sm:$0xff]   ;;  %v1783_v56 = vld [vmem:[%s1715_s18 + $0x70] sm:$0xff]  }
  0x16   : > { %v433_v23 = vadd.f32 %v1729_v9, %v346_v14  ;;  %v434_v24 = vadd.f32 %v1729_v9, %v347_v15  ;;  %v435_v25 = vadd.f32 %v1729_v9, %v348_v16  ;;  %v436_v26 = vadd.f32 %v1729_v9, %v349_v17  ;;  %v1786_v57 = vld [vmem:[%s1715_s18 + $0x78] sm:$0xff]   ;;  %v1789_v58 = vld [vmem:[%s1715_s18 + $0x80] sm:$0xff]   ;;  %v1792_v59 = vld [vmem:[%s1715_s18 + $0x88] sm:$0xff]  }
  0x17   : > { %v437_v27 = vadd.f32 %v1729_v9, %v350_v19  ;;  %v438_v28 = vadd.f32 %v1729_v9, %v351_v20  ;;  %v439_v29 = vadd.f32 %v1729_v9, %v352_v21  ;;  %v440_v30 = vadd.f32 %v1729_v9, %v353_v22  ;;  %v1795_v60 = vld [vmem:[%s1715_s18 + $0x90] sm:$0xff]   ;;  %v1798_v61 = vld [vmem:[%s1715_s18 + $0x98] sm:$0xff]   ;;  %v1801_v62 = vld [vmem:[%s1715_s18 + $0xa0] sm:$0xff]  }
  0x18   : > { %v513_v32 = vmax.f32 %v433_v23, 0.0  ;;  %v514_v33 = vmax.f32 %v434_v24, 0.0  ;;  %v515_v34 = vmax.f32 %v435_v25, 0.0  ;;  %v1242_v35 = vunpack.c.l.bf16 %v1587_v18  ;;  %v1804_v63 = vld [vmem:[%s1715_s18 + $0xa8] sm:$0xff]   ;;  %v1807_v1 = vld [vmem:[%s1715_s18 + $0xb0] sm:$0xff]   ;;  %v1810_v2 = vld [vmem:[%s1715_s18 + $0xb8] sm:$0xff]  }
  0x19   : > { %v516_v37 = vmax.f32 %v436_v26, 0.0  ;;  %v517_v38 = vmax.f32 %v437_v27, 0.0  ;;  %v518_v39 = vmax.f32 %v438_v28, 0.0  ;;  %v1243_v40 = vunpack.c.h.bf16 %v1587_v18  ;;  %v1813_v3 = vld [vmem:[%s1715_s18 + $0xc0] sm:$0xff]   ;;  %v1816_v4 = vld [vmem:[%s1715_s18 + $0xc8] sm:$0xff]   ;;  %v1819_v5 = vld [vmem:[%s1715_s18 + $0xd0] sm:$0xff]  }
  0x1a   : > { %v1387_v42 = vpack.c.bf16 %v514_v33, %v513_v32  ;;  %v519_v43 = vmax.f32 %v439_v29, 0.0  ;;  %v520_v44 = vmax.f32 %v440_v30, 0.0  ;;  %v354_v45 = vmul.f32 %v1242_v35, %v1720_v0  ;;  %v1822_v6 = vld [vmem:[%s1715_s18 + $0xd8] sm:$0xff]   ;;  %v1825_v7 = vld [vmem:[%s1715_s18 + $0xe0] sm:$0xff]   ;;  %v1828_v8 = vld [vmem:[%s1715_s18 + $0xe8] sm:$0xff]  }
  0x1b   : > { %v1392_v47 = vpack.c.bf16 %v516_v37, %v515_v34  ;;  %v1397_v48 = vpack.c.bf16 %v518_v39, %v517_v38  ;;  %v355_v49 = vmul.f32 %v1243_v40, %v1720_v0  ;;  %v1246_v50 = vunpack.c.l.bf16 %v1588_v31  ;;  %v1831_v10 = vld [vmem:[%s1715_s18 + $0xf0] sm:$0xff]   ;;  %v1834_v11 = vld [vmem:[%s1715_s18 + $0xf8] sm:$0xff]   ;;  %v1837_v12 = vld [vmem:[%s1715_s18 + $0x100] sm:$0xff]  }
  0x1c   : > { %v1840_v13 = vld [vmem:[%s1715_s18 + $0x108] sm:$0xff]   ;;  %v1402_v14 = vpack.c.bf16 %v520_v44, %v519_v43  ;;  %v441_v15 = vadd.f32 %v1729_v9, %v354_v45  ;;  %v1247_v16 = vunpack.c.h.bf16 %v1588_v31  ;;  %v1250_v17 = vunpack.c.l.bf16 %v1750_v36  ;;  %v1845_v18 = vld [vmem:[%s1715_s18 + $0x110] sm:$0xff]   ;;  %v1848_v19 = vld [vmem:[%s1715_s18 + $0x118] sm:$0xff]  }
  0x1d   : > { %v1851_v20 = vld [vmem:[%s1715_s18 + $0x120] sm:$0xff]   ;;  %v442_v21 = vadd.f32 %v1729_v9, %v355_v49  ;;  %v356_v22 = vmul.f32 %v1246_v50, %v1720_v0  ;;  %v1251_v23 = vunpack.c.h.bf16 %v1750_v36  ;;  %v1254_v24 = vunpack.c.l.bf16 %v1753_v41  ;;  %v1858_v25 = vld [vmem:[%s1715_s18 + $0x128] sm:$0xff]   ;;  %v1861_v26 = vld [vmem:[%s1715_s18 + $0x130] sm:$0xff]  }
  0x1e   : > { %v1864_v27 = vld [vmem:[%s1715_s18 + $0x138] sm:$0xff]   ;;  %v521_v28 = vmax.f32 %v441_v15, 0.0  ;;  %v357_v29 = vmul.f32 %v1247_v16, %v1720_v0  ;;  %v358_v30 = vmul.f32 %v1250_v17, %v1720_v0  ;;  %v1255_v31 = vunpack.c.h.bf16 %v1753_v41 }
  0x1f   : > { %1388 = vst [vmem:[%s1765_s25] sm:$0xff] %v1387_v42   ;;  %1623 = vst [vmem:[%s1765_s25 + $0x8] sm:$0xff] %v1392_v47   ;;  %v522_v32 = vmax.f32 %v442_v21, 0.0  ;;  %v443_v33 = vadd.f32 %v1729_v9, %v356_v22  ;;  %v359_v34 = vmul.f32 %v1251_v23, %v1720_v0  ;;  %v360_v35 = vmul.f32 %v1254_v24, %v1720_v0 }
  0x20   : > { %1624 = vst [vmem:[%s1765_s25 + $0x10] sm:$0xff] %v1397_v48   ;;  %1625 = vst [vmem:[%s1765_s25 + $0x18] sm:$0xff] %v1402_v14   ;;  %v444_v36 = vadd.f32 %v1729_v9, %v357_v29  ;;  %v445_v37 = vadd.f32 %v1729_v9, %v358_v30  ;;  %v361_v38 = vmul.f32 %v1255_v31, %v1720_v0  ;;  %v1258_v39 = vunpack.c.l.bf16 %v1757_v46 }
  0x21   : > { %v1407_v40 = vpack.c.bf16 %v522_v32, %v521_v28  ;;  %v523_v41 = vmax.f32 %v443_v33, 0.0  ;;  %v446_v42 = vadd.f32 %v1729_v9, %v359_v34  ;;  %v447_v43 = vadd.f32 %v1729_v9, %v360_v35 }
  0x22   : > { %v524_v44 = vmax.f32 %v444_v36, 0.0  ;;  %v525_v45 = vmax.f32 %v445_v37, 0.0  ;;  %v448_v47 = vadd.f32 %v1729_v9, %v361_v38  ;;  %v1259_v48 = vunpack.c.h.bf16 %v1757_v46 }
  0x23   : > { %1626 = vst [vmem:[%s1765_s25 + $0x20] sm:$0xff] %v1407_v40   ;;  %v526_v49 = vmax.f32 %v446_v42, 0.0  ;;  %v527_v50 = vmax.f32 %v447_v43, 0.0  ;;  %v362_v14 = vmul.f32 %v1258_v39, %v1720_v0  ;;  %v1262_v15 = vunpack.c.l.bf16 %v1768_v51 }
  0x24   : > { %v1412_v16 = vpack.c.bf16 %v524_v44, %v523_v41  ;;  %v528_v17 = vmax.f32 %v448_v47, 0.0  ;;  %v363_v21 = vmul.f32 %v1259_v48, %v1720_v0  ;;  %v1263_v22 = vunpack.c.h.bf16 %v1768_v51 }
  0x25   : > { %v1417_v23 = vpack.c.bf16 %v526_v49, %v525_v45  ;;  %v449_v24 = vadd.f32 %v1729_v9, %v362_v14  ;;  %v364_v46 = vmul.f32 %v1262_v15, %v1720_v0  ;;  %v1266_v28 = vunpack.c.l.bf16 %v1771_v52 }
  0x26   : > { %1627 = vst [vmem:[%s1765_s25 + $0x28] sm:$0xff] %v1412_v16   ;;  %v1422_v29 = vpack.c.bf16 %v528_v17, %v527_v50  ;;  %v450_v30 = vadd.f32 %v1729_v9, %v363_v21  ;;  %v365_v31 = vmul.f32 %v1263_v22, %v1720_v0  ;;  %v1267_v32 = vunpack.c.h.bf16 %v1771_v52 }
  0x27   : > { %1628 = vst [vmem:[%s1765_s25 + $0x30] sm:$0xff] %v1417_v23   ;;  %v529_v33 = vmax.f32 %v449_v24, 0.0  ;;  %v451_v34 = vadd.f32 %v1729_v9, %v364_v46  ;;  %v366_v51 = vmul.f32 %v1266_v28, %v1720_v0  ;;  %v1270_v35 = vunpack.c.l.bf16 %v1774_v53 }
  0x28   : > { %1629 = vst [vmem:[%s1765_s25 + $0x38] sm:$0xff] %v1422_v29   ;;  %v530_v36 = vmax.f32 %v450_v30, 0.0  ;;  %v452_v37 = vadd.f32 %v1729_v9, %v365_v31  ;;  %v367_v38 = vmul.f32 %v1267_v32, %v1720_v0  ;;  %v1271_v39 = vunpack.c.h.bf16 %v1774_v53 }
  0x29   : > { %v531_v40 = vmax.f32 %v451_v34, 0.0  ;;  %v453_v52 = vadd.f32 %v1729_v9, %v366_v51  ;;  %v368_v41 = vmul.f32 %v1270_v35, %v1720_v0  ;;  %v1274_v42 = vunpack.c.l.bf16 %v1777_v54 }
  0x2a   : > { %v1427_v43 = vpack.c.bf16 %v530_v36, %v529_v33  ;;  %v532_v44 = vmax.f32 %v452_v37, 0.0  ;;  %v454_v45 = vadd.f32 %v1729_v9, %v367_v38  ;;  %v369_v47 = vmul.f32 %v1271_v39, %v1720_v0 }
  0x2b   : > { %v533_v48 = vmax.f32 %v453_v52, 0.0  ;;  %v455_v49 = vadd.f32 %v1729_v9, %v368_v41  ;;  %v1275_v50 = vunpack.c.h.bf16 %v1777_v54  ;;  %v370_v53 = vmul.f32 %v1274_v42, %v1720_v0 }
  0x2c   : > { %1630 = vst [vmem:[%s1765_s25 + $0x40] sm:$0xff] %v1427_v43   ;;  %v1432_v14 = vpack.c.bf16 %v532_v44, %v531_v40  ;;  %v534_v15 = vmax.f32 %v454_v45, 0.0  ;;  %v456_v16 = vadd.f32 %v1729_v9, %v369_v47  ;;  %v1278_v17 = vunpack.c.l.bf16 %v1780_v55 }
  0x2d   : > { %v535_v21 = vmax.f32 %v455_v49, 0.0  ;;  %v371_v22 = vmul.f32 %v1275_v50, %v1720_v0  ;;  %v457_v23 = vadd.f32 %v1729_v9, %v370_v53  ;;  %v1279_v24 = vunpack.c.h.bf16 %v1780_v55 }
  0x2e   : > { %1631 = vst [vmem:[%s1765_s25 + $0x48] sm:$0xff] %v1432_v14   ;;  %v1437_v46 = vpack.c.bf16 %v534_v15, %v533_v48  ;;  %v536_v54 = vmax.f32 %v456_v16, 0.0  ;;  %v372_v28 = vmul.f32 %v1278_v17, %v1720_v0  ;;  %v1282_v29 = vunpack.c.l.bf16 %v1783_v56 }
  0x2f   : > { %v458_v30 = vadd.f32 %v1729_v9, %v371_v22  ;;  %v537_v31 = vmax.f32 %v457_v23, 0.0  ;;  %v373_v32 = vmul.f32 %v1279_v24, %v1720_v0  ;;  %v1283_v33 = vunpack.c.h.bf16 %v1783_v56 }
  0x30   : > { %1632 = vst [vmem:[%s1765_s25 + $0x50] sm:$0xff] %v1437_v46   ;;  %v1442_v34 = vpack.c.bf16 %v536_v54, %v535_v21  ;;  %v459_v51 = vadd.f32 %v1729_v9, %v372_v28  ;;  %v374_v55 = vmul.f32 %v1282_v29, %v1720_v0  ;;  %v1286_v35 = vunpack.c.l.bf16 %v1786_v57 }
  0x31   : > { %v538_v36 = vmax.f32 %v458_v30, 0.0  ;;  %v460_v37 = vadd.f32 %v1729_v9, %v373_v32  ;;  %v375_v38 = vmul.f32 %v1283_v33, %v1720_v0  ;;  %v1287_v39 = vunpack.c.h.bf16 %v1786_v57 }
  0x32   : > { %1633 = vst [vmem:[%s1765_s25 + $0x58] sm:$0xff] %v1442_v34   ;;  %v539_v40 = vmax.f32 %v459_v51, 0.0  ;;  %v461_v56 = vadd.f32 %v1729_v9, %v374_v55  ;;  %v376_v52 = vmul.f32 %v1286_v35, %v1720_v0  ;;  %v1290_v41 = vunpack.c.l.bf16 %v1789_v58 }
  0x33   : > { %v1447_v42 = vpack.c.bf16 %v538_v36, %v537_v31  ;;  %v540_v43 = vmax.f32 %v460_v37, 0.0  ;;  %v462_v44 = vadd.f32 %v1729_v9, %v375_v38  ;;  %v377_v45 = vmul.f32 %v1287_v39, %v1720_v0 }
  0x34   : > { %v541_v47 = vmax.f32 %v461_v56, 0.0  ;;  %v463_v48 = vadd.f32 %v1729_v9, %v376_v52  ;;  %v1291_v57 = vunpack.c.h.bf16 %v1789_v58  ;;  %v378_v49 = vmul.f32 %v1290_v41, %v1720_v0 }
  0x35   : > { %1634 = vst [vmem:[%s1765_s25 + $0x60] sm:$0xff] %v1447_v42   ;;  %v1452_v50 = vpack.c.bf16 %v540_v43, %v539_v40  ;;  %v542_v53 = vmax.f32 %v462_v44, 0.0  ;;  %v464_v14 = vadd.f32 %v1729_v9, %v377_v45  ;;  %v1294_v15 = vunpack.c.l.bf16 %v1792_v59 }
  0x36   : > { %v543_v16 = vmax.f32 %v463_v48, 0.0  ;;  %v379_v17 = vmul.f32 %v1291_v57, %v1720_v0  ;;  %v465_v21 = vadd.f32 %v1729_v9, %v378_v49  ;;  %v1295_v22 = vunpack.c.h.bf16 %v1792_v59 }
  0x37   : > { %1635 = vst [vmem:[%s1765_s25 + $0x68] sm:$0xff] %v1452_v50   ;;  %v1457_v23 = vpack.c.bf16 %v542_v53, %v541_v47  ;;  %v544_v58 = vmax.f32 %v464_v14, 0.0  ;;  %v380_v24 = vmul.f32 %v1294_v15, %v1720_v0  ;;  %v1298_v46 = vunpack.c.l.bf16 %v1795_v60 }
  0x38   : > { %v466_v54 = vadd.f32 %v1729_v9, %v379_v17  ;;  %v545_v28 = vmax.f32 %v465_v21, 0.0  ;;  %v381_v29 = vmul.f32 %v1295_v22, %v1720_v0  ;;  %v1299_v30 = vunpack.c.h.bf16 %v1795_v60 }
  0x39   : > { %1636 = vst [vmem:[%s1765_s25 + $0x70] sm:$0xff] %v1457_v23   ;;  %v1462_v31 = vpack.c.bf16 %v544_v58, %v543_v16  ;;  %v467_v32 = vadd.f32 %v1729_v9, %v380_v24  ;;  %v382_v59 = vmul.f32 %v1298_v46, %v1720_v0  ;;  %v1302_v33 = vunpack.c.l.bf16 %v1798_v61 }
  0x3a   : > { %v546_v34 = vmax.f32 %v466_v54, 0.0  ;;  %v468_v51 = vadd.f32 %v1729_v9, %v381_v29  ;;  %v383_v55 = vmul.f32 %v1299_v30, %v1720_v0  ;;  %v1303_v35 = vunpack.c.h.bf16 %v1798_v61 }
  0x3b   : > { %1637 = vst [vmem:[%s1765_s25 + $0x78] sm:$0xff] %v1462_v31   ;;  %v547_v36 = vmax.f32 %v467_v32, 0.0  ;;  %v469_v60 = vadd.f32 %v1729_v9, %v382_v59  ;;  %v384_v37 = vmul.f32 %v1302_v33, %v1720_v0  ;;  %v1306_v38 = vunpack.c.l.bf16 %v1801_v62 }
  0x3c   : > { %v1467_v39 = vpack.c.bf16 %v546_v34, %v545_v28  ;;  %v548_v40 = vmax.f32 %v468_v51, 0.0  ;;  %v470_v56 = vadd.f32 %v1729_v9, %v383_v55  ;;  %v385_v52 = vmul.f32 %v1303_v35, %v1720_v0 }
  0x3d   : > { %v549_v41 = vmax.f32 %v469_v60, 0.0  ;;  %v471_v42 = vadd.f32 %v1729_v9, %v384_v37  ;;  %v1307_v61 = vunpack.c.h.bf16 %v1801_v62  ;;  %v386_v43 = vmul.f32 %v1306_v38, %v1720_v0 }
  0x3e   : > { %1638 = vst [vmem:[%s1765_s25 + $0x80] sm:$0xff] %v1467_v39   ;;  %v1472_v44 = vpack.c.bf16 %v548_v40, %v547_v36  ;;  %v550_v45 = vmax.f32 %v470_v56, 0.0  ;;  %v472_v47 = vadd.f32 %v1729_v9, %v385_v52  ;;  %v1310_v48 = vunpack.c.l.bf16 %v1804_v63 }
  0x3f   : > { %v551_v57 = vmax.f32 %v471_v42, 0.0  ;;  %v387_v49 = vmul.f32 %v1307_v61, %v1720_v0  ;;  %v473_v50 = vadd.f32 %v1729_v9, %v386_v43  ;;  %v1311_v53 = vunpack.c.h.bf16 %v1804_v63 }
  0x40   : > { %1639 = vst [vmem:[%s1765_s25 + $0x88] sm:$0xff] %v1472_v44   ;;  %v1477_v14 = vpack.c.bf16 %v550_v45, %v549_v41  ;;  %v552_v62 = vmax.f32 %v472_v47, 0.0  ;;  %v388_v15 = vmul.f32 %v1310_v48, %v1720_v0  ;;  %v1314_v16 = vunpack.c.l.bf16 %v1807_v1 }
  0x41   : > { %v474_v17 = vadd.f32 %v1729_v9, %v387_v49  ;;  %v553_v21 = vmax.f32 %v473_v50, 0.0  ;;  %v389_v22 = vmul.f32 %v1311_v53, %v1720_v0  ;;  %v1315_v23 = vunpack.c.h.bf16 %v1807_v1 }
  0x42   : > { %1640 = vst [vmem:[%s1765_s25 + $0x90] sm:$0xff] %v1477_v14   ;;  %v1482_v58 = vpack.c.bf16 %v552_v62, %v551_v57  ;;  %v475_v24 = vadd.f32 %v1729_v9, %v388_v15  ;;  %v390_v63 = vmul.f32 %v1314_v16, %v1720_v0  ;;  %v1318_v46 = vunpack.c.l.bf16 %v1810_v2 }
  0x43   : > { %v554_v54 = vmax.f32 %v474_v17, 0.0  ;;  %v476_v28 = vadd.f32 %v1729_v9, %v389_v22  ;;  %v391_v29 = vmul.f32 %v1315_v23, %v1720_v0  ;;  %v1319_v30 = vunpack.c.h.bf16 %v1810_v2 }
  0x44   : > { %1641 = vst [vmem:[%s1765_s25 + $0x98] sm:$0xff] %v1482_v58   ;;  %v555_v31 = vmax.f32 %v475_v24, 0.0  ;;  %v477_v1 = vadd.f32 %v1729_v9, %v390_v63  ;;  %v392_v32 = vmul.f32 %v1318_v46, %v1720_v0  ;;  %v1322_v59 = vunpack.c.l.bf16 %v1813_v3 }
  0x45   : > { %v1487_v33 = vpack.c.bf16 %v554_v54, %v553_v21  ;;  %v556_v34 = vmax.f32 %v476_v28, 0.0  ;;  %v478_v51 = vadd.f32 %v1729_v9, %v391_v29  ;;  %v393_v55 = vmul.f32 %v1319_v30, %v1720_v0 }
  0x46   : > { %v557_v35 = vmax.f32 %v477_v1, 0.0  ;;  %v479_v36 = vadd.f32 %v1729_v9, %v392_v32  ;;  %v1323_v2 = vunpack.c.h.bf16 %v1813_v3  ;;  %v394_v60 = vmul.f32 %v1322_v59, %v1720_v0 }
  0x47   : > { %1642 = vst [vmem:[%s1765_s25 + $0xa0] sm:$0xff] %v1487_v33   ;;  %v1492_v37 = vpack.c.bf16 %v556_v34, %v555_v31  ;;  %v558_v38 = vmax.f32 %v478_v51, 0.0  ;;  %v480_v39 = vadd.f32 %v1729_v9, %v393_v55  ;;  %v1326_v40 = vunpack.c.l.bf16 %v1816_v4 }
  0x48   : > { %v559_v56 = vmax.f32 %v479_v36, 0.0  ;;  %v395_v52 = vmul.f32 %v1323_v2, %v1720_v0  ;;  %v481_v41 = vadd.f32 %v1729_v9, %v394_v60  ;;  %v1327_v42 = vunpack.c.h.bf16 %v1816_v4 }
  0x49   : > { %1643 = vst [vmem:[%s1765_s25 + $0xa8] sm:$0xff] %v1492_v37   ;;  %v1497_v61 = vpack.c.bf16 %v558_v38, %v557_v35  ;;  %v560_v3 = vmax.f32 %v480_v39, 0.0  ;;  %v396_v43 = vmul.f32 %v1326_v40, %v1720_v0  ;;  %v1330_v44 = vunpack.c.l.bf16 %v1819_v5 }
  0x4a   : > { %v482_v45 = vadd.f32 %v1729_v9, %v395_v52  ;;  %v561_v47 = vmax.f32 %v481_v41, 0.0  ;;  %v397_v48 = vmul.f32 %v1327_v42, %v1720_v0  ;;  %v1331_v57 = vunpack.c.h.bf16 %v1819_v5 }
  0x4b   : > { %1644 = vst [vmem:[%s1765_s25 + $0xb0] sm:$0xff] %v1497_v61   ;;  %v1502_v49 = vpack.c.bf16 %v560_v3, %v559_v56  ;;  %v483_v50 = vadd.f32 %v1729_v9, %v396_v43  ;;  %v398_v4 = vmul.f32 %v1330_v44, %v1720_v0  ;;  %v1334_v53 = vunpack.c.l.bf16 %v1822_v6 }
  0x4c   : > { %v562_v14 = vmax.f32 %v482_v45, 0.0  ;;  %v484_v62 = vadd.f32 %v1729_v9, %v397_v48  ;;  %v399_v15 = vmul.f32 %v1331_v57, %v1720_v0  ;;  %v1335_v16 = vunpack.c.h.bf16 %v1822_v6 }
  0x4d   : > { %1645 = vst [vmem:[%s1765_s25 + $0xb8] sm:$0xff] %v1502_v49   ;;  %v563_v17 = vmax.f32 %v483_v50, 0.0  ;;  %v485_v5 = vadd.f32 %v1729_v9, %v398_v4  ;;  %v400_v21 = vmul.f32 %v1334_v53, %v1720_v0  ;;  %v1338_v22 = vunpack.c.l.bf16 %v1825_v7 }
  0x4e   : > { %v1507_v23 = vpack.c.bf16 %v562_v14, %v561_v47  ;;  %v564_v58 = vmax.f32 %v484_v62, 0.0  ;;  %v486_v24 = vadd.f32 %v1729_v9, %v399_v15  ;;  %v401_v63 = vmul.f32 %v1335_v16, %v1720_v0 }
  0x4f   : > { %v565_v46 = vmax.f32 %v485_v5, 0.0  ;;  %v487_v54 = vadd.f32 %v1729_v9, %v400_v21  ;;  %v1339_v6 = vunpack.c.h.bf16 %v1825_v7  ;;  %v402_v28 = vmul.f32 %v1338_v22, %v1720_v0 }
  0x50   : > { %1646 = vst [vmem:[%s1765_s25 + $0xc0] sm:$0xff] %v1507_v23   ;;  %v1512_v29 = vpack.c.bf16 %v564_v58, %v563_v17  ;;  %v566_v30 = vmax.f32 %v486_v24, 0.0  ;;  %v488_v31 = vadd.f32 %v1729_v9, %v401_v63  ;;  %v1342_v1 = vunpack.c.l.bf16 %v1828_v8 }
  0x51   : > { %v567_v32 = vmax.f32 %v487_v54, 0.0  ;;  %v403_v59 = vmul.f32 %v1339_v6, %v1720_v0  ;;  %v489_v33 = vadd.f32 %v1729_v9, %v402_v28  ;;  %v1343_v34 = vunpack.c.h.bf16 %v1828_v8 }
  0x52   : > { %1647 = vst [vmem:[%s1765_s25 + $0xc8] sm:$0xff] %v1512_v29   ;;  %v1517_v51 = vpack.c.bf16 %v566_v30, %v565_v46  ;;  %v568_v7 = vmax.f32 %v488_v31, 0.0  ;;  %v404_v55 = vmul.f32 %v1342_v1, %v1720_v0  ;;  %v1346_v35 = vunpack.c.l.bf16 %v1831_v10 }
  0x53   : > { %v490_v36 = vadd.f32 %v1729_v9, %v403_v59  ;;  %v569_v2 = vmax.f32 %v489_v33, 0.0  ;;  %v405_v60 = vmul.f32 %v1343_v34, %v1720_v0  ;;  %v1347_v37 = vunpack.c.h.bf16 %v1831_v10 }
  0x54   : > { %1648 = vst [vmem:[%s1765_s25 + $0xd0] sm:$0xff] %v1517_v51   ;;  %v1522_v38 = vpack.c.bf16 %v568_v7, %v567_v32  ;;  %v491_v39 = vadd.f32 %v1729_v9, %v404_v55  ;;  %v406_v8 = vmul.f32 %v1346_v35, %v1720_v0  ;;  %v1350_v40 = vunpack.c.l.bf16 %v1834_v11 }
  0x55   : > { %v570_v56 = vmax.f32 %v490_v36, 0.0  ;;  %v492_v52 = vadd.f32 %v1729_v9, %v405_v60  ;;  %v407_v41 = vmul.f32 %v1347_v37, %v1720_v0  ;;  %v1351_v42 = vunpack.c.h.bf16 %v1834_v11 }
  0x56   : > { %1649 = vst [vmem:[%s1765_s25 + $0xd8] sm:$0xff] %v1522_v38   ;;  %v571_v61 = vmax.f32 %v491_v39, 0.0  ;;  %v493_v10 = vadd.f32 %v1729_v9, %v406_v8  ;;  %v408_v3 = vmul.f32 %v1350_v40, %v1720_v0  ;;  %v1354_v43 = vunpack.c.l.bf16 %v1837_v12 }
  0x57   : > { %v1527_v44 = vpack.c.bf16 %v570_v56, %v569_v2  ;;  %v572_v45 = vmax.f32 %v492_v52, 0.0  ;;  %v494_v47 = vadd.f32 %v1729_v9, %v407_v41  ;;  %v409_v48 = vmul.f32 %v1351_v42, %v1720_v0 }
  0x58   : > { %v573_v57 = vmax.f32 %v493_v10, 0.0  ;;  %v495_v49 = vadd.f32 %v1729_v9, %v408_v3  ;;  %v1355_v11 = vunpack.c.h.bf16 %v1837_v12  ;;  %v410_v50 = vmul.f32 %v1354_v43, %v1720_v0 }
  0x59   : > { %1650 = vst [vmem:[%s1765_s25 + $0xe0] sm:$0xff] %v1527_v44   ;;  %v1532_v4 = vpack.c.bf16 %v572_v45, %v571_v61  ;;  %v574_v53 = vmax.f32 %v494_v47, 0.0  ;;  %v496_v14 = vadd.f32 %v1729_v9, %v409_v48  ;;  %v1358_v62 = vunpack.c.l.bf16 %v1840_v13 }
  0x5a   : > { %v575_v15 = vmax.f32 %v495_v49, 0.0  ;;  %v411_v16 = vmul.f32 %v1355_v11, %v1720_v0  ;;  %v497_v17 = vadd.f32 %v1729_v9, %v410_v50  ;;  %v1359_v5 = vunpack.c.h.bf16 %v1840_v13 }
  0x5b   : > { %1651 = vst [vmem:[%s1765_s25 + $0xe8] sm:$0xff] %v1532_v4   ;;  %v1537_v21 = vpack.c.bf16 %v574_v53, %v573_v57  ;;  %v576_v12 = vmax.f32 %v496_v14, 0.0  ;;  %v412_v22 = vmul.f32 %v1358_v62, %v1720_v0  ;;  %v1362_v23 = vunpack.c.l.bf16 %v1845_v18 }
  0x5c   : > { %v498_v58 = vadd.f32 %v1729_v9, %v411_v16  ;;  %v577_v24 = vmax.f32 %v497_v17, 0.0  ;;  %v413_v63 = vmul.f32 %v1359_v5, %v1720_v0  ;;  %v1363_v46 = vunpack.c.h.bf16 %v1845_v18 }
  0x5d   : > { %1652 = vst [vmem:[%s1765_s25 + $0xf0] sm:$0xff] %v1537_v21   ;;  %v1542_v54 = vpack.c.bf16 %v576_v12, %v575_v15  ;;  %v499_v6 = vadd.f32 %v1729_v9, %v412_v22  ;;  %v414_v13 = vmul.f32 %v1362_v23, %v1720_v0  ;;  %v1366_v28 = vunpack.c.l.bf16 %v1848_v19 }
  0x5e   : > { %v578_v29 = vmax.f32 %v498_v58, 0.0  ;;  %v500_v30 = vadd.f32 %v1729_v9, %v413_v63  ;;  %v415_v31 = vmul.f32 %v1363_v46, %v1720_v0  ;;  %v1367_v1 = vunpack.c.h.bf16 %v1848_v19 }
  0x5f   : > { %1653 = vst [vmem:[%s1765_s25 + $0xf8] sm:$0xff] %v1542_v54   ;;  %v579_v32 = vmax.f32 %v499_v6, 0.0  ;;  %v501_v18 = vadd.f32 %v1729_v9, %v414_v13  ;;  %v416_v59 = vmul.f32 %v1366_v28, %v1720_v0  ;;  %v1370_v33 = vunpack.c.l.bf16 %v1851_v20 }
  0x60   : > { %v1547_v34 = vpack.c.bf16 %v578_v29, %v577_v24  ;;  %v580_v51 = vmax.f32 %v500_v30, 0.0  ;;  %v502_v7 = vadd.f32 %v1729_v9, %v415_v31  ;;  %v417_v55 = vmul.f32 %v1367_v1, %v1720_v0 }
  0x61   : > { %v581_v35 = vmax.f32 %v501_v18, 0.0  ;;  %v503_v36 = vadd.f32 %v1729_v9, %v416_v59  ;;  %v1371_v19 = vunpack.c.h.bf16 %v1851_v20  ;;  %v418_v2 = vmul.f32 %v1370_v33, %v1720_v0 }
  0x62   : > { %1654 = vst [vmem:[%s1765_s25 + $0x100] sm:$0xff] %v1547_v34   ;;  %v1552_v60 = vpack.c.bf16 %v580_v51, %v579_v32  ;;  %v582_v37 = vmax.f32 %v502_v7, 0.0  ;;  %v504_v38 = vadd.f32 %v1729_v9, %v417_v55  ;;  %v1374_v39 = vunpack.c.l.bf16 %v1858_v25 }
  0x63   : > { %v583_v8 = vmax.f32 %v503_v36, 0.0  ;;  %v419_v40 = vmul.f32 %v1371_v19, %v1720_v0  ;;  %v505_v56 = vadd.f32 %v1729_v9, %v418_v2  ;;  %v1375_v52 = vunpack.c.h.bf16 %v1858_v25 }
  0x64   : > { %1655 = vst [vmem:[%s1765_s25 + $0x108] sm:$0xff] %v1552_v60   ;;  %v1557_v41 = vpack.c.bf16 %v582_v37, %v581_v35  ;;  %v584_v20 = vmax.f32 %v504_v38, 0.0  ;;  %v420_v42 = vmul.f32 %v1374_v39, %v1720_v0  ;;  %v1378_v61 = vunpack.c.l.bf16 %v1861_v26 }
  0x65   : > { %v506_v10 = vadd.f32 %v1729_v9, %v419_v40  ;;  %v585_v3 = vmax.f32 %v505_v56, 0.0  ;;  %v421_v43 = vmul.f32 %v1375_v52, %v1720_v0  ;;  %v1379_v44 = vunpack.c.h.bf16 %v1861_v26 }
  0x66   : > { %1656 = vst [vmem:[%s1765_s25 + $0x110] sm:$0xff] %v1557_v41   ;;  %v1562_v45 = vpack.c.bf16 %v584_v20, %v583_v8  ;;  %v507_v47 = vadd.f32 %v1729_v9, %v420_v42  ;;  %v422_v25 = vmul.f32 %v1378_v61, %v1720_v0  ;;  %v1382_v48 = vunpack.c.l.bf16 %v1864_v27 }
  0x67   : > { %v586_v57 = vmax.f32 %v506_v10, 0.0  ;;  %v508_v49 = vadd.f32 %v1729_v9, %v421_v43  ;;  %v423_v11 = vmul.f32 %v1379_v44, %v1720_v0  ;;  %v1383_v50 = vunpack.c.h.bf16 %v1864_v27 }
  0x68   : > { %1657 = vst [vmem:[%s1765_s25 + $0x118] sm:$0xff] %v1562_v45   ;;  %v587_v4 = vmax.f32 %v507_v47, 0.0  ;;  %v509_v26 = vadd.f32 %v1729_v9, %v422_v25  ;;  %v424_v53 = vmul.f32 %v1382_v48, %v1720_v0 }
  0x69   : > { %v1567_v14 = vpack.c.bf16 %v586_v57, %v585_v3  ;;  %v588_v62 = vmax.f32 %v508_v49, 0.0  ;;  %v510_v15 = vadd.f32 %v1729_v9, %v423_v11  ;;  %v425_v16 = vmul.f32 %v1383_v50, %v1720_v0 }
  0x6a   : > { %v589_v17 = vmax.f32 %v509_v26, 0.0  ;;  %v511_v5 = vadd.f32 %v1729_v9, %v424_v53 }
  0x6b   : > { %1658 = vst [vmem:[%s1765_s25 + $0x120] sm:$0xff] %v1567_v14   ;;  %v1572_v27 = vpack.c.bf16 %v588_v62, %v587_v4  ;;  %v590_v21 = vmax.f32 %v510_v15, 0.0  ;;  %v512_v12 = vadd.f32 %v1729_v9, %v425_v16 }
  0x6c   : > { %v591_v22 = vmax.f32 %v511_v5, 0.0 }
  0x6d   : > { %1659 = vst [vmem:[%s1765_s25 + $0x128] sm:$0xff] %v1572_v27   ;;  %v1577_v23 = vpack.c.bf16 %v590_v21, %v589_v17  ;;  %v592_v58 = vmax.f32 %v512_v12, 0.0 }
  0x6f   : > { %1660 = vst [vmem:[%s1765_s25 + $0x130] sm:$0xff] %v1577_v23   ;;  %v1582_v24 = vpack.c.bf16 %v592_v58, %v591_v22 }
  0x71   : > { %1661 = vst [vmem:[%s1765_s25 + $0x138] sm:$0xff] %v1582_v24  }
  0x72 PF: > { %s13_s12 = sadd.s32 1, %s1677_s12  }
  0x73   : > { %p10_p4 = scmp.ge.s32.totalorder %s13_s12, 4  }
  0x75   :  { %12 = sbr.rel (!%p10_p4) target bundleno = 1 (0x1), region = 62 }

// kernel: conv_block_forward.2
= control target key start
LH: loop header
LB: loop body
LE: loop exit
PB: predicated region body
PF: predicated region fallthrough
CT: control target
= control target key end

     0   :  { %s6770_s21 = smov 0   ;;  %s6772_s22 = smov 0   ;;  %s8363_s0 = inlined_call_operand.vmem [shape: bf16[2,10,120,4], index: 0, kind: input, shape index: {}, may-alias: {0,1,2}]   ;;  %s8364_s1 = inlined_call_operand.vmem [shape: bf16[2,10,120,4], index: 1, kind: input, shape index: {}, may-alias: {0,1,2}]   ;;  %s8365_s2 = inlined_call_operand.vmem [shape: bf16[2,10,120,4], index: 2, kind: input, shape index: {}, may-alias: {0,1,2}]   ;;  %s8366_s3 = inlined_call_operand.vmem [shape: bf16[27,4,128], index: 3, kind: input, shape index: {}]   ;;  %s8367_s4 = inlined_call_operand.vmem [shape: bf16[2,8,80,128], index: 4, kind: output, shape index: {0}]   ;;  %s8368_s5 = inlined_call_operand.vmem [shape: f32[2,8,1,128], index: 5, kind: output, shape index: {1}]   ;;  %s8369_s6 = inlined_call_operand.vmem [shape: f32[2,8,1,128], index: 6, kind: output, shape index: {2}]  }
   0x1   :  { %s6774_s23 = smov 0   ;;  %s6776_s24 = smov 0  }
   0x2   :  { %s6778_s25 = smov 0  }
   0x3 LB: > { %s26_s26 = sadd.s32 1, %s6723_s23  ;;  %s29_s27 = sadd.s32 1, %s6727_s24  ;;  %s6731_s25 = sphi %s6778_s25, %s17_s25   ;;  %s6727_s24 = sphi %s6776_s24, %s8381_s24   ;;  %s6723_s23 = sphi %s6774_s23, %s8380_s23   ;;  %s6719_s22 = sphi %s6772_s22, %s8379_s22   ;;  %s6715_s21 = sphi %s6770_s21, %s8378_s21  }
   0x4   : > { %p27_p0 = scmp.ge.s32.totalorder %s26_s26, 8  ;;  %p4992_p1 = scmp.ge.s32.totalorder %s6731_s25, 1 }
   0x5   : > { %p281_p2 = scmp.lt.s32.totalorder %s6731_s25, 17 }
   0x6   : > { %s8383_s26 = smov (%p27_p0, %s26_s26), 0  ;;  %s8385_s27 = smov (!%p27_p0, %s29_s27), %s6727_s24 }
   0x7   : > { %p282_p3 = pnand %p4992_p1, %p281_p2  ;;  %p31_p4 = scmp.ge.s32.totalorder %s8385_s27, 2 }
   0x8   : > { %v4999_v0 = vld [vmem:[%s8366_s3 + $0x2] sm:$0x3] (!%p282_p3)  ;;  %vm479_vm0 = vcmask (!%p282_p3), 1041408   ;;  %v5114_v1 = vld [vmem:[%s8366_s3 + $0x1a] sm:$0x3] (!%p282_p3)  ;;  %v6733_v2 = vmov (!%p282_p3), 0.0  }
   0x9   : > { %s8387_s27 = smov (%p31_p4, %s8385_s27), 0  ;;  %285 = sbr.rel (%p282_p3) target bundleno = 802 (0x322), region = 36 }
   0xa   : > { %5445 = vmatprep.subr.bf16.mxu1 (!%p282_p3), %v6733_v2  ;;  %5731 = vmatprep.subr.bf16.mxu0 (!%p282_p3), %v6733_v2  ;;  %v481_v3 = vsel (!%p282_p3), %vm479_vm0, %v4999_v0, 0  ;;  %v6814_v4 = vsel (!%p282_p3), %vm479_vm0, %v5114_v1, 0  ;;  %p353_p5 = scmp.lt.s32.totalorder (!%p282_p3), %s6719_s22, 1  ;;  %p355_p6 = scmp.lt.s32.totalorder (!%p282_p3), %s6715_s21, 9  ;;  %vm6734_vm1 = vmmov (!%p282_p3), 0   ;;  %vm451_vm2 = vcmask (!%p282_p3), 1046528  }
   0xb   : > { %5446 = vmatpush3.bf16.msra.mxu1 (!%p282_p3), %v481_v3  ;;  %5732 = vmatpush3.bf16.msra.mxu0 (!%p282_p3), %v6814_v4  ;;  %s362_s8 = sadd.s32 (!%p282_p3), 1, %s6715_s21  ;;  %v419_v9 = vld [vmem:[%s8366_s3] sm:$0x3] (!%p282_p3)  ;;  %vm463_vm3 = vcmask (!%p282_p3), 31744   ;;  %v5121_v15 = vld [vmem:[%s8366_s3 + $0x1c] sm:$0x3] (!%p282_p3) }
   0xc   : > { %5447 = vmatprep.mubr.msk.bf16.mxu1 (!%p282_p3), %vm6734_vm1, %v6733_v2  ;;  %5733 = vmatprep.mubr.msk.bf16.mxu0 (!%p282_p3), %vm6734_vm1, %v6733_v2  ;;  %p365_p7 = scmp.lt.s32.totalorder (!%p282_p3), %s362_s8, 9  ;;  %v620_v18 = vsel (!%p282_p3), %vm479_vm0, %v419_v9, 0  ;;  %vm1037_vm4 = vcmask (!%p282_p3), 1045504   ;;  %v2558_v24 = vsel (!%p282_p3), %vm479_vm0, %v5121_v15, 0  ;;  %vm1156_vm5 = vsmask.f32 (!%p282_p3), 5376 }
   0xd   : > { %5753 = vmatprep.subr.bf16.mxu0 (!%p282_p3), %v6733_v2  ;;  %5467 = vmatprep.subr.bf16.mxu1 (!%p282_p3), %v6733_v2  ;;  %v5128_v53 = vld [vmem:[%s8366_s3 + $0x1e] sm:$0x3] (!%p282_p3)  ;;  %vm559_vm6 = vsmask.f32 (!%p282_p3), 7424  ;;  %v5017_v15 = vld [vmem:[%s8366_s3 + $0x4] sm:$0x3] (!%p282_p3) }
   0xe   : > { %v2753_v59 = vsel (!%p282_p3), %vm479_vm0, %v5128_v53, 0  ;;  %s373_s15 = sadd.s32 (!%p282_p3), 2, %s6715_s21  ;;  %vm1611_vm7 = vsmask.f32 (!%p282_p3), 4352  ;;  %vm701_vm8 = vsmask.f32 (!%p282_p3), 6400 }
   0xf   : > { %p376_p8 = scmp.lt.s32.totalorder (!%p282_p3), %s373_s15, 9  ;;  %vm1492_vm9 = vcmask (!%p282_p3), 1044480   ;;  %p386_p9 = scmp.lt.s32.totalorder (!%p282_p3), %s6715_s21, 7 }
  0x10   : > { %s8389_s22 = smov (!%p353_p5, %s6719_s22), 1  ;;  %s8391_s8 = smov (!%p365_p7, %s362_s8), 9 }
  0x11   : > { %s356_s9 = scalar_select %p355_p6, %s6715_s21, 9 }
  0x12   : > { %s6831_s10 = smul.u32 150, %s8389_s22  ;;  %s8393_s15 = smov (!%p376_p8, %s373_s15), 9 }
  0x13   : > { %s6551_s11 = smul.u32 15, %s356_s9  ;;  %s8395_s21 = smov (!%p386_p9, %s6715_s21), 7 }
  0x14   : > { %s6553_s14 = smul.u32 15, %s8391_s8  ;;  %s4997_s9 = sshll.u32 %s8389_s22, 3 }
  0x15   : > { %s359_s12 = sadd.s32 %s6831_s10, %s6551_s11  ;;  %s6554_s16 = smul.u32 15, %s8393_s15 }
  0x16   : > { %s4993_s13 = sshll.u32 %s359_s12, 2  ;;  %s369_s18 = sadd.s32 %s6553_s14, %s6831_s10 }
  0x17   : > { %s6837_s17 = scalar_lea.vmem %s8363_s0, %s4993_s13  ;;  %s4994_s19 = sshll.u32 %s369_s18, 2 }
  0x18   : > { %v409_v5 = vld [vmem:[%s6837_s17 + $0x8] sm:$0xf]  ;;  %v420_v6 = vld [vmem:[%s6837_s17 + $0x4] sm:$0xe]  ;;  %v6843_v7 = vld [vmem:[%s6837_s17 + $0xc] sm:$0xff]   ;;  %s6850_s29 = scalar_lea.vmem %s8364_s1, %s4994_s19  ;;  %s380_s18 = sadd.s32 %s6554_s16, %s6831_s10 }
  0x19   : > { %v6845_v8 = vcombine.low %v420_v6, %v409_v5  ;;  %v453_v10 = vrot.slane %v6843_v7, 1  ;;  %v2191_v11 = vld [vmem:[%s6850_s29 + $0xc] sm:$0xf]  ;;  %v6858_v12 = vld [vmem:[%s6850_s29 + $0x10] sm:$0xff]   ;;  %v2385_v16 = vld [vmem:[%s6850_s29 + $0x8] sm:$0xc]  ;;  %s398_s11 = sadd.s32 %s4997_s9, %s8395_s21 }
  0x1a   : > { %v6861_v13 = vld [vmem:[%s6837_s17 + $0x14] sm:$0xff]   ;;  %v2392_v17 = vrot.slane %v6858_v12, 2  ;;  %v5115_v20 = vcombine.low %v2385_v16, %v2191_v11  ;;  %v6887_v28 = vld [vmem:[%s6837_s17 + $0x1c] sm:$0xff]   ;;  %v6899_v32 = vld [vmem:[%s6837_s17 + $0x24] sm:$0xff]   ;;  %v2240_v33 = vshrl.u32 %v6858_v12, 16  ;;  %v2243_v35 = vshll.u32 %v6858_v12, 16  ;;  %s399_s14 = scalar_lea.vmem %s8368_s5, %s398_s11 }
  0x1b   : > { %v452_v14 = vrot.slane %v6845_v8, 1  ;;  %v455_v21 = vrot.slane %v6861_v13, 1  ;;  %v6876_v23 = vld [vmem:[%s6850_s29 + $0x18] sm:$0xff]   ;;  %v6892_v29 = vld [vmem:[%s6850_s29 + $0x20] sm:$0xff]   ;;  %v457_v31 = vrot.slane %v6887_v28, 1  ;;  %v459_v40 = vrot.slane %v6899_v32, 1 }
  0x1c   : > { %v2391_v22 = vrot.slane %v5115_v20, 2  ;;  %v2394_v27 = vrot.slane %v6876_v23, 2  ;;  %v2396_v34 = vrot.slane %v6892_v29, 2  ;;  %v2510_v37 = vshrl.u32 %v5115_v20, 16  ;;  %v408_v39 = vld [vmem:[%s6837_s17 + $0x4] sm:$0xf] }
  0x1d   : > { %v454_v19 = vsel %vm451_vm2, %v452_v14, %v453_v10  ;;  %v456_v26 = vsel %vm451_vm2, %v453_v10, %v455_v21  ;;  %v458_v36 = vsel %vm451_vm2, %v455_v21, %v457_v31  ;;  %v2513_v38 = vshll.u32 %v5115_v20, 16  ;;  %v6923_v48 = vld [vmem:[%s6837_s17 + $0x2c] ss:$0 sps:$4 sm:$0x11]   ;;  %s4995_s19 = sshll.u32 %s380_s18, 2  ;;  %s406_s18 = scalar_lea.vmem %s8369_s6, %s398_s11 }
  0x1e   : > { %5448 = vmatmul.mubr.msk.bf16.vlgmr.msra.gmra.mrb[0].mxu1 %vm463_vm3, %v454_v19  ;;  %v2393_v25 = vsel %vm1037_vm4, %v2391_v22, %v2392_v17  ;;  %v2395_v30 = vsel %vm1037_vm4, %v2392_v17, %v2394_v27  ;;  %v2517_v41 = vrot.slane %v2240_v33, 2  ;;  %v2397_v42 = vsel %vm1037_vm4, %v2394_v27, %v2396_v34  ;;  %v6954_v6 = vld [vmem:[%s6850_s29 + $0x28] sm:$0xff]   ;;  %v6982_v27 = vld [vmem:[%s6850_s29 + $0x14] sm:$0xff]   ;;  %s7036_s28 = scalar_lea.vmem %s8365_s2, %s4995_s19 }
  0x1f   : > { %5451 = vmatprep.mubr.msk.bf16.mxu1 %vm6734_vm1, %v6733_v2  ;;  %5468 = vmatpush3.bf16.msra.mxu1 %v620_v18  ;;  %v2512_v43 = vrot.slane %v2510_v37, 2  ;;  %v2515_v44 = vrot.slane %v2513_v38, 3  ;;  %v2518_v45 = vrot.slane %v2243_v35, 3  ;;  %v5011_v46 = vcombine.low %v408_v39, %v409_v5  ;;  %v2643_v37 = vld [vmem:[%s6850_s29 + $0xc] sm:$0xc]  ;;  %v6997_v39 = vld [vmem:[%s6850_s29 + $0x1c] sm:$0xff]  }
  0x20   : > { %5489 = vmatprep.subr.bf16.mxu1 %v6733_v2  ;;  %5734 = vmatmul.mubr.msk.bf16.vlgmr.msra.gmra.mrb[0].mxu0 %vm463_vm3, %v2393_v25  ;;  %v460_v47 = vsel %vm451_vm2, %v457_v31, %v459_v40  ;;  %v2249_v51 = vshrl.u32 %v6876_v23, 16  ;;  %v2252_v52 = vshll.u32 %v6876_v23, 16  ;;  %v461_v54 = vrot.slane %v6923_v48, 1  ;;  %v6994_v38 = vld [vmem:[%s6850_s29 + $0x10] sm:$0xf] }
  0x21   : > { %5754 = vmatpush3.bf16.msra.mxu0 %v2558_v24  ;;  %5737 = vmatprep.mubr.msk.bf16.mxu0 %vm6734_vm1, %v6733_v2  ;;  %v2516_v49 = vor.u32 %v2515_v44, %v2512_v43  ;;  %v2519_v50 = vor.u32 %v2518_v45, %v2517_v41  ;;  %v563_v58 = vshll.u32 %v5011_v46, 16  ;;  %v561_v61 = vshrl.u32 %v5011_v46, 16  ;;  %v6632_v24 = vld [vmem:[%s6850_s29 + $0x30] ss:$0 sps:$4 sm:$0x77]  }
  0x22   : > { %5775 = vmatprep.subr.bf16.mxu0 %v6733_v2  ;;  %v2521_v56 = vrot.slane %v2249_v51, 2  ;;  %v2522_v57 = vrot.slane %v2252_v52, 3  ;;  %v462_v60 = vsel %vm451_vm2, %v459_v40, %v461_v54  ;;  %v568_v62 = vshll.u32 %v6843_v7, 16  ;;  %v7013_v53 = vld [vmem:[%s6850_s29 + $0x2c] sm:$0xff]  }
  0x23   : > { %v2520_v55 = vsel %vm1156_vm5, %v2516_v49, %v2519_v50  ;;  %v565_v0 = vrot.slane %v563_v58, 1  ;;  %v2258_v1 = vshrl.u32 %v6892_v29, 16  ;;  %v2261_v3 = vshll.u32 %v6892_v29, 16  ;;  %v7009_v49 = vld [vmem:[%s6850_s29 + $0x24] sm:$0xff]  }
  0x24   : > { %v2523_v63 = vor.u32 %v2522_v57, %v2521_v56  ;;  %v570_v5 = vrot.slane %v568_v62, 1  ;;  %v2267_v16 = vshrl.u32 %v6954_v6, 16  ;;  %v2270_v17 = vshll.u32 %v6954_v6, 16 }
  0x25   : > { %v566_v10 = vor.u32 %v565_v0, %v561_v61  ;;  %v2525_v11 = vrot.slane %v2258_v1, 2  ;;  %v2526_v14 = vrot.slane %v2261_v3, 3  ;;  %v572_v20 = vshrl.u32 %v6843_v7, 16 }
  0x26   : > { %5452 = vmatmul.mubr.msk.bf16.gmra.mrb[4].mxu1 %vm463_vm3, %v456_v26  ;;  %v2524_v9 = vsel %vm1156_vm5, %v2519_v50, %v2523_v63  ;;  %v576_v21 = vshll.u32 %v6861_v13, 16  ;;  %v751_v22 = vsel %vm479_vm0, %v5017_v15, 0  ;;  %v2529_v25 = vrot.slane %v2267_v16, 2 }
  0x27   : > { %5455 = vmatprep.mubr.msk.bf16.mxu1 %vm6734_vm1, %v6733_v2  ;;  %v571_v18 = vsel %vm559_vm6, %v566_v10, %v570_v5  ;;  %v2527_v19 = vor.u32 %v2526_v14, %v2525_v11  ;;  %v2530_v26 = vrot.slane %v2270_v17, 3  ;;  %v574_v31 = vor.u32 %v572_v20, %v570_v5 }
  0x28   : > { %5738 = vmatmul.mubr.msk.bf16.gmra.mrb[4].mxu0 %vm463_vm3, %v2395_v30  ;;  %v580_v40 = vshrl.u32 %v6861_v13, 16  ;;  %v584_v41 = vshll.u32 %v6887_v28, 16  ;;  %v2537_v44 = vshll.u32 %v6632_v24, 16  ;;  %v2693_v45 = vshrl.u32 %v6982_v27, 16 }
  0x29   : > { %5741 = vmatprep.mubr.msk.bf16.mxu0 %vm6734_vm1, %v6733_v2  ;;  %v2528_v30 = vsel %vm1156_vm5, %v2523_v63, %v2527_v19  ;;  %v2531_v43 = vor.u32 %v2530_v26, %v2529_v25  ;;  %v2696_v46 = vshll.u32 %v6982_v27, 16  ;;  %v5129_v50 = vcombine.low %v2643_v37, %v6994_v38 }
  0x2a   : > { %v2970_v54 = vrot.slane %v2693_v45, 3  ;;  %v586_v57 = vrot.slane %v584_v41, 1  ;;  %v2702_v58 = vshrl.u32 %v6997_v39, 16  ;;  %v2539_v63 = vrot.slane %v2537_v44, 3 }
  0x2b   : > { %v2711_v5 = vshrl.u32 %v7009_v49, 16  ;;  %v588_v14 = vshrl.u32 %v6887_v28, 16  ;;  %v592_v15 = vshll.u32 %v6899_v32, 16  ;;  %v2251_v12 = vrot.slane %v2249_v51, 1 }
  0x2c   : > { %v2974_v10 = vrot.slane %v2702_v58, 3  ;;  %v2260_v51 = vrot.slane %v2258_v1, 1  ;;  %v2272_v1 = vrot.slane %v2270_v17, 2 }
  0x2d   : > { %v2978_v25 = vrot.slane %v2711_v5, 3 }
  0x2e   : > { %5456 = vmatmul.mubr.msk.bf16.gmra.mrb[8].mxu1 %vm463_vm3, %v458_v36  ;;  %v578_v36 = vrot.slane %v576_v21, 1 }
  0x2f   : > { %5459 = vmatprep.mubr.msk.bf16.mxu1 %vm6734_vm1, %v6733_v2 }
  0x30   : > { %5742 = vmatmul.mubr.msk.bf16.gmra.mrb[8].mxu0 %vm463_vm3, %v2397_v42  ;;  %v2534_v42 = vshrl.u32 %v6632_v24, 16  ;;  %v582_v56 = vor.u32 %v580_v40, %v578_v36 }
  0x31   : > { %5755 = vmatprep.mubr.msk.bf16.mxu0 %vm6734_vm1, %v6733_v2 }
  0x32   : > { %v2536_v61 = vrot.slane %v2534_v42, 2 }
  0x36   : > { %5460 = vmatmul.mubr.msk.bf16.gmra.mrb[12].mxu1 %vm463_vm3, %v460_v47  ;;  %v579_v47 = vsel %vm559_vm6, %v574_v31, %v578_v36  ;;  %v2540_v31 = vor.u32 %v2539_v63, %v2536_v61  ;;  %v2688_v36 = vshll.u32 %v5129_v50, 16 }
  0x37   : > { %5463 = vmatprep.mubr.msk.bf16.mxu1 %vm6734_vm1, %v6733_v2 }
  0x38   : > { %5756 = vmatmul.mubr.msk.bf16.vlgmr.msra.gmra.mrb[0].mxu0 %vm463_vm3, %v2520_v55  ;;  %v2971_v55 = vrot.slane %v2696_v46, 4  ;;  %v2541_v63 = vsel %vm1156_vm5, %v2531_v43, %v2540_v31  ;;  %v703_v31 = vshrl.u32 %v6845_v8, 16 }
  0x39   : > { %5776 = vmatpush3.bf16.msra.mxu0 %v2753_v59  ;;  %5759 = vmatprep.mubr.msk.bf16.mxu0 %vm6734_vm1, %v6733_v2  ;;  %v2705_v59 = vshll.u32 %v6997_v39, 16 }
  0x3a   : > { %5797 = vmatprep.subr.bf16.mxu0 %v6733_v2  ;;  %v7024_v0 = vor.u32 %v2971_v55, %v2970_v54  ;;  %v594_v54 = vrot.slane %v592_v15, 1  ;;  %v2695_v55 = vrot.slane %v2693_v45, 2 }
  0x3b   : > { %v2975_v11 = vrot.slane %v2705_v59, 4 }
  0x3d   : > { %v2976_v24 = vor.u32 %v2975_v11, %v2974_v10  ;;  %v590_v10 = vor.u32 %v588_v14, %v586_v57  ;;  %v2690_v11 = vrot.slane %v2688_v36, 3 }
  0x3e   : > { %5464 = vmatmul.mubr.msk.bf16.gmra.mrb[16].mxu1 %vm463_vm3, %v462_v60  ;;  %v2532_v60 = vsel %vm1156_vm5, %v2527_v19, %v2531_v43  ;;  %v2720_v19 = vshrl.u32 %v7013_v53, 16 }
  0x3f   : > { %5469 = vmatprep.mubr.msk.bf16.mxu1 %vm6734_vm1, %v6733_v2  ;;  %v7049_v37 = vsel %vm1611_vm7, %v7024_v0, %v2976_v24 }
  0x40   : > { %5760 = vmatmul.mubr.msk.bf16.gmra.mrb[4].mxu0 %vm463_vm3, %v2524_v9  ;;  %v2714_v9 = vshll.u32 %v7009_v49, 16  ;;  %v2982_v44 = vrot.slane %v2720_v19, 3  ;;  %v2722_v13 = vrot.slane %v2720_v19, 2  ;;  %v719_v19 = vrot.slane %v584_v41, 2 }
  0x41   : > { %5763 = vmatprep.mubr.msk.bf16.mxu0 %vm6734_vm1, %v6733_v2 }
  0x42   : > { %v2979_v26 = vrot.slane %v2714_v9, 4 }
  0x44   : > { %v2980_v42 = vor.u32 %v2979_v26, %v2978_v25  ;;  %v7082_v26 = vld [vmem:[%s6837_s17 + $0x10] sm:$0xff]  }
  0x46   : > { %5470 = vmatmul.mubr.msk.bf16.vlgmr.msra.gmra.mrb[0].mxu1 %vm463_vm3, %v571_v18  ;;  %v2685_v18 = vshrl.u32 %v5129_v50, 16  ;;  %v2698_v50 = vrot.slane %v2696_v46, 3  ;;  %v595_v46 = vsel %vm559_vm6, %v590_v10, %v594_v54  ;;  %v705_v10 = vrot.slane %v703_v31, 1 }
  0x47   : > { %5473 = vmatprep.mubr.msk.bf16.mxu1 %vm6734_vm1, %v6733_v2  ;;  %5490 = vmatpush3.bf16.msra.mxu1 %v751_v22  ;;  %v2723_v22 = vshll.u32 %v7013_v53, 16 }
  0x48   : > { %5511 = vmatprep.subr.bf16.mxu1 %v6733_v2  ;;  %5764 = vmatmul.mubr.msk.bf16.gmra.mrb[8].mxu0 %vm463_vm3, %v2528_v30  ;;  %v587_v30 = vsel %vm559_vm6, %v582_v56, %v586_v57  ;;  %v7058_v56 = vsel %vm1611_vm7, %v2976_v24, %v2980_v42  ;;  %v2687_v45 = vrot.slane %v2685_v18, 2  ;;  %v2699_v25 = vor.u32 %v2698_v50, %v2695_v55  ;;  %v5140_v57 = vld [vmem:[%s8366_s3 + $0x20] sm:$0x3] }
  0x49   : > { %5767 = vmatprep.mubr.msk.bf16.mxu0 %vm6734_vm1, %v6733_v2  ;;  %v2871_v55 = vsel %vm479_vm0, %v5140_v57, 0  ;;  %v889_v50 = vshll.u32 %v7082_v26, 16  ;;  %v2713_v57 = vrot.slane %v2711_v5, 2 }
  0x4a   : > { %v2691_v43 = vor.u32 %v2690_v11, %v2687_v45  ;;  %v7109_v11 = vld [vmem:[%s6837_s17 + $0x18] sm:$0xff]  }
  0x4b   : > { %v898_v31 = vshll.u32 %v7109_v11, 16 }
  0x4d   : > { %v1170_v5 = vrot.slane %v898_v31, 3 }
  0x4e   : > { %5474 = vmatmul.mubr.msk.bf16.gmra.mrb[4].mxu1 %vm463_vm3, %v579_v47  ;;  %v2983_v47 = vrot.slane %v2723_v22, 4 }
  0x4f   : > { %5477 = vmatprep.mubr.msk.bf16.mxu1 %vm6734_vm1, %v6733_v2 }
  0x50   : > { %5768 = vmatmul.mubr.msk.bf16.gmra.mrb[12].mxu0 %vm463_vm3, %v2532_v60  ;;  %v600_v60 = vshll.u32 %v6923_v48, 16  ;;  %v7062_v61 = vor.u32 %v2983_v47, %v2982_v44  ;;  %v596_v48 = vshrl.u32 %v6899_v32, 16  ;;  %v2707_v44 = vrot.slane %v2705_v59, 3 }
  0x51   : > { %5771 = vmatprep.mubr.msk.bf16.mxu0 %vm6734_vm1, %v6733_v2  ;;  %v706_v47 = vshll.u32 %v6845_v8, 16 }
  0x52   : > { %v7071_v24 = vsel %vm1611_vm7, %v2980_v42, %v7062_v61  ;;  %v602_v18 = vrot.slane %v600_v60, 1  ;;  %v598_v36 = vor.u32 %v596_v48, %v594_v54  ;;  %v2700_v42 = vsel %vm1156_vm5, %v2691_v43, %v2699_v25 }
  0x53   : > { %v710_v60 = vrot.slane %v572_v20, 1  ;;  %v708_v45 = vrot.slane %v706_v47, 2  ;;  %v1166_v20 = vrot.slane %v889_v50, 3  ;;  %v715_v47 = vrot.slane %v576_v21, 2 }
  0x54   : > { %v603_v54 = vsel %vm559_vm6, %v598_v36, %v602_v18  ;;  %v2716_v18 = vrot.slane %v2714_v9, 3  ;;  %v2725_v21 = vrot.slane %v2723_v22, 3 }
  0x55   : > { %v709_v43 = vor.u32 %v708_v45, %v705_v10  ;;  %v7155_v10 = vld [vmem:[%s6850_s29 + $0x34] ss:$0 sps:$4 sm:$0x77]  }
  0x56   : > { %5478 = vmatmul.mubr.msk.bf16.gmra.mrb[8].mxu1 %vm463_vm3, %v587_v30  ;;  %v2704_v30 = vrot.slane %v2702_v58, 2  ;;  %v886_v58 = vshrl.u32 %v7082_v26, 16  ;;  %v2717_v9 = vor.u32 %v2716_v18, %v2713_v57  ;;  %v2726_v57 = vor.u32 %v2725_v21, %v2722_v13 }
  0x57   : > { %5481 = vmatprep.mubr.msk.bf16.mxu1 %vm6734_vm1, %v6733_v2  ;;  %v2729_v18 = vshrl.u32 %v7155_v10, 16 }
  0x58   : > { %5772 = vmatmul.mubr.msk.bf16.gmra.mrb[16].mxu0 %vm463_vm3, %v2541_v63  ;;  %v711_v63 = vrot.slane %v568_v62, 2  ;;  %v1165_v8 = vrot.slane %v886_v58, 2  ;;  %v2708_v59 = vor.u32 %v2707_v44, %v2704_v30  ;;  %v895_v30 = vshrl.u32 %v7109_v11, 16 }
  0x59   : > { %5777 = vmatprep.mubr.msk.bf16.mxu0 %vm6734_vm1, %v6733_v2  ;;  %v714_v44 = vrot.slane %v580_v40, 1 }
  0x5a   : > { %v712_v7 = vor.u32 %v711_v63, %v710_v60  ;;  %v2709_v62 = vsel %vm1156_vm5, %v2699_v25, %v2708_v59  ;;  %v5024_v25 = vld [vmem:[%s8366_s3 + $0x6] sm:$0x3]  ;;  %v1169_v36 = vrot.slane %v895_v30, 2 }
  0x5b   : > { %v7140_v60 = vld [vmem:[%s6837_s17 + $0x20] sm:$0xff]   ;;  %v716_v40 = vor.u32 %v715_v47, %v714_v44 }
  0x5c   : > { %v904_v45 = vshrl.u32 %v7140_v60, 16 }
  0x5e   : > { %5482 = vmatmul.mubr.msk.bf16.gmra.mrb[12].mxu1 %vm463_vm3, %v595_v46  ;;  %v7111_v46 = vor.u32 %v1166_v20, %v1165_v8  ;;  %v2718_v8 = vsel %vm1156_vm5, %v2708_v59, %v2717_v9  ;;  %v907_v59 = vshll.u32 %v7140_v60, 16  ;;  %v718_v20 = vrot.slane %v588_v14, 1  ;;  %v7175_v14 = vld [vmem:[%s6837_s17 + $0x28] sm:$0xff]  }
  0x5f   : > { %5485 = vmatprep.mubr.msk.bf16.mxu1 %vm6734_vm1, %v6733_v2  ;;  %v913_v44 = vshrl.u32 %v7175_v14, 16  ;;  %v916_v47 = vshll.u32 %v7175_v14, 16 }
  0x60   : > { %5778 = vmatmul.mubr.msk.bf16.vlgmr.msra.gmra.mrb[0].mxu0 %vm463_vm3, %v2700_v42  ;;  %v713_v42 = vsel %vm701_vm8, %v709_v43, %v712_v7  ;;  %v1174_v22 = vrot.slane %v907_v59, 3  ;;  %v717_v43 = vsel %vm701_vm8, %v712_v7, %v716_v40  ;;  %v720_v7 = vor.u32 %v719_v19, %v718_v20  ;;  %v6640_v20 = vld [vmem:[%s6837_s17 + $0x2c] ss:$0 sps:$4 sm:$0x33]   ;;  %v2838_v19 = vld [vmem:[%s6850_s29 + $0xc] sm:$0x8] }
  0x61   : > { %5798 = vmatpush3.bf16.msra.mxu0 %v2871_v55  ;;  %5781 = vmatprep.mubr.msk.bf16.mxu0 %vm6734_vm1, %v6733_v2  ;;  %v946_v55 = vsel %vm479_vm0, %v5024_v25, 0  ;;  %v2732_v25 = vshll.u32 %v7155_v10, 16 }
  0x62   : > { %5819 = vmatprep.subr.bf16.mxu0 %v6733_v2  ;;  %v721_v13 = vsel %vm701_vm8, %v716_v40, %v720_v7  ;;  %v7211_v40 = vcombine.low %v2838_v19, %v6994_v38 }
  0x66   : > { %5486 = vmatmul.mubr.msk.bf16.gmra.mrb[16].mxu1 %vm463_vm3, %v603_v54  ;;  %v1171_v54 = vor.u32 %v1170_v5, %v1169_v36  ;;  %v2727_v36 = vsel %vm1156_vm5, %v2717_v9, %v2726_v57  ;;  %v2731_v5 = vrot.slane %v2729_v18, 2  ;;  %v1177_v9 = vrot.slane %v913_v44, 2  ;;  %v836_v18 = vld [vmem:[%s6837_s17 + $0x8] sm:$0xe] }
  0x67   : > { %5491 = vmatprep.mubr.msk.bf16.mxu1 %vm6734_vm1, %v6733_v2 }
  0x68   : > { %5782 = vmatmul.mubr.msk.bf16.gmra.mrb[4].mxu0 %vm463_vm3, %v2709_v62  ;;  %v7145_v63 = vsel %vm1156_vm5, %v7111_v46, %v1171_v54  ;;  %v1173_v62 = vrot.slane %v904_v45, 2 }
  0x69   : > { %5785 = vmatprep.mubr.msk.bf16.mxu0 %vm6734_vm1, %v6733_v2 }
  0x6a   : > { %v1175_v28 = vor.u32 %v1174_v22, %v1173_v62  ;;  %v727_v22 = vshrl.u32 %v6640_v20, 16 }
  0x6c   : > { %v7179_v41 = vsel %vm1156_vm5, %v1171_v54, %v1175_v28  ;;  %v723_v54 = vrot.slane %v592_v15, 2 }
  0x6e   : > { %5492 = vmatmul.mubr.msk.bf16.vlgmr.msra.gmra.mrb[0].mxu1 %vm463_vm3, %v713_v42  ;;  %v2734_v42 = vrot.slane %v2732_v25, 3  ;;  %v7215_v25 = vld [vmem:[%s6837_s17 + $0xc] sm:$0xf] }
  0x6f   : > { %5495 = vmatprep.mubr.msk.bf16.mxu1 %vm6734_vm1, %v6733_v2  ;;  %5512 = vmatpush3.bf16.msra.mxu1 %v946_v55  ;;  %v722_v55 = vrot.slane %v596_v48, 1  ;;  %v5025_v38 = vcombine.low %v836_v18, %v7215_v25 }
  0x70   : > { %5533 = vmatprep.subr.bf16.mxu1 %v6733_v2  ;;  %5786 = vmatmul.mubr.msk.bf16.gmra.mrb[8].mxu0 %vm463_vm3, %v2718_v8  ;;  %v1178_v8 = vrot.slane %v916_v47, 3  ;;  %v2735_v21 = vor.u32 %v2734_v42, %v2731_v5  ;;  %v729_v5 = vrot.slane %v727_v22, 1  ;;  %v891_v22 = vrot.slane %v889_v50, 2 }
  0x71   : > { %5789 = vmatprep.mubr.msk.bf16.mxu0 %vm6734_vm1, %v6733_v2  ;;  %v724_v32 = vor.u32 %v723_v54, %v722_v55  ;;  %v5147_v55 = vld [vmem:[%s8366_s3 + $0x22] sm:$0x3]  ;;  %v878_v54 = vshrl.u32 %v5025_v38, 16  ;;  %v2849_v50 = vrot.slane %v7009_v49, 3 }
  0x72   : > { %v7200_v48 = vor.u32 %v1178_v8, %v1177_v9  ;;  %v2736_v62 = vsel %vm1156_vm5, %v2726_v57, %v2735_v21  ;;  %v2844_v57 = vrot.slane %v7211_v40, 3  ;;  %v881_v9 = vshll.u32 %v5025_v38, 16 }
  0x73   : > { %v3011_v8 = vsel %vm479_vm0, %v5147_v55, 0  ;;  %v888_v21 = vrot.slane %v886_v58, 1  ;;  %v880_v19 = vrot.slane %v878_v54, 1  ;;  %v909_v38 = vrot.slane %v907_v59, 2 }
  0x74   : > { %v7205_v15 = vsel %vm1156_vm5, %v1175_v28, %v7200_v48  ;;  %v2845_v28 = vrot.slane %v6982_v27, 3  ;;  %v2963_v54 = vshrl.u32 %v7211_v40, 16 }
  0x76   : > { %5496 = vmatmul.mubr.msk.bf16.gmra.mrb[4].mxu1 %vm463_vm3, %v717_v43  ;;  %v730_v43 = vshll.u32 %v6640_v20, 16 }
  0x77   : > { %5499 = vmatprep.mubr.msk.bf16.mxu1 %vm6734_vm1, %v6733_v2 }
  0x78   : > { %5790 = vmatmul.mubr.msk.bf16.gmra.mrb[12].mxu0 %vm463_vm3, %v2727_v36  ;;  %v725_v36 = vsel %vm701_vm8, %v720_v7, %v724_v32  ;;  %v732_v42 = vrot.slane %v730_v43, 2  ;;  %v2846_v7 = vsel %vm1492_vm9, %v2844_v57, %v2845_v28  ;;  %v892_v43 = vor.u32 %v891_v22, %v888_v21 }
  0x79   : > { %5793 = vmatprep.mubr.msk.bf16.mxu0 %vm6734_vm1, %v6733_v2 }
  0x7a   : > { %v733_v27 = vor.u32 %v732_v42, %v729_v5 }
  0x7c   : > { %v734_v20 = vsel %vm701_vm8, %v724_v32, %v733_v27  ;;  %v5036_v32 = vld [vmem:[%s8366_s3 + $0x8] sm:$0x3]  ;;  %v2853_v27 = vrot.slane %v7155_v10, 3 }
  0x7d   : > { %v1065_v57 = vsel %vm479_vm0, %v5036_v32, 0 }
  0x7e   : > { %5500 = vmatmul.mubr.msk.bf16.gmra.mrb[8].mxu1 %vm463_vm3, %v721_v13  ;;  %v2847_v13 = vrot.slane %v6997_v39, 3 }
  0x7f   : > { %5503 = vmatprep.mubr.msk.bf16.mxu1 %vm6734_vm1, %v6733_v2 }
  0x80   : > { %5794 = vmatmul.mubr.msk.bf16.gmra.mrb[16].mxu0 %vm463_vm3, %v2736_v62  ;;  %v883_v62 = vrot.slane %v881_v9, 2  ;;  %v2848_v39 = vsel %vm1492_vm9, %v2845_v28, %v2847_v13  ;;  %v900_v28 = vrot.slane %v898_v31, 2  ;;  %v2850_v5 = vsel %vm1492_vm9, %v2847_v13, %v2849_v50 }
  0x81   : > { %5799 = vmatprep.mubr.msk.bf16.mxu0 %vm6734_vm1, %v6733_v2  ;;  %v906_v31 = vrot.slane %v904_v45, 1  ;;  %v918_v45 = vrot.slane %v916_v47, 2  ;;  %v2966_v9 = vshll.u32 %v7211_v40, 16 }
  0x82   : > { %v884_v58 = vor.u32 %v883_v62, %v880_v19 }
  0x83   : > { %v2968_v47 = vrot.slane %v2966_v9, 4 }
  0x84   : > { %v893_v18 = vsel %vm701_vm8, %v884_v58, %v892_v43 }
  0x86   : > { %5504 = vmatmul.mubr.msk.bf16.gmra.mrb[12].mxu1 %vm463_vm3, %v725_v36  ;;  %v897_v36 = vrot.slane %v895_v30, 1  ;;  %v2851_v30 = vrot.slane %v7013_v53, 3  ;;  %v915_v53 = vrot.slane %v913_v44, 1  ;;  %v2965_v44 = vrot.slane %v2963_v54, 3 }
  0x87   : > { %5507 = vmatprep.mubr.msk.bf16.mxu1 %vm6734_vm1, %v6733_v2 }
  0x88   : > { %5800 = vmatmul.mubr.msk.bf16.vlgmr.msra.gmra.mrb[0].mxu0 %vm463_vm3, %v2846_v7  ;;  %v901_v42 = vor.u32 %v900_v28, %v897_v36  ;;  %v2852_v55 = vsel %vm1492_vm9, %v2849_v50, %v2851_v30  ;;  %v910_v7 = vor.u32 %v909_v38, %v906_v31  ;;  %v2854_v10 = vsel %vm1492_vm9, %v2851_v30, %v2853_v27  ;;  %v3096_v31 = vld [vmem:[%s7036_s28 + $0x4] sm:$0xf]  ;;  %v7346_v38 = vld [vmem:[%s7036_s28 + $0x8] sm:$0xf] }
  0x89   : > { %5820 = vmatpush3.bf16.msra.mxu0 %v3011_v8  ;;  %5803 = vmatprep.mubr.msk.bf16.mxu0 %vm6734_vm1, %v6733_v2  ;;  %v7289_v8 = vld [vmem:[%s6837_s17 + $0x30] ss:$0 sps:$4 sm:$0x33]   ;;  %v919_v13 = vor.u32 %v918_v45, %v915_v53  ;;  %v2969_v19 = vor.u32 %v2968_v47, %v2965_v44  ;;  %v1039_v28 = vrot.slane %v7082_v26, 2  ;;  %v1041_v26 = vrot.slane %v7109_v11, 2  ;;  %v7375_v47 = vld [vmem:[%s7036_s28 + $0x14] sm:$0xff]  }
  0x8a   : > { %5841 = vmatprep.subr.bf16.mxu0 %v6733_v2  ;;  %v902_v49 = vsel %vm701_vm8, %v892_v43, %v901_v42  ;;  %v911_v59 = vsel %vm701_vm8, %v901_v42, %v910_v7  ;;  %v922_v21 = vshrl.u32 %v7289_v8, 16  ;;  %v6648_v42 = vld [vmem:[%s6850_s29 + $0x34] ss:$0 sps:$4 sm:$0xff]   ;;  %v1043_v11 = vrot.slane %v7140_v60, 2  ;;  %v7359_v45 = vld [vmem:[%s7036_s28 + $0xc] sm:$0xff]  }
  0x8b   : > { %v920_v40 = vsel %vm701_vm8, %v910_v7, %v919_v13  ;;  %v2973_v58 = vsel %vm1611_vm7, %v2969_v19, %v7024_v0  ;;  %v2990_v30 = vshll.u32 %v6648_v42, 16  ;;  %v5155_v7 = vcombine.low %v3096_v31, %v7346_v38 }
  0x8c   : > { %v924_v62 = vrot.slane %v922_v21, 1  ;;  %v1044_v27 = vsel %vm1037_vm4, %v1041_v26, %v1043_v11  ;;  %v1045_v60 = vrot.slane %v7175_v14, 2  ;;  %v1047_v21 = vrot.slane %v7289_v8, 2 }
  0x8d   : > { %v3153_v19 = vshll.u32 %v7375_v47, 16 }
  0x8e   : > { %5508 = vmatmul.mubr.msk.bf16.gmra.mrb[16].mxu1 %vm463_vm3, %v734_v20  ;;  %v925_v20 = vshll.u32 %v7289_v8, 16  ;;  %v1048_v8 = vsel %vm1037_vm4, %v1045_v60, %v1047_v21 }
  0x8f   : > { %5513 = vmatprep.mubr.msk.bf16.mxu1 %vm6734_vm1, %v6733_v2 }
  0x90   : > { %5804 = vmatmul.mubr.msk.bf16.gmra.mrb[4].mxu0 %vm463_vm3, %v2848_v39  ;;  %v927_v22 = vrot.slane %v925_v20, 2  ;;  %v5154_v39 = vld [vmem:[%s8366_s3 + $0x24] sm:$0x3]  ;;  %v3149_v20 = vshrl.u32 %v7359_v45, 16 }
  0x91   : > { %5807 = vmatprep.mubr.msk.bf16.mxu0 %vm6734_vm1, %v6733_v2  ;;  %v3197_v32 = vsel %vm479_vm0, %v5154_v39, 0 }
  0x92   : > { %v928_v43 = vor.u32 %v927_v22, %v924_v62 }
  0x94   : > { %v929_v50 = vsel %vm701_vm8, %v919_v13, %v928_v43  ;;  %v1046_v13 = vsel %vm1037_vm4, %v1043_v11, %v1045_v60  ;;  %v3155_v43 = vrot.slane %v3153_v19, 1 }
  0x96   : > { %5514 = vmatmul.mubr.msk.bf16.vlgmr.msra.gmra.mrb[0].mxu1 %vm463_vm3, %v893_v18  ;;  %v1031_v18 = vld [vmem:[%s6837_s17 + $0x8] sm:$0xc] }
  0x97   : > { %5517 = vmatprep.mubr.msk.bf16.mxu1 %vm6734_vm1, %v6733_v2  ;;  %5534 = vmatpush3.bf16.msra.mxu1 %v1065_v57  ;;  %v7316_v36 = vcombine.low %v1031_v18, %v7215_v25  ;;  %v5043_v57 = vld [vmem:[%s8366_s3 + $0xa] sm:$0x3] }
  0x98   : > { %5555 = vmatprep.subr.bf16.mxu1 %v6733_v2  ;;  %5808 = vmatmul.mubr.msk.bf16.gmra.mrb[8].mxu0 %vm463_vm3, %v2850_v5  ;;  %v1206_v5 = vsel %vm479_vm0, %v5043_v57, 0 }
  0x99   : > { %5811 = vmatprep.mubr.msk.bf16.mxu0 %vm6734_vm1, %v6733_v2  ;;  %v1038_v0 = vrot.slane %v7316_v36, 2  ;;  %v1158_v62 = vshrl.u32 %v7316_v36, 16  ;;  %v1161_v22 = vshll.u32 %v7316_v36, 16 }
  0x9b   : > { %v1040_v25 = vsel %vm1037_vm4, %v1038_v0, %v1039_v28  ;;  %v1163_v18 = vrot.slane %v1161_v22, 3  ;;  %v7474_v22 = vld [vmem:[%s6837_s17 + $0x14] sm:$0xff]  }
  0x9e   : > { %5518 = vmatmul.mubr.msk.bf16.gmra.mrb[4].mxu1 %vm463_vm3, %v902_v49  ;;  %v2987_v49 = vshrl.u32 %v6648_v42, 16 }
  0x9f   : > { %5521 = vmatprep.mubr.msk.bf16.mxu1 %vm6734_vm1, %v6733_v2 }
  0xa0   : > { %5812 = vmatmul.mubr.msk.bf16.gmra.mrb[12].mxu0 %vm463_vm3, %v2852_v55  ;;  %v2989_v55 = vrot.slane %v2987_v49, 3 }
  0xa1   : > { %5815 = vmatprep.mubr.msk.bf16.mxu0 %vm6734_vm1, %v6733_v2 }
  0xa6   : > { %5522 = vmatmul.mubr.msk.bf16.gmra.mrb[8].mxu1 %vm463_vm3, %v911_v59  ;;  %v3140_v59 = vshll.u32 %v5155_v7, 16 }
  0xa7   : > { %5525 = vmatprep.mubr.msk.bf16.mxu1 %vm6734_vm1, %v6733_v2 }
  0xa8   : > { %5816 = vmatmul.mubr.msk.bf16.gmra.mrb[16].mxu0 %vm463_vm3, %v2854_v10  ;;  %v3142_v9 = vrot.slane %v3140_v59, 1  ;;  %v3145_v10 = vshll.u32 %v7359_v45, 16  ;;  %v6656_v59 = vld [vmem:[%s6837_s17 + $0x30] ss:$0 sps:$4 sm:$0x77]  }
  0xa9   : > { %5821 = vmatprep.mubr.msk.bf16.mxu0 %vm6734_vm1, %v6733_v2 }
  0xaa   : > { %v3147_v14 = vrot.slane %v3145_v10, 1 }
  0xae   : > { %5526 = vmatmul.mubr.msk.bf16.gmra.mrb[12].mxu1 %vm463_vm3, %v920_v40 }
  0xaf   : > { %5529 = vmatprep.mubr.msk.bf16.mxu1 %vm6734_vm1, %v6733_v2 }
  0xb0   : > { %5822 = vmatmul.mubr.msk.bf16.vlgmr.msra.gmra.mrb[0].mxu0 %vm463_vm3, %v2973_v58  ;;  %v3151_v58 = vor.u32 %v3149_v20, %v3147_v14 }
  0xb1   : > { %5842 = vmatpush3.bf16.msra.mxu0 %v3197_v32  ;;  %5825 = vmatprep.mubr.msk.bf16.mxu0 %vm6734_vm1, %v6733_v2  ;;  %v1160_v32 = vrot.slane %v1158_v62, 2 }
  0xb2   : > { %5863 = vmatprep.subr.bf16.mxu0 %v6733_v2  ;;  %v3156_v36 = vsel %vm559_vm6, %v3151_v58, %v3155_v43 }
  0xb3   : > { %v1164_v0 = vor.u32 %v1163_v18, %v1160_v32  ;;  %v1341_v18 = vshrl.u32 %v7474_v22, 16 }
  0xb6   : > { %5530 = vmatmul.mubr.msk.bf16.gmra.mrb[16].mxu1 %vm463_vm3, %v929_v50  ;;  %v7399_v50 = vld [vmem:[%s7036_s28 + $0x1c] sm:$0xff]  }
  0xb7   : > { %5535 = vmatprep.mubr.msk.bf16.mxu1 %vm6734_vm1, %v6733_v2  ;;  %v3161_v57 = vshll.u32 %v7399_v50, 16 }
  0xb8   : > { %5826 = vmatmul.mubr.msk.bf16.gmra.mrb[4].mxu0 %vm463_vm3, %v7049_v37  ;;  %v1042_v37 = vsel %vm1037_vm4, %v1039_v28, %v1041_v26  ;;  %v3157_v28 = vshrl.u32 %v7375_v47, 16 }
  0xb9   : > { %5829 = vmatprep.mubr.msk.bf16.mxu0 %vm6734_vm1, %v6733_v2  ;;  %v3163_v42 = vrot.slane %v3161_v57, 1 }
  0xba   : > { %v3159_v26 = vor.u32 %v3157_v28, %v3155_v43 }
  0xbe   : > { %5536 = vmatmul.mubr.msk.bf16.vlgmr.msra.gmra.mrb[0].mxu1 %vm463_vm3, %v1040_v25  ;;  %v5050_v25 = vld [vmem:[%s8366_s3 + $0xc] sm:$0x3] }
  0xbf   : > { %5539 = vmatprep.mubr.msk.bf16.mxu1 %vm6734_vm1, %v6733_v2  ;;  %5556 = vmatpush3.bf16.msra.mxu1 %v1206_v5  ;;  %v1168_v5 = vsel %vm1156_vm5, %v1164_v0, %v7111_v46  ;;  %v1401_v49 = vsel %vm479_vm0, %v5050_v25, 0  ;;  %v3165_v46 = vshrl.u32 %v7399_v50, 16  ;;  %v3291_v25 = vrot.slane %v7375_v47, 1 }
  0xc0   : > { %5577 = vmatprep.subr.bf16.mxu1 %v6733_v2  ;;  %5830 = vmatmul.mubr.msk.bf16.gmra.mrb[8].mxu0 %vm463_vm3, %v7058_v56  ;;  %v2992_v56 = vrot.slane %v2990_v30, 4  ;;  %v3164_v30 = vsel %vm559_vm6, %v3159_v26, %v3163_v42 }
  0xc1   : > { %5833 = vmatprep.mubr.msk.bf16.mxu0 %vm6734_vm1, %v6733_v2  ;;  %v3167_v11 = vor.u32 %v3165_v46, %v3163_v42  ;;  %v1343_v42 = vrot.slane %v1341_v18, 2 }
  0xc2   : > { %v2993_v53 = vor.u32 %v2992_v56, %v2989_v55  ;;  %v7439_v56 = vld [vmem:[%s7036_s28 + $0x2c] ss:$0 sps:$4 sm:$0x11]  }
  0xc4   : > { %v2994_v54 = vsel %vm1611_vm7, %v7062_v61, %v2993_v53  ;;  %v5166_v61 = vld [vmem:[%s8366_s3 + $0x26] sm:$0x3]  ;;  %v3177_v53 = vshll.u32 %v7439_v56, 16 }
  0xc5   : > { %v3315_v39 = vsel %vm479_vm0, %v5166_v61, 0  ;;  %v7465_v61 = vld [vmem:[%s6837_s17 + $0x10] sm:$0xf] }
  0xc6   : > { %5540 = vmatmul.mubr.msk.bf16.gmra.mrb[4].mxu1 %vm463_vm3, %v1042_v37  ;;  %v7421_v37 = vld [vmem:[%s7036_s28 + $0x24] sm:$0xff]   ;;  %v3179_v60 = vrot.slane %v3177_v53, 1 }
  0xc7   : > { %5543 = vmatprep.mubr.msk.bf16.mxu1 %vm6734_vm1, %v6733_v2  ;;  %v3169_v31 = vshll.u32 %v7421_v37, 16 }
  0xc8   : > { %5834 = vmatmul.mubr.msk.bf16.gmra.mrb[12].mxu0 %vm463_vm3, %v7071_v24  ;;  %v3138_v24 = vshrl.u32 %v5155_v7, 16 }
  0xc9   : > { %5837 = vmatprep.mubr.msk.bf16.mxu0 %vm6734_vm1, %v6733_v2  ;;  %v3171_v55 = vrot.slane %v3169_v31, 1 }
  0xca   : > { %v3143_v44 = vor.u32 %v3142_v9, %v3138_v24  ;;  %v1182_v9 = vshrl.u32 %v6656_v59, 16 }
  0xcb   : > { %v3172_v7 = vsel %vm559_vm6, %v3167_v11, %v3171_v55 }
  0xcc   : > { %v3148_v40 = vsel %vm559_vm6, %v3143_v44, %v3147_v14  ;;  %v1291_v14 = vld [vmem:[%s6837_s17 + $0xc] sm:$0xc] }
  0xce   : > { %5544 = vmatmul.mubr.msk.bf16.gmra.mrb[8].mxu1 %vm463_vm3, %v1044_v27  ;;  %v3173_v27 = vshrl.u32 %v7421_v37, 16 }
  0xcf   : > { %5547 = vmatprep.mubr.msk.bf16.mxu1 %vm6734_vm1, %v6733_v2 }
  0xd0   : > { %5838 = vmatmul.mubr.msk.bf16.gmra.mrb[16].mxu0 %vm463_vm3, %v2994_v54  ;;  %v3282_v54 = vld [vmem:[%s7036_s28 + $0x4] sm:$0xe] }
  0xd1   : > { %5843 = vmatprep.mubr.msk.bf16.mxu0 %vm6734_vm1, %v6733_v2  ;;  %v7458_v24 = vcombine.low %v3282_v54, %v7346_v38  ;;  %v5051_v38 = vcombine.low %v1291_v14, %v7465_v61 }
  0xd3   : > { %v3288_v21 = vrot.slane %v7458_v24, 1  ;;  %v1333_v43 = vshrl.u32 %v5051_v38, 16  ;;  %v1336_v32 = vshll.u32 %v5051_v38, 16  ;;  %v3295_v38 = vrot.slane %v7421_v37, 1 }
  0xd5   : > { %v1338_v26 = vrot.slane %v1336_v32, 3 }
  0xd6   : > { %5548 = vmatmul.mubr.msk.bf16.gmra.mrb[12].mxu1 %vm463_vm3, %v1046_v13  ;;  %v1185_v13 = vshll.u32 %v6656_v59, 16  ;;  %v5062_v59 = vld [vmem:[%s8366_s3 + $0xe] sm:$0x3] }
  0xd7   : > { %5551 = vmatprep.mubr.msk.bf16.mxu1 %vm6734_vm1, %v6733_v2 }
  0xd8   : > { %5844 = vmatmul.mubr.msk.bf16.vlgmr.msra.gmra.mrb[0].mxu0 %vm463_vm3, %v3148_v40  ;;  %v3289_v40 = vrot.slane %v7359_v45, 1  ;;  %v1187_v62 = vrot.slane %v1185_v13, 3  ;;  %v7520_v13 = vld [vmem:[%s6837_s17 + $0x24] sm:$0xff]  }
  0xd9   : > { %5864 = vmatpush3.bf16.msra.mxu0 %v3315_v39  ;;  %5847 = vmatprep.mubr.msk.bf16.mxu0 %vm6734_vm1, %v6733_v2  ;;  %v5173_v39 = vld [vmem:[%s8366_s3 + $0x28] sm:$0x3]  ;;  %v5180_v45 = vld [vmem:[%s8366_s3 + $0x2a] sm:$0x3]  ;;  %v1498_v37 = vrot.slane %v7520_v13, 3 }
  0xda   : > { %5885 = vmatprep.subr.bf16.mxu0 %v6733_v2  ;;  %v3455_v0 = vsel %vm479_vm0, %v5173_v39, 0 }
  0xde   : > { %5552 = vmatmul.mubr.msk.bf16.gmra.mrb[16].mxu1 %vm463_vm3, %v1048_v8  ;;  %v3290_v8 = vsel %vm451_vm2, %v3288_v21, %v3289_v40 }
  0xdf   : > { %5557 = vmatprep.mubr.msk.bf16.mxu1 %vm6734_vm1, %v6733_v2 }
  0xe0   : > { %5848 = vmatmul.mubr.msk.bf16.gmra.mrb[4].mxu0 %vm463_vm3, %v3156_v36  ;;  %v1344_v36 = vshll.u32 %v7474_v22, 16 }
  0xe1   : > { %5851 = vmatprep.mubr.msk.bf16.mxu0 %vm6734_vm1, %v6733_v2 }
  0xe6   : > { %5558 = vmatmul.mubr.msk.bf16.vlgmr.msra.gmra.mrb[0].mxu1 %vm463_vm3, %v1168_v5  ;;  %v1335_v5 = vrot.slane %v1333_v43, 2 }
  0xe7   : > { %5561 = vmatprep.mubr.msk.bf16.mxu1 %vm6734_vm1, %v6733_v2  ;;  %5578 = vmatpush3.bf16.msra.mxu1 %v1401_v49  ;;  %v1346_v49 = vrot.slane %v1344_v36, 3 }
  0xe8   : > { %5599 = vmatprep.subr.bf16.mxu1 %v6733_v2  ;;  %5852 = vmatmul.mubr.msk.bf16.gmra.mrb[8].mxu0 %vm463_vm3, %v3164_v30  ;;  %v7498_v30 = vld [vmem:[%s6837_s17 + $0x1c] sm:$0xff]   ;;  %v1339_v11 = vor.u32 %v1338_v26, %v1335_v5  ;;  %v3407_v5 = vshrl.u32 %v7458_v24, 16  ;;  %v3410_v26 = vshll.u32 %v7458_v24, 16 }
  0xe9   : > { %5855 = vmatprep.mubr.msk.bf16.mxu0 %vm6734_vm1, %v6733_v2  ;;  %v1353_v53 = vshll.u32 %v7498_v30, 16 }
  0xee   : > { %5562 = vmatmul.mubr.msk.bf16.gmra.mrb[4].mxu1 %vm463_vm3, %v7145_v63  ;;  %v3175_v63 = vor.u32 %v3173_v27, %v3171_v55  ;;  %v1347_v55 = vor.u32 %v1346_v49, %v1343_v42 }
  0xef   : > { %5565 = vmatprep.mubr.msk.bf16.mxu1 %vm6734_vm1, %v6733_v2 }
  0xf0   : > { %5856 = vmatmul.mubr.msk.bf16.gmra.mrb[12].mxu0 %vm463_vm3, %v3172_v7  ;;  %v3180_v44 = vsel %vm559_vm6, %v3175_v63, %v3179_v60  ;;  %v1350_v7 = vshrl.u32 %v7498_v30, 16  ;;  %v1348_v63 = vsel %vm1156_vm5, %v1339_v11, %v1347_v55  ;;  %v3293_v60 = vrot.slane %v7399_v50, 1  ;;  %v7560_v11 = vld [vmem:[%s6837_s17 + $0x34] ss:$0 sps:$4 sm:$0x77]  }
  0xf1   : > { %5859 = vmatprep.mubr.msk.bf16.mxu0 %vm6734_vm1, %v6733_v2  ;;  %v6664_v50 = vld [vmem:[%s7036_s28 + $0x2c] ss:$0 sps:$4 sm:$0x33]  }
  0xf2   : > { %v1352_v54 = vrot.slane %v1350_v7, 2  ;;  %v3294_v14 = vsel %vm451_vm2, %v3291_v25, %v3293_v60  ;;  %v3296_v43 = vsel %vm451_vm2, %v3293_v60, %v3295_v38  ;;  %v3415_v60 = vrot.slane %v3145_v10, 2 }
  0xf3   : > { %v3418_v10 = vrot.slane %v3157_v28, 1 }
  0xf6   : > { %5566 = vmatmul.mubr.msk.bf16.gmra.mrb[8].mxu1 %vm463_vm3, %v7179_v41  ;;  %v1184_v41 = vrot.slane %v1182_v9, 2  ;;  %v1355_v9 = vrot.slane %v1353_v53, 3 }
  0xf7   : > { %5569 = vmatprep.mubr.msk.bf16.mxu1 %vm6734_vm1, %v6733_v2 }
  0xf8   : > { %5860 = vmatmul.mubr.msk.bf16.gmra.mrb[16].mxu0 %vm463_vm3, %v3180_v44  ;;  %v1188_v58 = vor.u32 %v1187_v62, %v1184_v41  ;;  %v1520_v44 = vsel %vm479_vm0, %v5062_v59, 0  ;;  %v1356_v21 = vor.u32 %v1355_v9, %v1352_v54  ;;  %v1362_v41 = vshll.u32 %v7520_v13, 16 }
  0xf9   : > { %5865 = vmatprep.mubr.msk.bf16.mxu0 %vm6734_vm1, %v6733_v2  ;;  %v3412_v59 = vrot.slane %v3410_v26, 2  ;;  %v1377_v54 = vshrl.u32 %v7560_v11, 16  ;;  %v1380_v9 = vshll.u32 %v7560_v11, 16  ;;  %v1494_v26 = vrot.slane %v7474_v22, 3 }
  0xfa   : > { %v1357_v62 = vsel %vm1156_vm5, %v1347_v55, %v1356_v21  ;;  %v3409_v55 = vrot.slane %v3407_v5, 1 }
  0xfe   : > { %5570 = vmatmul.mubr.msk.bf16.gmra.mrb[12].mxu1 %vm463_vm3, %v7205_v15  ;;  %v1189_v15 = vsel %vm1156_vm5, %v7200_v48, %v1188_v58  ;;  %v3292_v48 = vsel %vm451_vm2, %v3289_v40, %v3291_v25  ;;  %v1359_v40 = vshrl.u32 %v7520_v13, 16  ;;  %v7540_v58 = vld [vmem:[%s6837_s17 + $0x2c] sm:$0xff]   ;;  %v3297_v25 = vrot.slane %v7439_v56, 1 }
  0xff   : > { %5573 = vmatprep.mubr.msk.bf16.mxu1 %vm6734_vm1, %v6733_v2  ;;  %v3414_v56 = vrot.slane %v3149_v20, 1  ;;  %v3413_v20 = vor.u32 %v3412_v59, %v3409_v55  ;;  %v3426_v55 = vrot.slane %v3173_v27, 1  ;;  %v3427_v59 = vrot.slane %v3169_v31, 2 }
 0x100   : > { %5866 = vmatmul.mubr.msk.bf16.vlgmr.msra.gmra.mrb[0].mxu0 %vm463_vm3, %v3290_v8  ;;  %v1361_v39 = vrot.slane %v1359_v40, 2  ;;  %v1364_v8 = vrot.slane %v1362_v41, 3  ;;  %v3298_v24 = vsel %vm451_vm2, %v3295_v38, %v3297_v25  ;;  %v3419_v38 = vrot.slane %v3153_v19, 2 }
 0x101   : > { %5886 = vmatpush3.bf16.msra.mxu0 %v3455_v0  ;;  %5869 = vmatprep.mubr.msk.bf16.mxu0 %vm6734_vm1, %v6733_v2  ;;  %v1368_v0 = vshrl.u32 %v7540_v58, 16 }
 0x102   : > { %5907 = vmatprep.subr.bf16.mxu0 %v6733_v2  ;;  %v1365_v32 = vor.u32 %v1364_v8, %v1361_v39  ;;  %v3420_v25 = vor.u32 %v3419_v38, %v3418_v10 }
 0x103   : > { %v1370_v49 = vrot.slane %v1368_v0, 2  ;;  %v1632_v13 = vrot.slane %v1368_v0, 3 }
 0x104   : > { %v1366_v42 = vsel %vm1156_vm5, %v1356_v21, %v1365_v32  ;;  %v1379_v21 = vrot.slane %v1377_v54, 2 }
 0x106   : > { %5574 = vmatmul.mubr.msk.bf16.gmra.mrb[16].mxu1 %vm463_vm3, %v1189_v15  ;;  %v1371_v15 = vshll.u32 %v7540_v58, 16 }
 0x107   : > { %5579 = vmatprep.mubr.msk.bf16.mxu1 %vm6734_vm1, %v6733_v2 }
 0x108   : > { %5870 = vmatmul.mubr.msk.bf16.gmra.mrb[4].mxu0 %vm463_vm3, %v3292_v48  ;;  %v1373_v48 = vrot.slane %v1371_v15, 3 }
 0x109   : > { %5873 = vmatprep.mubr.msk.bf16.mxu0 %vm6734_vm1, %v6733_v2 }
 0x10e   : > { %5580 = vmatmul.mubr.msk.bf16.vlgmr.msra.gmra.mrb[0].mxu1 %vm463_vm3, %v1348_v63  ;;  %v1374_v63 = vor.u32 %v1373_v48, %v1370_v49  ;;  %v5069_v49 = vld [vmem:[%s8366_s3 + $0x10] sm:$0x3] }
 0x10f   : > { %5583 = vmatprep.mubr.msk.bf16.mxu1 %vm6734_vm1, %v6733_v2  ;;  %5600 = vmatpush3.bf16.msra.mxu1 %v1520_v44 }
 0x110   : > { %5621 = vmatprep.subr.bf16.mxu1 %v6733_v2  ;;  %5874 = vmatmul.mubr.msk.bf16.gmra.mrb[8].mxu0 %vm463_vm3, %v3294_v14  ;;  %v1375_v44 = vsel %vm1156_vm5, %v1365_v32, %v1374_v63  ;;  %v3416_v14 = vor.u32 %v3415_v60, %v3414_v56  ;;  %v1486_v32 = vld [vmem:[%s6837_s17 + $0xc] sm:$0x8]  ;;  %v3434_v60 = vshll.u32 %v6664_v50, 16 }
 0x111   : > { %5877 = vmatprep.mubr.msk.bf16.mxu0 %vm6734_vm1, %v6733_v2  ;;  %v7594_v47 = vcombine.low %v1486_v32, %v7465_v61  ;;  %v3423_v61 = vrot.slane %v3161_v57, 2 }
 0x112   : > { %v3417_v39 = vsel %vm701_vm8, %v3413_v20, %v3416_v14  ;;  %v3421_v19 = vsel %vm701_vm8, %v3416_v14, %v3420_v25  ;;  %v3540_v20 = vld [vmem:[%s7036_s28 + $0x8] sm:$0xe]  ;;  %v3436_v27 = vrot.slane %v3434_v60, 2 }
 0x113   : > { %v1493_v28 = vrot.slane %v7594_v47, 3  ;;  %v1616_v60 = vshll.u32 %v7594_v47, 16 }
 0x115   : > { %v1495_v48 = vsel %vm1492_vm9, %v1493_v28, %v1494_v26 }
 0x116   : > { %5584 = vmatmul.mubr.msk.bf16.gmra.mrb[4].mxu1 %vm463_vm3, %v1357_v62  ;;  %v1382_v62 = vrot.slane %v1380_v9, 3  ;;  %v3428_v9 = vor.u32 %v3427_v59, %v3426_v55 }
 0x117   : > { %5587 = vmatprep.mubr.msk.bf16.mxu1 %vm6734_vm1, %v6733_v2 }
 0x118   : > { %5878 = vmatmul.mubr.msk.bf16.gmra.mrb[12].mxu0 %vm463_vm3, %v3296_v43  ;;  %v1383_v8 = vor.u32 %v1382_v62, %v1379_v21  ;;  %v3650_v43 = vsel %vm479_vm0, %v5180_v45, 0  ;;  %v7641_v62 = vld [vmem:[%s7036_s28 + $0x10] sm:$0xff]  }
 0x119   : > { %5881 = vmatprep.mubr.msk.bf16.mxu0 %vm6734_vm1, %v6733_v2 }
 0x11a   : > { %v1384_v5 = vsel %vm1156_vm5, %v1374_v63, %v1383_v8  ;;  %v3431_v63 = vshrl.u32 %v6664_v50, 16  ;;  %v3590_v8 = vshrl.u32 %v7641_v62, 16  ;;  %v5192_v50 = vld [vmem:[%s8366_s3 + $0x2c] sm:$0x3] }
 0x11c   : > { %v3433_v31 = vrot.slane %v3431_v63, 1  ;;  %v1613_v63 = vshrl.u32 %v7594_v47, 16 }
 0x11e   : > { %5588 = vmatmul.mubr.msk.bf16.gmra.mrb[8].mxu1 %vm463_vm3, %v1366_v42  ;;  %v3422_v42 = vrot.slane %v3165_v46, 1  ;;  %v1496_v46 = vrot.slane %v7498_v30, 3  ;;  %v3437_v10 = vor.u32 %v3436_v27, %v3433_v31  ;;  %v1621_v31 = vrot.slane %v1344_v36, 4 }
 0x11f   : > { %5591 = vmatprep.mubr.msk.bf16.mxu1 %vm6734_vm1, %v6733_v2  ;;  %v1615_v47 = vrot.slane %v1613_v63, 3  ;;  %v1618_v27 = vrot.slane %v1616_v60, 4 }
 0x120   : > { %5882 = vmatmul.mubr.msk.bf16.gmra.mrb[16].mxu0 %vm463_vm3, %v3298_v24  ;;  %v3424_v56 = vor.u32 %v3423_v61, %v3422_v42  ;;  %v1661_v24 = vsel %vm479_vm0, %v5069_v49, 0  ;;  %v1497_v54 = vsel %vm1492_vm9, %v1494_v26, %v1496_v46  ;;  %v1499_v45 = vsel %vm1492_vm9, %v1496_v46, %v1498_v37 }
 0x121   : > { %5887 = vmatprep.mubr.msk.bf16.mxu0 %vm6734_vm1, %v6733_v2  ;;  %v3438_v32 = vsel %vm701_vm8, %v3428_v9, %v3437_v10  ;;  %v3592_v26 = vrot.slane %v3590_v8, 1  ;;  %v1619_v22 = vor.u32 %v1618_v27, %v1615_v47  ;;  %v3735_v47 = vld [vmem:[%s7036_s28 + $0x8] sm:$0xc] }
 0x122   : > { %v3425_v57 = vsel %vm701_vm8, %v3420_v25, %v3424_v56  ;;  %v3429_v14 = vsel %vm701_vm8, %v3424_v56, %v3428_v9  ;;  %v1500_v25 = vrot.slane %v7540_v58, 3 }
 0x126   : > { %5592 = vmatmul.mubr.msk.bf16.gmra.mrb[12].mxu1 %vm463_vm3, %v1375_v44  ;;  %v7632_v44 = vld [vmem:[%s7036_s28 + $0xc] sm:$0xf] }
 0x127   : > { %5595 = vmatprep.mubr.msk.bf16.mxu1 %vm6734_vm1, %v6733_v2  ;;  %v5181_v21 = vcombine.low %v3540_v20, %v7632_v44  ;;  %v7762_v0 = vcombine.low %v3735_v47, %v7632_v44 }
 0x128   : > { %5888 = vmatmul.mubr.msk.bf16.vlgmr.msra.gmra.mrb[0].mxu0 %vm463_vm3, %v3417_v39 }
 0x129   : > { %5908 = vmatpush3.bf16.msra.mxu0 %v3650_v43  ;;  %5891 = vmatprep.mubr.msk.bf16.mxu0 %vm6734_vm1, %v6733_v2  ;;  %v3582_v38 = vshrl.u32 %v5181_v21, 16  ;;  %v3585_v39 = vshll.u32 %v5181_v21, 16  ;;  %v3593_v43 = vshll.u32 %v7641_v62, 16 }
 0x12a   : > { %5929 = vmatprep.subr.bf16.mxu0 %v6733_v2 }
 0x12b   : > { %v3587_v28 = vrot.slane %v3585_v39, 2  ;;  %v3595_v42 = vrot.slane %v3593_v43, 2  ;;  %v5076_v39 = vld [vmem:[%s8366_s3 + $0x12] sm:$0x3] }
 0x12e   : > { %5596 = vmatmul.mubr.msk.bf16.gmra.mrb[16].mxu1 %vm463_vm3, %v1384_v5  ;;  %v7653_v5 = vld [vmem:[%s7036_s28 + $0x18] sm:$0xff]  }
 0x12f   : > { %5601 = vmatprep.mubr.msk.bf16.mxu1 %vm6734_vm1, %v6733_v2  ;;  %v3599_v61 = vshrl.u32 %v7653_v5, 16  ;;  %v3602_v49 = vshll.u32 %v7653_v5, 16 }
 0x130   : > { %5892 = vmatmul.mubr.msk.bf16.gmra.mrb[4].mxu0 %vm463_vm3, %v3421_v19  ;;  %v3584_v19 = vrot.slane %v3582_v38, 1 }
 0x131   : > { %5895 = vmatprep.mubr.msk.bf16.mxu0 %vm6734_vm1, %v6733_v2  ;;  %v3601_v46 = vrot.slane %v3599_v61, 1  ;;  %v3604_v55 = vrot.slane %v3602_v49, 2 }
 0x132   : > { %v3588_v56 = vor.u32 %v3587_v28, %v3584_v19 }
 0x133   : > { %v3605_v20 = vor.u32 %v3604_v55, %v3601_v46  ;;  %v1628_v46 = vrot.slane %v1359_v40, 3  ;;  %v1629_v55 = vrot.slane %v1362_v41, 4  ;;  %v1633_v40 = vrot.slane %v1371_v15, 4 }
 0x135   : > { %v1634_v27 = vor.u32 %v1633_v40, %v1632_v13 }
 0x136   : > { %5602 = vmatmul.mubr.msk.bf16.vlgmr.msra.gmra.mrb[0].mxu1 %vm463_vm3, %v1495_v48  ;;  %v1501_v48 = vsel %vm1492_vm9, %v1498_v37, %v1500_v25  ;;  %v1620_v37 = vrot.slane %v1341_v18, 3  ;;  %v7699_v18 = vld [vmem:[%s7036_s28 + $0x28] sm:$0xff]  }
 0x137   : > { %5605 = vmatprep.mubr.msk.bf16.mxu1 %vm6734_vm1, %v6733_v2  ;;  %5622 = vmatpush3.bf16.msra.mxu1 %v1661_v24  ;;  %v3596_v24 = vor.u32 %v3595_v42, %v3592_v26  ;;  %v3617_v19 = vshrl.u32 %v7699_v18, 16  ;;  %v3620_v28 = vshll.u32 %v7699_v18, 16 }
 0x138   : > { %5643 = vmatprep.subr.bf16.mxu1 %v6733_v2  ;;  %5896 = vmatmul.mubr.msk.bf16.gmra.mrb[8].mxu0 %vm463_vm3, %v3425_v57  ;;  %v1502_v57 = vrot.slane %v7560_v11, 3  ;;  %v3768_v11 = vsel %vm479_vm0, %v5192_v50, 0  ;;  %v1622_v36 = vor.u32 %v1621_v31, %v1620_v37  ;;  %v6672_v31 = vld [vmem:[%s6837_s17 + $0x34] ss:$0 sps:$4 sm:$0xff]  }
 0x139   : > { %5899 = vmatprep.mubr.msk.bf16.mxu0 %vm6734_vm1, %v6733_v2  ;;  %v3597_v59 = vsel %vm701_vm8, %v3588_v56, %v3596_v24  ;;  %v3622_v30 = vrot.slane %v3620_v28, 2  ;;  %v1637_v58 = vshrl.u32 %v6672_v31, 16  ;;  %v1640_v15 = vshll.u32 %v6672_v31, 16 }
 0x13a   : > { %v1503_v9 = vsel %vm1492_vm9, %v1500_v25, %v1502_v57  ;;  %v1625_v25 = vrot.slane %v1353_v53, 4  ;;  %v1623_v26 = vsel %vm1611_vm7, %v1619_v22, %v1622_v36  ;;  %v1746_v22 = vld [vmem:[%s6850_s29 + $0x4] sm:$0xf] }
 0x13b   : > { %v1642_v44 = vrot.slane %v1640_v15, 4  ;;  %v3748_v15 = vrot.slane %v7699_v18, 2 }
 0x13e   : > { %5606 = vmatmul.mubr.msk.bf16.gmra.mrb[4].mxu1 %vm463_vm3, %v1497_v54  ;;  %v7682_v54 = vld [vmem:[%s7036_s28 + $0x20] sm:$0xff]  }
 0x13f   : > { %5609 = vmatprep.mubr.msk.bf16.mxu1 %vm6734_vm1, %v6733_v2  ;;  %v3611_v21 = vshll.u32 %v7682_v54, 16  ;;  %v3746_v13 = vrot.slane %v7682_v54, 2 }
 0x140   : > { %5900 = vmatmul.mubr.msk.bf16.gmra.mrb[12].mxu0 %vm463_vm3, %v3429_v14  ;;  %v3608_v14 = vshrl.u32 %v7682_v54, 16  ;;  %v6680_v54 = vld [vmem:[%s7036_s28 + $0x30] ss:$0 sps:$4 sm:$0x77]  }
 0x141   : > { %5903 = vmatprep.mubr.msk.bf16.mxu0 %vm6734_vm1, %v6733_v2  ;;  %v3613_v38 = vrot.slane %v3611_v21, 2 }
 0x142   : > { %v3610_v10 = vrot.slane %v3608_v14, 1 }
 0x144   : > { %v3614_v42 = vor.u32 %v3613_v38, %v3610_v10  ;;  %v3742_v38 = vrot.slane %v7641_v62, 2  ;;  %v5206_v62 = vld [vmem:[%s8366_s3 + $0x30] sm:$0x3] }
 0x146   : > { %5610 = vmatmul.mubr.msk.bf16.gmra.mrb[8].mxu1 %vm463_vm3, %v1499_v45  ;;  %v3606_v45 = vsel %vm701_vm8, %v3596_v24, %v3605_v20  ;;  %v3615_v53 = vsel %vm701_vm8, %v3605_v20, %v3614_v42  ;;  %v7730_v24 = vld [vmem:[%s7036_s28 + $0x30] ss:$0 sps:$4 sm:$0x33]  }
 0x147   : > { %5613 = vmatprep.mubr.msk.bf16.mxu1 %vm6734_vm1, %v6733_v2  ;;  %v3629_v63 = vshll.u32 %v7730_v24, 16 }
 0x148   : > { %5904 = vmatmul.mubr.msk.bf16.gmra.mrb[16].mxu0 %vm463_vm3, %v3438_v32  ;;  %v1624_v32 = vrot.slane %v1350_v7, 3  ;;  %v3619_v7 = vrot.slane %v3617_v19, 1 }
 0x149   : > { %5909 = vmatprep.mubr.msk.bf16.mxu0 %vm6734_vm1, %v6733_v2  ;;  %v3631_v20 = vrot.slane %v3629_v63, 2 }
 0x14a   : > { %v1626_v56 = vor.u32 %v1625_v25, %v1624_v32  ;;  %v3623_v57 = vor.u32 %v3622_v30, %v3619_v7  ;;  %v1639_v32 = vrot.slane %v1637_v58, 3 }
 0x14c   : > { %v1627_v50 = vsel %vm1611_vm7, %v1622_v36, %v1626_v56  ;;  %v3624_v60 = vsel %vm701_vm8, %v3614_v42, %v3623_v57  ;;  %v7766_v36 = vld [vmem:[%s6850_s29 + $0x8] sm:$0xf] }
 0x14d   : > { %v5077_v25 = vcombine.low %v1746_v22, %v7766_v36 }
 0x14e   : > { %5614 = vmatmul.mubr.msk.bf16.gmra.mrb[12].mxu1 %vm463_vm3, %v1501_v48  ;;  %v1847_v48 = vsel %vm479_vm0, %v5076_v39, 0  ;;  %v3741_v39 = vrot.slane %v7762_v0, 2 }
 0x14f   : > { %5617 = vmatprep.mubr.msk.bf16.mxu1 %vm6734_vm1, %v6733_v2  ;;  %v1790_v7 = vshll.u32 %v5077_v25, 16 }
 0x150   : > { %5910 = vmatmul.mubr.msk.bf16.vlgmr.msra.gmra.mrb[0].mxu0 %vm463_vm3, %v3597_v59  ;;  %v3626_v59 = vshrl.u32 %v7730_v24, 16  ;;  %v3743_v42 = vsel %vm1037_vm4, %v3741_v39, %v3742_v38 }
 0x151   : > { %5930 = vmatpush3.bf16.msra.mxu0 %v3768_v11  ;;  %5913 = vmatprep.mubr.msk.bf16.mxu0 %vm6734_vm1, %v6733_v2  ;;  %v1630_v11 = vor.u32 %v1629_v55, %v1628_v46  ;;  %v1792_v46 = vrot.slane %v1790_v7, 1 }
 0x152   : > { %5951 = vmatprep.subr.bf16.mxu0 %v6733_v2 }
 0x153   : > { %v1631_v41 = vsel %vm1611_vm7, %v1626_v56, %v1630_v11  ;;  %v1635_v10 = vsel %vm1611_vm7, %v1630_v11, %v1634_v27  ;;  %v7783_v56 = vld [vmem:[%s6850_s29 + $0xc] sm:$0xff]   ;;  %v7800_v11 = vld [vmem:[%s6850_s29 + $0x14] sm:$0xff]  }
 0x154   : > { %v1795_v55 = vshll.u32 %v7783_v56, 16  ;;  %v1799_v40 = vshrl.u32 %v7783_v56, 16  ;;  %v1807_v22 = vshrl.u32 %v7800_v11, 16 }
 0x156   : > { %5618 = vmatmul.mubr.msk.bf16.gmra.mrb[16].mxu1 %vm463_vm3, %v1503_v9  ;;  %v3628_v9 = vrot.slane %v3626_v59, 1 }
 0x157   : > { %5623 = vmatprep.mubr.msk.bf16.mxu1 %vm6734_vm1, %v6733_v2 }
 0x158   : > { %5914 = vmatmul.mubr.msk.bf16.gmra.mrb[4].mxu0 %vm463_vm3, %v3606_v45  ;;  %v3632_v37 = vor.u32 %v3631_v20, %v3628_v9  ;;  %v5088_v9 = vld [vmem:[%s8366_s3 + $0x14] sm:$0x3] }
 0x159   : > { %5917 = vmatprep.mubr.msk.bf16.mxu0 %vm6734_vm1, %v6733_v2 }
 0x15a   : > { %v3633_v45 = vsel %vm701_vm8, %v3623_v57, %v3632_v37  ;;  %v1788_v57 = vshrl.u32 %v5077_v25, 16  ;;  %v1965_v37 = vsel %vm479_vm0, %v5088_v9, 0  ;;  %v3750_v25 = vrot.slane %v7730_v24, 2 }
 0x15c   : > { %v1793_v63 = vor.u32 %v1792_v46, %v1788_v57  ;;  %v3867_v46 = vrot.slane %v3590_v8, 2  ;;  %v3871_v8 = vrot.slane %v3599_v61, 2 }
 0x15e   : > { %5624 = vmatmul.mubr.msk.bf16.vlgmr.msra.gmra.mrb[0].mxu1 %vm463_vm3, %v1623_v26  ;;  %v5199_v26 = vld [vmem:[%s8366_s3 + $0x2e] sm:$0x3] }
 0x15f   : > { %5627 = vmatprep.mubr.msk.bf16.mxu1 %vm6734_vm1, %v6733_v2  ;;  %5644 = vmatpush3.bf16.msra.mxu1 %v1847_v48  ;;  %v1643_v48 = vor.u32 %v1642_v44, %v1639_v32  ;;  %v3908_v30 = vsel %vm479_vm0, %v5199_v26, 0  ;;  %v7841_v44 = vld [vmem:[%s6850_s29 + $0x24] sm:$0xff]   ;;  %v3860_v26 = vshrl.u32 %v7762_v0, 16 }
 0x160   : > { %5665 = vmatprep.subr.bf16.mxu1 %v6733_v2  ;;  %5918 = vmatmul.mubr.msk.bf16.gmra.mrb[8].mxu0 %vm463_vm3, %v3615_v53  ;;  %v3744_v53 = vrot.slane %v7653_v5, 2 }
 0x161   : > { %5921 = vmatprep.mubr.msk.bf16.mxu0 %vm6734_vm1, %v6733_v2 }
 0x162   : > { %v3745_v59 = vsel %vm1037_vm4, %v3742_v38, %v3744_v53  ;;  %v3747_v31 = vsel %vm1037_vm4, %v3744_v53, %v3746_v13  ;;  %v3749_v38 = vsel %vm1037_vm4, %v3746_v13, %v3748_v15  ;;  %v3751_v53 = vsel %vm1037_vm4, %v3748_v15, %v3750_v25  ;;  %v1932_v15 = vld [vmem:[%s6850_s29 + $0x4] sm:$0xe] }
 0x163   : > { %v1823_v13 = vshrl.u32 %v7841_v44, 16  ;;  %v7893_v5 = vcombine.low %v1932_v15, %v7766_v36  ;;  %v3875_v25 = vrot.slane %v3608_v14, 2  ;;  %v3876_v36 = vrot.slane %v3611_v21, 3 }
 0x164   : > { %v1941_v21 = vrot.slane %v7800_v11, 1 }
 0x166   : > { %5628 = vmatmul.mubr.msk.bf16.gmra.mrb[4].mxu1 %vm463_vm3, %v1627_v50  ;;  %v1644_v50 = vsel %vm1611_vm7, %v1634_v27, %v1643_v48 }
 0x167   : > { %5631 = vmatprep.mubr.msk.bf16.mxu1 %vm6734_vm1, %v6733_v2 }
 0x168   : > { %5922 = vmatmul.mubr.msk.bf16.gmra.mrb[12].mxu0 %vm463_vm3, %v3624_v60  ;;  %v1797_v60 = vrot.slane %v1795_v55, 1 }
 0x169   : > { %5925 = vmatprep.mubr.msk.bf16.mxu0 %vm6734_vm1, %v6733_v2 }
 0x16a   : > { %v1798_v20 = vsel %vm559_vm6, %v1793_v63, %v1797_v60  ;;  %v1801_v47 = vor.u32 %v1799_v40, %v1797_v60  ;;  %v7865_v63 = vld [vmem:[%s6850_s29 + $0x2c] ss:$0 sps:$4 sm:$0x11]  }
 0x16e   : > { %5632 = vmatmul.mubr.msk.bf16.gmra.mrb[8].mxu1 %vm463_vm3, %v1631_v41  ;;  %v1803_v41 = vshll.u32 %v7800_v11, 16 }
 0x16f   : > { %5635 = vmatprep.mubr.msk.bf16.mxu1 %vm6734_vm1, %v6733_v2 }
 0x170   : > { %5926 = vmatmul.mubr.msk.bf16.gmra.mrb[16].mxu0 %vm463_vm3, %v3633_v45  ;;  %v1805_v27 = vrot.slane %v1803_v41, 1  ;;  %v7822_v45 = vld [vmem:[%s6850_s29 + $0x1c] sm:$0xff]  }
 0x171   : > { %5931 = vmatprep.mubr.msk.bf16.mxu0 %vm6734_vm1, %v6733_v2  ;;  %v1815_v7 = vshrl.u32 %v7822_v45, 16  ;;  %v1943_v18 = vrot.slane %v7822_v45, 1 }
 0x172   : > { %v1806_v58 = vsel %vm559_vm6, %v1801_v47, %v1805_v27  ;;  %v1809_v39 = vor.u32 %v1807_v22, %v1805_v27 }
 0x176   : > { %5636 = vmatmul.mubr.msk.bf16.gmra.mrb[12].mxu1 %vm463_vm3, %v1635_v10  ;;  %v1811_v10 = vshll.u32 %v7822_v45, 16  ;;  %v6688_v45 = vld [vmem:[%s6850_s29 + $0x2c] ss:$0 sps:$4 sm:$0x33]  }
 0x177   : > { %5639 = vmatprep.mubr.msk.bf16.mxu1 %vm6734_vm1, %v6733_v2 }
 0x178   : > { %5932 = vmatmul.mubr.msk.bf16.vlgmr.msra.gmra.mrb[0].mxu0 %vm463_vm3, %v3743_v42  ;;  %v1813_v32 = vrot.slane %v1811_v10, 1  ;;  %v3863_v42 = vshll.u32 %v7762_v0, 16 }
 0x179   : > { %5952 = vmatpush3.bf16.msra.mxu0 %v3908_v30  ;;  %5935 = vmatprep.mubr.msk.bf16.mxu0 %vm6734_vm1, %v6733_v2  ;;  %v1819_v30 = vshll.u32 %v7841_v44, 16 }
 0x17a   : > { %5973 = vmatprep.subr.bf16.mxu0 %v6733_v2  ;;  %v1814_v48 = vsel %vm559_vm6, %v1809_v39, %v1813_v32  ;;  %v3865_v24 = vrot.slane %v3863_v42, 3  ;;  %v1817_v0 = vor.u32 %v1815_v7, %v1813_v32  ;;  %v1938_v39 = vrot.slane %v7893_v5, 1 }
 0x17b   : > { %v1821_v57 = vrot.slane %v1819_v30, 1  ;;  %v1939_v32 = vrot.slane %v7783_v56, 1 }
 0x17d   : > { %v1822_v9 = vsel %vm559_vm6, %v1817_v0, %v1821_v57  ;;  %v1825_v47 = vor.u32 %v1823_v13, %v1821_v57  ;;  %v1940_v42 = vsel %vm451_vm2, %v1938_v39, %v1939_v32  ;;  %v3884_v0 = vshrl.u32 %v6680_v54, 16 }
 0x17e   : > { %5640 = vmatmul.mubr.msk.bf16.gmra.mrb[16].mxu1 %vm463_vm3, %v1644_v50  ;;  %v3862_v50 = vrot.slane %v3860_v26, 2  ;;  %v5095_v26 = vld [vmem:[%s8366_s3 + $0x16] sm:$0x3]  ;;  %v3887_v57 = vshll.u32 %v6680_v54, 16  ;;  %v5218_v54 = vld [vmem:[%s8366_s3 + $0x32] sm:$0x3] }
 0x17f   : > { %5645 = vmatprep.mubr.msk.bf16.mxu1 %vm6734_vm1, %v6733_v2 }
 0x180   : > { %5936 = vmatmul.mubr.msk.bf16.gmra.mrb[4].mxu0 %vm463_vm3, %v3745_v59  ;;  %v3868_v59 = vrot.slane %v3593_v43, 3  ;;  %v3866_v60 = vor.u32 %v3865_v24, %v3862_v50  ;;  %v3872_v43 = vrot.slane %v3602_v49, 3  ;;  %v3879_v50 = vrot.slane %v3617_v19, 2 }
 0x181   : > { %5939 = vmatprep.mubr.msk.bf16.mxu0 %vm6734_vm1, %v6733_v2  ;;  %v3880_v24 = vrot.slane %v3620_v28, 3  ;;  %v3886_v19 = vrot.slane %v3884_v0, 2  ;;  %v3889_v28 = vrot.slane %v3887_v57, 3  ;;  %v2057_v0 = vshrl.u32 %v7893_v5, 16 }
 0x182   : > { %v2060_v57 = vshll.u32 %v7893_v5, 16 }
 0x183   : > { %v2059_v5 = vrot.slane %v2057_v0, 1 }
 0x186   : > { %5646 = vmatmul.mubr.msk.bf16.vlgmr.msra.gmra.mrb[0].mxu1 %vm463_vm3, %v1798_v20  ;;  %v3869_v20 = vor.u32 %v3868_v59, %v3867_v46  ;;  %v1942_v46 = vsel %vm451_vm2, %v1939_v32, %v1941_v21  ;;  %v3881_v59 = vor.u32 %v3880_v24, %v3879_v50 }
 0x187   : > { %5649 = vmatprep.mubr.msk.bf16.mxu1 %vm6734_vm1, %v6733_v2  ;;  %5666 = vmatpush3.bf16.msra.mxu1 %v1965_v37  ;;  %v1827_v37 = vshll.u32 %v7865_v63, 16 }
 0x188   : > { %5687 = vmatprep.subr.bf16.mxu1 %v6733_v2  ;;  %5940 = vmatmul.mubr.msk.bf16.gmra.mrb[8].mxu0 %vm463_vm3, %v3747_v31  ;;  %v3870_v31 = vsel %vm1156_vm5, %v3866_v60, %v3869_v20  ;;  %v3993_v60 = vld [vmem:[%s7036_s28 + $0xc] sm:$0xc] }
 0x189   : > { %5943 = vmatprep.mubr.msk.bf16.mxu0 %vm6734_vm1, %v6733_v2  ;;  %v1829_v27 = vrot.slane %v1827_v37, 1 }
 0x18b   : > { %v1830_v61 = vsel %vm559_vm6, %v1825_v47, %v1829_v27 }
 0x18e   : > { %5650 = vmatmul.mubr.msk.bf16.gmra.mrb[4].mxu1 %vm463_vm3, %v1806_v58  ;;  %v4103_v58 = vsel %vm479_vm0, %v5206_v62, 0  ;;  %v7940_v62 = vld [vmem:[%s7036_s28 + $0x14] sm:$0xff]  }
 0x18f   : > { %5653 = vmatprep.mubr.msk.bf16.mxu1 %vm6734_vm1, %v6733_v2  ;;  %v4043_v27 = vshrl.u32 %v7940_v62, 16 }
 0x190   : > { %5944 = vmatmul.mubr.msk.bf16.gmra.mrb[12].mxu0 %vm463_vm3, %v3749_v38  ;;  %v3873_v38 = vor.u32 %v3872_v43, %v3871_v8  ;;  %v1944_v8 = vsel %vm451_vm2, %v1941_v21, %v1943_v18  ;;  %v3890_v43 = vor.u32 %v3889_v28, %v3886_v19  ;;  %v2065_v19 = vrot.slane %v1795_v55, 2 }
 0x191   : > { %5947 = vmatprep.mubr.msk.bf16.mxu0 %vm6734_vm1, %v6733_v2  ;;  %v4045_v32 = vrot.slane %v4043_v27, 2  ;;  %v2062_v28 = vrot.slane %v2060_v57, 2  ;;  %v4320_v6 = vrot.slane %v4043_v27, 3 }
 0x192   : > { %v3874_v49 = vsel %vm1156_vm5, %v3869_v20, %v3873_v38  ;;  %v3891_v15 = vsel %vm1156_vm5, %v3881_v59, %v3890_v43 }
 0x193   : > { %v2063_v56 = vor.u32 %v2062_v28, %v2059_v5  ;;  %v4188_v5 = vld [vmem:[%s7036_s28 + $0xc] sm:$0x8]  ;;  %v2081_v28 = vshrl.u32 %v6688_v45, 16 }
 0x196   : > { %5654 = vmatmul.mubr.msk.bf16.gmra.mrb[8].mxu1 %vm463_vm3, %v1814_v48  ;;  %v3877_v48 = vor.u32 %v3876_v36, %v3875_v25 }
 0x197   : > { %5657 = vmatprep.mubr.msk.bf16.mxu1 %vm6734_vm1, %v6733_v2 }
 0x198   : > { %5948 = vmatmul.mubr.msk.bf16.gmra.mrb[16].mxu0 %vm463_vm3, %v3751_v53  ;;  %v2105_v53 = vsel %vm479_vm0, %v5095_v26, 0  ;;  %v3878_v14 = vsel %vm1156_vm5, %v3873_v38, %v3877_v48  ;;  %v3882_v20 = vsel %vm1156_vm5, %v3877_v48, %v3881_v59  ;;  %v1945_v38 = vrot.slane %v7841_v44, 1 }
 0x199   : > { %5953 = vmatprep.mubr.msk.bf16.mxu0 %vm6734_vm1, %v6733_v2  ;;  %v2064_v59 = vrot.slane %v1799_v40, 1 }
 0x19b   : > { %v2066_v55 = vor.u32 %v2065_v19, %v2064_v59  ;;  %v2077_v19 = vrot.slane %v1819_v30, 2  ;;  %v6691_v30 = vld [vmem:[%s6850_s29 + $0xc] sm:$0xf] }
 0x19e   : > { %5658 = vmatmul.mubr.msk.bf16.gmra.mrb[12].mxu1 %vm463_vm3, %v1822_v9  ;;  %v7931_v9 = vld [vmem:[%s7036_s28 + $0x10] sm:$0xf] }
 0x19f   : > { %5661 = vmatprep.mubr.msk.bf16.mxu1 %vm6734_vm1, %v6733_v2  ;;  %v5207_v37 = vcombine.low %v3993_v60, %v7931_v9 }
 0x1a0   : > { %5954 = vmatmul.mubr.msk.bf16.vlgmr.msra.gmra.mrb[0].mxu0 %vm463_vm3, %v3870_v31 }
 0x1a1   : > { %5974 = vmatpush3.bf16.msra.mxu0 %v4103_v58  ;;  %5957 = vmatprep.mubr.msk.bf16.mxu0 %vm6734_vm1, %v6733_v2  ;;  %v4035_v31 = vshrl.u32 %v5207_v37, 16  ;;  %v4038_v47 = vshll.u32 %v5207_v37, 16  ;;  %v4046_v58 = vshll.u32 %v7940_v62, 16 }
 0x1a2   : > { %5995 = vmatprep.subr.bf16.mxu0 %v6733_v2 }
 0x1a3   : > { %v4040_v39 = vrot.slane %v4038_v47, 3  ;;  %v4048_v25 = vrot.slane %v4046_v58, 3  ;;  %v5102_v47 = vld [vmem:[%s8366_s3 + $0x18] sm:$0x3]  ;;  %v4321_v17 = vrot.slane %v4046_v58, 4 }
 0x1a6   : > { %5662 = vmatmul.mubr.msk.bf16.gmra.mrb[16].mxu1 %vm463_vm3, %v1830_v61  ;;  %v7952_v61 = vld [vmem:[%s7036_s28 + $0x1c] sm:$0xff]  }
 0x1a7   : > { %5667 = vmatprep.mubr.msk.bf16.mxu1 %vm6734_vm1, %v6733_v2  ;;  %v4052_v36 = vshrl.u32 %v7952_v61, 16  ;;  %v4055_v26 = vshll.u32 %v7952_v61, 16 }
 0x1a8   : > { %5958 = vmatmul.mubr.msk.bf16.gmra.mrb[4].mxu0 %vm463_vm3, %v3874_v49  ;;  %v4037_v49 = vrot.slane %v4035_v31, 2 }
 0x1a9   : > { %5961 = vmatprep.mubr.msk.bf16.mxu0 %vm6734_vm1, %v6733_v2  ;;  %v4054_v21 = vrot.slane %v4052_v36, 2  ;;  %v4057_v50 = vrot.slane %v4055_v26, 3  ;;  %v4324_v58 = vrot.slane %v4052_v36, 3  ;;  %v6692_v36 = vld [vmem:[%s6850_s29 + $0x28] sm:$0xff]  }
 0x1aa   : > { %v4041_v48 = vor.u32 %v4040_v39, %v4037_v49 }
 0x1ae   : > { %5668 = vmatmul.mubr.msk.bf16.vlgmr.msra.gmra.mrb[0].mxu1 %vm463_vm3, %v1940_v42  ;;  %v1946_v42 = vsel %vm451_vm2, %v1943_v18, %v1945_v38  ;;  %v4058_v18 = vor.u32 %v4057_v50, %v4054_v21  ;;  %v2072_v21 = vrot.slane %v1815_v7, 1  ;;  %v2073_v50 = vrot.slane %v1811_v10, 2 }
 0x1af   : > { %5671 = vmatprep.mubr.msk.bf16.mxu1 %vm6734_vm1, %v6733_v2  ;;  %5688 = vmatpush3.bf16.msra.mxu1 %v2105_v53  ;;  %v4049_v53 = vor.u32 %v4048_v25, %v4045_v32  ;;  %v2067_v32 = vsel %vm701_vm8, %v2063_v56, %v2066_v55 }
 0x1b0   : > { %5709 = vmatprep.subr.bf16.mxu1 %v6733_v2  ;;  %5962 = vmatmul.mubr.msk.bf16.gmra.mrb[8].mxu0 %vm463_vm3, %v3878_v14  ;;  %v1947_v14 = vrot.slane %v7865_v63, 1  ;;  %v4221_v63 = vsel %vm479_vm0, %v5218_v54, 0 }
 0x1b1   : > { %5965 = vmatprep.mubr.msk.bf16.mxu0 %vm6734_vm1, %v6733_v2  ;;  %v4050_v24 = vsel %vm1156_vm5, %v4041_v48, %v4049_v53  ;;  %v4059_v40 = vsel %vm1156_vm5, %v4049_v53, %v4058_v18  ;;  %v8029_v53 = vld [vmem:[%s7036_s28 + $0x34] ss:$0 sps:$4 sm:$0x77]  }
 0x1b2   : > { %v1948_v60 = vsel %vm451_vm2, %v1945_v38, %v1947_v14  ;;  %v2069_v38 = vrot.slane %v1803_v41, 2  ;;  %v4082_v0 = vshll.u32 %v8029_v53, 16 }
 0x1b6   : > { %5672 = vmatmul.mubr.msk.bf16.gmra.mrb[4].mxu1 %vm463_vm3, %v1942_v46  ;;  %v7981_v46 = vld [vmem:[%s7036_s28 + $0x24] sm:$0xff]  }
 0x1b7   : > { %5675 = vmatprep.mubr.msk.bf16.mxu1 %vm6734_vm1, %v6733_v2  ;;  %v4064_v37 = vshll.u32 %v7981_v46, 16 }
 0x1b8   : > { %5966 = vmatmul.mubr.msk.bf16.gmra.mrb[12].mxu0 %vm463_vm3, %v3882_v20  ;;  %v4061_v20 = vshrl.u32 %v7981_v46, 16 }
 0x1b9   : > { %5969 = vmatprep.mubr.msk.bf16.mxu0 %vm6734_vm1, %v6733_v2  ;;  %v4066_v31 = vrot.slane %v4064_v37, 3 }
 0x1ba   : > { %v4063_v43 = vrot.slane %v4061_v20, 2 }
 0x1bc   : > { %v4067_v25 = vor.u32 %v4066_v31, %v4063_v43  ;;  %v8061_v43 = vcombine.low %v4188_v5, %v7931_v9  ;;  %v2190_v31 = vld [vmem:[%s6850_s29 + $0x8] sm:$0xe]  ;;  %v5225_v9 = vld [vmem:[%s8366_s3 + $0x34] sm:$0x3] }
 0x1be   : > { %5676 = vmatmul.mubr.msk.bf16.gmra.mrb[8].mxu1 %vm463_vm3, %v1944_v8  ;;  %v7998_v8 = vld [vmem:[%s7036_s28 + $0x2c] sm:$0xff]   ;;  %v4068_v41 = vsel %vm1156_vm5, %v4058_v18, %v4067_v25  ;;  %v2076_v18 = vrot.slane %v1823_v13, 1  ;;  %v2083_v13 = vrot.slane %v2081_v28, 1  ;;  %v4316_v5 = vshll.u32 %v8061_v43, 16 }
 0x1bf   : > { %5679 = vmatprep.mubr.msk.bf16.mxu1 %vm6734_vm1, %v6733_v2  ;;  %v4070_v49 = vshrl.u32 %v7998_v8, 16  ;;  %v4073_v39 = vshll.u32 %v7998_v8, 16  ;;  %v4201_v23 = vrot.slane %v7998_v8, 3 }
 0x1c0   : > { %5970 = vmatmul.mubr.msk.bf16.gmra.mrb[16].mxu0 %vm463_vm3, %v3891_v15  ;;  %v2068_v15 = vrot.slane %v1807_v22, 1 }
 0x1c1   : > { %5975 = vmatprep.mubr.msk.bf16.mxu0 %vm6734_vm1, %v6733_v2  ;;  %v4072_v22 = vrot.slane %v4070_v49, 2  ;;  %v4075_v11 = vrot.slane %v4073_v39, 3  ;;  %v4333_v29 = vrot.slane %v4073_v39, 4 }
 0x1c2   : > { %v2070_v48 = vor.u32 %v2069_v38, %v2068_v15  ;;  %v4194_v38 = vrot.slane %v8061_v43, 3 }
 0x1c3   : > { %v4076_v14 = vor.u32 %v4075_v11, %v4072_v22  ;;  %v4361_v11 = vsel %vm479_vm0, %v5225_v9, 0 }
 0x1c4   : > { %v2071_v54 = vsel %vm701_vm8, %v2066_v55, %v2070_v48  ;;  %v2078_v55 = vor.u32 %v2077_v19, %v2076_v18  ;;  %v4203_v18 = vrot.slane %v8029_v53, 3  ;;  %v2269_v19 = vrot.slane %v2267_v16, 1 }
 0x1c5   : > { %v4077_v57 = vsel %vm1156_vm5, %v4067_v25, %v4076_v14  ;;  %v4318_v16 = vrot.slane %v4316_v5, 4 }
 0x1c6   : > { %5680 = vmatmul.mubr.msk.bf16.gmra.mrb[12].mxu1 %vm463_vm3, %v1946_v42  ;;  %v2300_v42 = vsel %vm479_vm0, %v5102_v47, 0  ;;  %v5103_v47 = vcombine.low %v2190_v31, %v6691_v30  ;;  %v4322_v30 = vor.u32 %v4321_v17, %v4320_v6 }
 0x1c7   : > { %5683 = vmatprep.mubr.msk.bf16.mxu1 %vm6734_vm1, %v6733_v2 }
 0x1c8   : > { %5976 = vmatmul.mubr.msk.bf16.vlgmr.msra.gmra.mrb[0].mxu0 %vm463_vm3, %v4050_v24  ;;  %v4079_v24 = vshrl.u32 %v8029_v53, 16  ;;  %v2235_v22 = vshll.u32 %v5103_v47, 16  ;;  %v4204_v53 = vsel %vm1492_vm9, %v4201_v23, %v4203_v18 }
 0x1c9   : > { %5996 = vmatpush3.bf16.msra.mxu0 %v4221_v63  ;;  %5979 = vmatprep.mubr.msk.bf16.mxu0 %vm6734_vm1, %v6733_v2  ;;  %v2074_v63 = vor.u32 %v2073_v50, %v2072_v21  ;;  %v2242_v50 = vrot.slane %v2240_v33, 1  ;;  %v4199_v33 = vrot.slane %v7981_v46, 3  ;;  %v4332_v46 = vrot.slane %v4070_v49, 3 }
 0x1ca   : > { %6017 = vmatprep.subr.bf16.mxu0 %v6733_v2  ;;  %v4081_v59 = vrot.slane %v4079_v24, 2  ;;  %v2237_v21 = vrot.slane %v2235_v22, 2  ;;  %v2245_v24 = vrot.slane %v2243_v35, 2  ;;  %v2254_v35 = vrot.slane %v2252_v52, 2 }
 0x1cb   : > { %v2075_v10 = vsel %vm701_vm8, %v2070_v48, %v2074_v63  ;;  %v2079_v15 = vsel %vm701_vm8, %v2074_v63, %v2078_v55  ;;  %v2232_v48 = vshrl.u32 %v5103_v47, 16  ;;  %v2263_v52 = vrot.slane %v2261_v3, 2 }
 0x1cc   : > { %v2246_v63 = vor.u32 %v2245_v24, %v2242_v50  ;;  %v4313_v3 = vshrl.u32 %v8061_v43, 16  ;;  %v4496_v24 = vlaneseq }
 0x1ce   : > { %5684 = vmatmul.mubr.msk.bf16.gmra.mrb[16].mxu1 %vm463_vm3, %v1948_v60  ;;  %v4084_v60 = vrot.slane %v4082_v0, 3 }
 0x1cf   : > { %5689 = vmatprep.mubr.msk.bf16.mxu1 %vm6734_vm1, %v6733_v2 }
 0x1d0   : > { %5980 = vmatmul.mubr.msk.bf16.gmra.mrb[4].mxu0 %vm463_vm3, %v4059_v40  ;;  %v4085_v7 = vor.u32 %v4084_v60, %v4081_v59  ;;  %v2084_v40 = vshll.u32 %v6688_v45, 16  ;;  %v2255_v45 = vor.u32 %v2254_v35, %v2251_v12 }
 0x1d1   : > { %5983 = vmatprep.mubr.msk.bf16.mxu0 %vm6734_vm1, %v6733_v2 }
 0x1d2   : > { %v4086_v56 = vsel %vm1156_vm5, %v4076_v14, %v4085_v7  ;;  %v2086_v44 = vrot.slane %v2084_v40, 2  ;;  %v2234_v14 = vrot.slane %v2232_v48, 1  ;;  %v2264_v7 = vor.u32 %v2263_v52, %v2260_v51  ;;  %v6689_v40 = vld [vmem:[%s6850_s29 + $0x30] ss:$0 sps:$4 sm:$0x33]   ;;  %s6555_s29 = smul.u32 10, %s8395_s21 }
 0x1d3   : > { %v2276_v43 = vshrl.u32 %v6689_v40, 16  ;;  %v2279_v31 = vshll.u32 %v6689_v40, 16 }
 0x1d4   : > { %v2087_v25 = vor.u32 %v2086_v44, %v2083_v13  ;;  %v2265_v28 = vsel %vm701_vm8, %v2255_v45, %v2264_v7 }
 0x1d5   : > { %v2278_v47 = vrot.slane %v2276_v43, 1 }
 0x1d6   : > { %5690 = vmatmul.mubr.msk.bf16.vlgmr.msra.gmra.mrb[0].mxu1 %vm463_vm3, %v2067_v32  ;;  %v4195_v32 = vrot.slane %v7940_v62, 3 }
 0x1d7   : > { %5693 = vmatprep.mubr.msk.bf16.mxu1 %vm6734_vm1, %v6733_v2  ;;  %5710 = vmatpush3.bf16.msra.mxu1 %v2300_v42 }
 0x1d8   : > { %6039 = vmatprep.subr.bf16.mxu1 %v6733_v2  ;;  %5984 = vmatmul.mubr.msk.bf16.gmra.mrb[8].mxu0 %vm463_vm3, %v4068_v41  ;;  %v4196_v42 = vsel %vm1492_vm9, %v4194_v38, %v4195_v32  ;;  %v2088_v41 = vsel %vm701_vm8, %v2078_v55, %v2087_v25  ;;  %v4315_v55 = vrot.slane %v4313_v3, 3  ;;  %v4325_v38 = vrot.slane %v4055_v26, 4 }
 0x1d9   : > { %5987 = vmatprep.mubr.msk.bf16.mxu0 %vm6734_vm1, %v6733_v2  ;;  %v4329_v26 = vrot.slane %v4064_v37, 4  ;;  %v6690_v37 = vld [vmem:[%s7036_s28 + $0x34] ss:$0 sps:$4 sm:$0xff]   ;;  %s6556_s28 = smul.u32 80, %s8389_s22 }
 0x1da   : > { %v4319_v44 = vor.u32 %v4318_v16, %v4315_v55  ;;  %v4326_v9 = vor.u32 %v4325_v38, %v4324_v58 }
 0x1db   : > { %s390_s20 = sadd.s32 %s6556_s28, %s6555_s29 }
 0x1dc   : > { %v4323_v27 = vsel %vm1611_vm7, %v4319_v44, %v4322_v30  ;;  %v4327_v25 = vsel %vm1611_vm7, %v4322_v30, %v4326_v9  ;;  %s4996_s17 = sshll.u32 %s390_s20, 2 }
 0x1dd   : > { %s8283_s8 = scalar_lea.vmem %s8367_s4, %s4996_s17 }
 0x1de   : > { %5694 = vmatmul.mubr.msk.bf16.gmra.mrb[4].mxu1 %vm463_vm3, %v2071_v54  ;;  %v4197_v54 = vrot.slane %v7952_v61, 3  ;;  %v4328_v61 = vrot.slane %v4061_v20, 3  ;;  %v2400_v20 = vrot.slane %v6689_v40, 2 }
 0x1df   : > { %5697 = vmatprep.mubr.msk.bf16.mxu1 %vm6734_vm1, %v6733_v2 }
 0x1e0   : > { %5988 = vmatmul.mubr.msk.bf16.gmra.mrb[12].mxu0 %vm463_vm3, %v4077_v57  ;;  %v4198_v0 = vsel %vm1492_vm9, %v4195_v32, %v4197_v54  ;;  %v2238_v57 = vor.u32 %v2237_v21, %v2234_v14  ;;  %v4200_v60 = vsel %vm1492_vm9, %v4197_v54, %v4199_v33  ;;  %v4330_v22 = vor.u32 %v4329_v26, %v4328_v61 }
 0x1e1   : > { %5991 = vmatprep.mubr.msk.bf16.mxu0 %vm6734_vm1, %v6733_v2  ;;  %v4337_v54 = vshrl.u32 %v6690_v37, 16  ;;  %v4340_v14 = vshll.u32 %v6690_v37, 16 }
 0x1e2   : > { %v2247_v59 = vsel %vm701_vm8, %v2238_v57, %v2246_v63 }
 0x1e3   : > { %v4339_v50 = vrot.slane %v4337_v54, 3  ;;  %v4342_v49 = vrot.slane %v4340_v14, 4 }
 0x1e5   : > { %v4343_v8 = vor.u32 %v4342_v49, %v4339_v50 }
 0x1e6   : > { %5698 = vmatmul.mubr.msk.bf16.gmra.mrb[8].mxu1 %vm463_vm3, %v2075_v10  ;;  %v2256_v10 = vsel %vm701_vm8, %v2246_v63, %v2255_v45 }
 0x1e7   : > { %5701 = vmatprep.mubr.msk.bf16.mxu1 %vm6734_vm1, %v6733_v2 }
 0x1e8   : > { %5992 = vmatmul.mubr.msk.bf16.gmra.mrb[16].mxu0 %vm463_vm3, %v4086_v56  ;;  %v2273_v56 = vor.u32 %v2272_v1, %v2269_v19 }
 0x1e9   : > { %5997 = vmatprep.mubr.msk.bf16.mxu0 %vm6734_vm1, %v6733_v2 }
 0x1ea   : > { %v2274_v13 = vsel %vm701_vm8, %v2264_v7, %v2273_v56 }
 0x1ee   : > { %5702 = vmatmul.mubr.msk.bf16.gmra.mrb[12].mxu1 %vm463_vm3, %v2079_v15  ;;  %v2281_v15 = vrot.slane %v2279_v31, 2 }
 0x1ef   : > { %5705 = vmatprep.mubr.msk.bf16.mxu1 %vm6734_vm1, %v6733_v2 }
 0x1f0   : > { %5998 = vmatmul.mubr.msk.bf16.vlgmr.msra.gmra.mrb[0].mxu0 %vm463_vm3, %v4196_v42  ;;  %v2282_v62 = vor.u32 %v2281_v15, %v2278_v47  ;;  %v2398_v42 = vrot.slane %v6692_v36, 2 }
 0x1f1   : > { %6018 = vmatpush3.bf16.msra.mxu0 %v4361_v11  ;;  %6001 = vmatprep.mubr.msk.bf16.mxu0 %vm6734_vm1, %v6733_v2  ;;  %v4331_v11 = vsel %vm1611_vm7, %v4326_v9, %v4330_v22 }
 0x1f2   : > { %v2283_v32 = vsel %vm701_vm8, %v2273_v56, %v2282_v62  ;;  %v2399_v48 = vsel %vm1037_vm4, %v2396_v34, %v2398_v42  ;;  %v2401_v34 = vsel %vm1037_vm4, %v2398_v42, %v2400_v20 }
 0x1f6   : > { %5706 = vmatmul.mubr.msk.bf16.gmra.mrb[16].mxu1 %vm463_vm3, %v2088_v41  ;;  %v4334_v41 = vor.u32 %v4333_v29, %v4332_v46 }
 0x1f7   : > { %5711 = vmatprep.mubr.msk.bf16.mxu1 %vm6734_vm1, %v6733_v2 }
 0x1f8   : > { %6002 = vmatmul.mubr.msk.bf16.gmra.mrb[4].mxu0 %vm463_vm3, %v4198_v0  ;;  %v4335_v21 = vsel %vm1611_vm7, %v4330_v22, %v4334_v41  ;;  %v4344_v39 = vsel %vm1611_vm7, %v4334_v41, %v4343_v8  ;;  %v8190_v0 = vshrl.u32 %v4496_v24, 7 }
 0x1f9   : > { %6005 = vmatprep.mubr.msk.bf16.mxu0 %vm6734_vm1, %v6733_v2 }
 0x1fa   : > { %v4498_v57 = vadd.s32 8, %v8190_v0  ;;  %v4499_v35 = vadd.s32 16, %v8190_v0  ;;  %v4500_v51 = vadd.s32 24, %v8190_v0  ;;  %v8221_v56 = vadd.s32 40, %v8190_v0 }
 0x1fb   : > { %v8233_v47 = vadd.s32 48, %v8190_v0  ;;  %v8240_v58 = vadd.s32 56, %v8190_v0  ;;  %v8264_v49 = vadd.s32 72, %v8190_v0 }
 0x1fc   : > { %v8212_v19 = vmul.u32.u64.low 3435973837, %v4500_v51  ;;  %v8213_v1 = vmul.u32.u64.high 3435973837, %v4500_v51, %v8212_v19 }
 0x1fd   : > { %v8254_v20 = vmul.u32.u64.low 3435973837, %v8240_v58  ;;  %v8255_v46 = vmul.u32.u64.high 3435973837, %v8240_v58, %v8254_v20 }
 0x1fe   : > { %5712 = vmatmul.mubr.msk.bf16.vlgmr.msra.gmra.mrb[0].mxu1 %vm463_vm3, %v2247_v59  ;;  %v8194_v63 = vmul.u32.u64.low 3435973837, %v8190_v0  ;;  %v8195_v59 = vmul.u32.u64.high 3435973837, %v8190_v0, %v8194_v63  ;;  %v4546_v15 = vshrl.u32 %v8213_v1, 3 }
 0x1ff   : > { %5715 = vmatprep.mubr.msk.bf16.mxu1 %vm6734_vm1, %v6733_v2  ;;  %6040 = vmatpush3.bf16.msra.mxu1 %v6814_v4  ;;  %v4202_v4 = vsel %vm1492_vm9, %v4199_v33, %v4201_v23  ;;  %v8197_v33 = vmul.u32.u64.low 3435973837, %v4498_v57  ;;  %v8198_v12 = vmul.u32.u64.high 3435973837, %v4498_v57, %v8197_v33  ;;  %v4590_v63 = vshrl.u32 %v8255_v46, 3 }
 0x200   : > { %6006 = vmatmul.mubr.msk.bf16.gmra.mrb[8].mxu0 %vm463_vm3, %v4200_v60  ;;  %v4513_v7 = vshrl.u32 %v8195_v59, 3  ;;  %v4547_v61 = vmul.u32 10, %v4546_v15 }
 0x201   : > { %6009 = vmatprep.mubr.msk.bf16.mxu0 %vm6734_vm1, %v6733_v2  ;;  %v4524_v18 = vshrl.u32 %v8198_v12, 3  ;;  %v4591_v19 = vmul.u32 10, %v4590_v63 }
 0x202   : > { %v4514_v40 = vmul.u32 10, %v4513_v7  ;;  %v4548_v37 = vsub.s32 %v4500_v51, %v4547_v61 }
 0x204   : > { %v4515_v43 = vsub.s32 %v8190_v0, %v4514_v40  ;;  %vm4620_vm7 = vcmp.ne.s32.totalorder %v4548_v37, 0  ;;  %vm4630_vm8 = vcmp.lt.s32.totalorder %v4548_v37, 0 }
 0x206   : > { %5716 = vmatmul.mubr.msk.bf16.gmra.mrb[4].mxu1 %vm463_vm3, %v2256_v10  ;;  %v8203_v45 = vmul.u32.u64.low 3435973837, %v4499_v35  ;;  %v8204_v10 = vmul.u32.u64.high 3435973837, %v4499_v35, %v8203_v45  ;;  %vm4617_vm10 = vcmp.ne.s32.totalorder %v4515_v43, 0  ;;  %vm4627_vm11 = vcmp.lt.s32.totalorder %v4515_v43, 0 }
 0x207   : > { %5719 = vmatprep.mubr.msk.bf16.mxu1 %vm6734_vm1, %v6733_v2  ;;  %v4647_v42 = vadd.s32 10, %v4515_v43  ;;  %vm4637_vm14 = vmand %vm4627_vm11, %vm4617_vm10 }
 0x208   : > { %6010 = vmatmul.mubr.msk.bf16.gmra.mrb[12].mxu0 %vm463_vm3, %v4202_v4  ;;  %v4501_v4 = vadd.s32 32, %v8190_v0  ;;  %v4535_v16 = vshrl.u32 %v8204_v10, 3 }
 0x209   : > { %6013 = vmatprep.mubr.msk.bf16.mxu0 %vm6734_vm1, %v6733_v2  ;;  %v4657_v29 = vsel %vm4637_vm14, %v4647_v42, %v4515_v43 }
 0x20a   : > { %v8215_v3 = vmul.u32.u64.low 3435973837, %v4501_v4  ;;  %v8216_v5 = vmul.u32.u64.high 3435973837, %v4501_v4, %v8215_v3  ;;  %v4536_v30 = vmul.u32 10, %v4535_v16  ;;  %vm4677_vm4 = vcmp.le.s32.totalorder %v4657_v29, 8 }
 0x20e   : > { %5720 = vmatmul.mubr.msk.bf16.gmra.mrb[8].mxu1 %vm463_vm3, %v2265_v28 }
 0x20f   : > { %5723 = vmatprep.mubr.msk.bf16.mxu1 %vm6734_vm1, %v6733_v2 }
 0x210   : > { %6014 = vmatmul.mubr.msk.bf16.gmra.mrb[16].mxu0 %vm463_vm3, %v4204_v53  ;;  %v4525_v53 = vmul.u32 10, %v4524_v18 }
 0x211   : > { %6019 = vmatprep.mubr.msk.bf16.mxu0 %vm6734_vm1, %v6733_v2 }
 0x212   : > { %v4526_v31 = vsub.s32 %v4498_v57, %v4525_v53 }
 0x214   : > { %vm4618_vm12 = vcmp.ne.s32.totalorder %v4526_v31, 0  ;;  %vm4628_vm13 = vcmp.lt.s32.totalorder %v4526_v31, 0 }
 0x215   : > { %vm4638_vm15 = vmand %vm4628_vm13, %vm4618_vm12 }
 0x216   : > { %5724 = vmatmul.mubr.msk.bf16.gmra.mrb[12].mxu1 %vm463_vm3, %v2274_v13  ;;  %v8228_v13 = vmul.u32.u64.low 3435973837, %v8221_v56  ;;  %v8229_v44 = vmul.u32.u64.high 3435973837, %v8221_v56, %v8228_v13  ;;  %vm4640_vm12 = vmand %vm4630_vm8, %vm4620_vm7 }
 0x217   : > { %5727 = vmatprep.mubr.msk.bf16.mxu1 %vm6734_vm1, %v6733_v2 }
 0x218   : > { %6020 = vmatmul.mubr.msk.bf16.vlgmr.msra.gmra.mrb[0].mxu0 %vm463_vm3, %v4323_v27  ;;  %v4557_v27 = vshrl.u32 %v8216_v5, 3 }
 0x219   : > { %6023 = vmatprep.mubr.msk.bf16.mxu0 %vm6734_vm1, %v6733_v2 }
 0x21a   : > { %v4558_v22 = vmul.u32 10, %v4557_v27 }
 0x21c   : > { %v4559_v54 = vsub.s32 %v4501_v4, %v4558_v22 }
 0x21e   : > { %5728 = vmatmul.mubr.msk.bf16.gmra.mrb[16].mxu1 %vm463_vm3, %v2283_v32  ;;  %v4537_v32 = vsub.s32 %v4499_v35, %v4536_v30  ;;  %vm4621_vm9 = vcmp.ne.s32.totalorder %v4559_v54, 0  ;;  %vm4631_vm10 = vcmp.lt.s32.totalorder %v4559_v54, 0  ;;  %v4651_v7 = vadd.s32 10, %v4559_v54 }
 0x21f   : > { %5745 = vmatprep.mubr.msk.bf16.mxu1 %vm6734_vm1, %v6733_v2 }
 0x220   : > { %6024 = vmatmul.mubr.msk.bf16.gmra.mrb[4].mxu0 %vm463_vm3, %v4327_v25  ;;  %v8246_v9 = vmul.u32.u64.low 3435973837, %v8233_v47  ;;  %v8247_v25 = vmul.u32.u64.high 3435973837, %v8233_v47, %v8246_v9  ;;  %vm4619_vm0 = vcmp.ne.s32.totalorder %v4537_v32, 0  ;;  %v4649_v41 = vadd.s32 10, %v4537_v32 }
 0x221   : > { %6027 = vmatprep.mubr.msk.bf16.mxu0 %vm6734_vm1, %v6733_v2 }
 0x222   : > { %v4579_v50 = vshrl.u32 %v8247_v25, 3 }
 0x224   : > { %v4580_v35 = vmul.u32 10, %v4579_v50 }
 0x226   : > { %5746 = vmatmul.mubr.msk.bf16.vlgmr.msra.gmra.mrb[12].mxu1 %vm463_vm3, %v2399_v48  ;;  %v4648_v48 = vadd.s32 10, %v4526_v31  ;;  %v4581_v3 = vsub.s32 %v8233_v47, %v4580_v35 }
 0x227   : > { %5749 = vmatprep.mubr.msk.bf16.mxu1 %vm6734_vm1, %v6733_v2 }
 0x228   : > { %6028 = vmatmul.mubr.msk.bf16.gmra.mrb[8].mxu0 %vm463_vm3, %v4331_v11  ;;  %v4568_v11 = vshrl.u32 %v8229_v44, 3  ;;  %vm4623_vm7 = vcmp.ne.s32.totalorder %v4581_v3, 0  ;;  %vm4633_vm8 = vcmp.lt.s32.totalorder %v4581_v3, 0  ;;  %v4653_v9 = vadd.s32 10, %v4581_v3 }
 0x229   : > { %6031 = vmatprep.mubr.msk.bf16.mxu0 %vm6734_vm1, %v6733_v2 }
 0x22a   : > { %v4569_v14 = vmul.u32 10, %v4568_v11 }
 0x22c   : > { %v4570_v57 = vsub.s32 %v8221_v56, %v4569_v14 }
 0x22e   : > { %5750 = vmatmul.mubr.msk.bf16.gmra.mrb[16].mxu1 %vm463_vm3, %v2401_v34  ;;  %v4658_v34 = vsel %vm4638_vm15, %v4648_v48, %v4526_v31  ;;  %v4652_v16 = vadd.s32 10, %v4570_v57  ;;  %v4592_v31 = vsub.s32 %v8240_v58, %v4591_v19 }
 0x22f   : > { %vm4668_vm5 = vcmp.ge.s32.totalorder %v4658_v34, 1  ;;  %vm4678_vm6 = vcmp.le.s32.totalorder %v4658_v34, 8 }
 0x230   : > { %6032 = vmatmul.mubr.msk.bf16.gmra.mrb[12].mxu0 %vm463_vm3, %v4335_v21  ;;  %v8260_v21 = vadd.s32 64, %v8190_v0  ;;  %vm4688_vm13 = vmand %vm4668_vm5, %vm4678_vm6  ;;  %v4654_v14 = vadd.s32 10, %v4592_v31 }
 0x231   : > { %6035 = vmatprep.mubr.msk.bf16.mxu0 %vm6734_vm1, %v6733_v2  ;;  %vm4629_vm1 = vcmp.lt.s32.totalorder %v4537_v32, 0 }
 0x232   : > { %vm4639_vm2 = vmand %vm4629_vm1, %vm4619_vm0  ;;  %v8269_v59 = vmul.u32.u64.low 3435973837, %v8260_v21  ;;  %v8270_v33 = vmul.u32.u64.high 3435973837, %v8260_v21, %v8269_v59  ;;  %vm4622_vm1 = vcmp.ne.s32.totalorder %v4570_v57, 0 }
 0x233   : > { %v4659_v8 = vsel %vm4639_vm2, %v4649_v41, %v4537_v32  ;;  %vm8287_vm0 = vmand %vm4631_vm10, %vm4621_vm9  ;;  %vm4632_vm2 = vcmp.lt.s32.totalorder %v4570_v57, 0 }
 0x234   : > { %vm4669_vm14 = vcmp.ge.s32.totalorder %v4659_v8, 1  ;;  %vm4679_vm15 = vcmp.le.s32.totalorder %v4659_v8, 8  ;;  %vm4642_vm6 = vmand %vm4632_vm2, %vm4622_vm1  ;;  %v4601_v13 = vshrl.u32 %v8270_v33, 3 }
 0x235   : > { %v4662_v32 = vsel %vm4642_vm6, %v4652_v16, %v4570_v57 }
 0x236   : > { %vm4682_vm1 = vcmp.le.s32.totalorder %v4662_v32, 8 }
 0x238   : > { %6036 = vmatmul.mubr.msk.bf16.gmra.mrb[16].mxu0 %vm463_vm3, %v4344_v39  ;;  %vm4667_vm3 = vcmp.ge.s32.totalorder %v4657_v29, 1  ;;  %v4650_v39 = vadd.s32 10, %v4548_v37 }
 0x239   : > { %vm4687_vm11 = vmand %vm4667_vm3, %vm4677_vm4 }
 0x23a   : > { %vm8295_vm3 = vmand %vm4669_vm14, %vm4679_vm15  ;;  %vm4634_vm14 = vcmp.lt.s32.totalorder %v4592_v31, 0 }
 0x2d1   : > { %v8201_v2 = vpop.f32.mrb[0].mxu1 }
 0x2d2   : > { %v5713_v60 = vpop.f32.mrb[1].mxu1 }
 0x2d3   : > { %v8206_v23 = vpop.f32.mrb[2].mxu1  ;;  %v8274_v60 = vmul.u32.u64.low 3435973837, %v8264_v49  ;;  %v8275_v45 = vmul.u32.u64.high 3435973837, %v8264_v49, %v8274_v60 }
 0x2d4   : > { %v5714_v52 = vpop.f32.mrb[3].mxu1 }
 0x2d5   : > { %v4612_v47 = vshrl.u32 %v8275_v45, 3 }
 0x2d7   : > { %v4613_v20 = vmul.u32 10, %v4612_v47 }
 0x2d9   : > { %v8218_v28 = vpop.f32.mrb[4].mxu1  ;;  %v4614_v63 = vsub.s32 %v8264_v49, %v4613_v20 }
 0x2da   : > { %v5717_v55 = vpop.f32.mrb[5].mxu1 }
 0x2db   : > { %v8224_v6 = vpop.f32.mrb[6].mxu1  ;;  %v4661_v55 = vsel %vm8287_vm0, %v4651_v7, %v4559_v54  ;;  %vm4672_vm0 = vcmp.ge.s32.totalorder %v4662_v32, 1 }
 0x2dc   : > { %v5718_v17 = vpop.f32.mrb[7].mxu1  ;;  %vm4671_vm10 = vcmp.ge.s32.totalorder %v4661_v55, 1 }
 0x2e1   : > { %v8237_v62 = vpop.f32.mrb[8].mxu1 }
 0x2e2   : > { %v5721_v38 = vpop.f32.mrb[9].mxu1 }
 0x2e3   : > { %v8249_v36 = vpop.f32.mrb[10].mxu1 }
 0x2e4   : > { %v5722_v26 = vpop.f32.mrb[11].mxu1 }
 0x2e5   : > { %v4602_v26 = vmul.u32 10, %v4601_v13 }
 0x2eb   : > { %v4397_v24 = vpop.f32.mrb[0].mxu0 }
 0x2ec   : > { %v6041_v0 = vadd.f32 %v4397_v24, %v8201_v2  ;;  %v6021_v12 = vpop.f32.mrb[1].mxu0  ;;  %v4660_v2 = vsel %vm4640_vm12, %v4650_v39, %v4548_v37  ;;  %vm8311_vm12 = vmand %vm4633_vm8, %vm4623_vm7  ;;  %v4603_v39 = vsub.s32 %v8260_v21, %v4602_v26  ;;  %vm4626_vm8 = vcmp.ne.s32.totalorder %v4614_v63, 0 }
 0x2ed   : > { %v4400_v10 = vpop.f32.mrb[2].mxu0  ;;  %vm4670_vm4 = vcmp.ge.s32.totalorder %v4660_v2, 1  ;;  %vm4680_vm5 = vcmp.le.s32.totalorder %v4660_v2, 8  ;;  %v4663_v54 = vsel %vm8311_vm12, %v4653_v9, %v4581_v3 }
 0x2ee   : > { %v4717_v51 = vsel %vm4687_vm11, %v6041_v0, 0.0  ;;  %v6042_v52 = vadd.f32 %v4400_v10, %v8206_v23  ;;  %v6022_v4 = vpop.f32.mrb[3].mxu0  ;;  %vm4690_vm9 = vmand %vm4670_vm4, %vm4680_vm5  ;;  %vm4681_vm11 = vcmp.le.s32.totalorder %v4661_v55, 8  ;;  %vm4673_vm4 = vcmp.ge.s32.totalorder %v4663_v54, 1 }
 0x2ef   : > { %v4743_v5 = vmul.f32 %v4717_v51, %v4717_v51  ;;  %vm8318_vm15 = vmand %vm4671_vm10, %vm4681_vm11  ;;  %vm4683_vm5 = vcmp.le.s32.totalorder %v4663_v54, 8  ;;  %vm4625_vm6 = vcmp.ne.s32.totalorder %v4603_v39, 0  ;;  %vm4635_vm7 = vcmp.lt.s32.totalorder %v4603_v39, 0 }
 0x2f0   : > { %v5257_v23 = vpack.c.bf16 %v6042_v52, %v6041_v0  ;;  %v4718_v1 = vsel %vm4688_vm13, %v6042_v52, 0.0  ;;  %vm4624_vm13 = vcmp.ne.s32.totalorder %v4592_v31, 0  ;;  %vm4645_vm12 = vmand %vm4635_vm7, %vm4625_vm6 }
 0x2f1   : > { %v4727_v40 = vadd.f32 %v4718_v1, %v4717_v51  ;;  %v4744_v53 = vmul.f32 %v4718_v1, %v4718_v1  ;;  %vm4644_vm2 = vmand %vm4634_vm14, %vm4624_vm13  ;;  %v4655_v51 = vadd.s32 10, %v4603_v39 }
 0x2f2   : > { %5258 = vst [vmem:[%s8283_s8] sm:$0xff] %v5257_v23   ;;  %v4664_v35 = vsel %vm4644_vm2, %v4654_v14, %v4592_v31  ;;  %vm4693_vm13 = vmand %vm4673_vm4, %vm4683_vm5  ;;  %v4656_v23 = vadd.s32 10, %v4614_v63 }
 0x2f3   : > { %v4753_v17 = vadd.f32 %v4744_v53, %v4743_v5  ;;  %v4405_v43 = vpop.f32.mrb[4].mxu0  ;;  %vm4674_vm10 = vcmp.ge.s32.totalorder %v4664_v35, 1  ;;  %vm4684_vm11 = vcmp.le.s32.totalorder %v4664_v35, 8 }
 0x2f4   : > { %v6043_v44 = vadd.f32 %v4405_v43, %v8218_v28  ;;  %v6025_v30 = vpop.f32.mrb[5].mxu0 }
 0x2f5   : > { %v4408_v15 = vpop.f32.mrb[6].mxu0 }
 0x2f6   : > { %v4719_v27 = vsel %vm8295_vm3, %v6043_v44, 0.0  ;;  %v6044_v38 = vadd.f32 %v4408_v15, %v8224_v6  ;;  %v6026_v58 = vpop.f32.mrb[7].mxu0  ;;  %vm4692_vm3 = vmand %vm4672_vm0, %vm4682_vm1 }
 0x2f7   : > { %v4728_v28 = vadd.f32 %v4727_v40, %v4719_v27  ;;  %v4745_v25 = vmul.f32 %v4719_v27, %v4719_v27  ;;  %v4665_v40 = vsel %vm4645_vm12, %v4655_v51, %v4603_v39 }
 0x2f8   : > { %v5262_v48 = vpack.c.bf16 %v6044_v38, %v6043_v44  ;;  %v4720_v22 = vsel %vm4690_vm9, %v6044_v38, 0.0  ;;  %vm4636_vm9 = vcmp.lt.s32.totalorder %v4614_v63, 0  ;;  %vm4675_vm0 = vcmp.ge.s32.totalorder %v4665_v40, 1 }
 0x2f9   : > { %v2478_v42 = vpop.f32.mrb[12].mxu1  ;;  %v4754_v6 = vadd.f32 %v4753_v17, %v4745_v25  ;;  %v4729_v46 = vadd.f32 %v4728_v28, %v4720_v22  ;;  %v4746_v29 = vmul.f32 %v4720_v22, %v4720_v22  ;;  %vm4646_vm14 = vmand %vm4636_vm9, %vm4626_vm8  ;;  %vm4685_vm1 = vcmp.le.s32.totalorder %v4665_v40, 8 }
 0x2fa   : > { %v5747_v11 = vpop.f32.mrb[13].mxu1  ;;  %5279 = vst [vmem:[%s8283_s8 + $0x8] sm:$0xff] %v5262_v48   ;;  %v4666_v43 = vsel %vm4646_vm14, %v4656_v23, %v4614_v63  ;;  %vm4695_vm4 = vmand %vm4675_vm0, %vm4685_vm1 }
 0x2fb   : > { %v2481_v37 = vpop.f32.mrb[14].mxu1  ;;  %v4755_v50 = vadd.f32 %v4754_v6, %v4746_v29  ;;  %v4413_v8 = vpop.f32.mrb[8].mxu0  ;;  %vm4676_vm2 = vcmp.ge.s32.totalorder %v4666_v43, 1 }
 0x2fc   : > { %v5748_v41 = vpop.f32.mrb[15].mxu1  ;;  %v6045_v24 = vadd.f32 %v4413_v8, %v8237_v62  ;;  %v6029_v57 = vpop.f32.mrb[9].mxu0 }
 0x2fd   : > { %v4416_v59 = vpop.f32.mrb[10].mxu0 }
 0x2fe   : > { %v4721_v33 = vsel %vm8318_vm15, %v6045_v24, 0.0  ;;  %v6046_v0 = vadd.f32 %v4416_v59, %v8249_v36  ;;  %v6030_v12 = vpop.f32.mrb[11].mxu0  ;;  %vm4694_vm15 = vmand %vm4674_vm10, %vm4684_vm11 }
 0x2ff   : > { %v4730_v60 = vadd.f32 %v4729_v46, %v4721_v33  ;;  %v4747_v45 = vmul.f32 %v4721_v33, %v4721_v33 }
 0x300   : > { %v5267_v62 = vpack.c.bf16 %v6046_v0, %v6045_v24  ;;  %v4722_v10 = vsel %vm4692_vm3, %v6046_v0, 0.0  ;;  %vm4686_vm3 = vcmp.le.s32.totalorder %v4666_v43, 8 }
 0x301   : > { %v2486_v21 = vpop.f32.mrb[16].mxu1  ;;  %v4756_v52 = vadd.f32 %v4755_v50, %v4747_v45  ;;  %v4731_v4 = vadd.f32 %v4730_v60, %v4722_v10  ;;  %v4748_v7 = vmul.f32 %v4722_v10, %v4722_v10  ;;  %vm4696_vm5 = vmand %vm4676_vm2, %vm4686_vm3 }
 0x302   : > { %v5751_v49 = vpop.f32.mrb[17].mxu1  ;;  %5280 = vst [vmem:[%s8283_s8 + $0x10] sm:$0xff] %v5267_v62  }
 0x303   : > { %v2489_v2 = vpop.f32.mrb[18].mxu1  ;;  %v4757_v18 = vadd.f32 %v4756_v52, %v4748_v7  ;;  %v4421_v19 = vpop.f32.mrb[12].mxu0 }
 0x304   : > { %v5752_v36 = vpop.f32.mrb[19].mxu1  ;;  %v6047_v1 = vadd.f32 %v4421_v19, %v2478_v42  ;;  %v6033_v3 = vpop.f32.mrb[13].mxu0 }
 0x305   : > { %v4424_v5 = vpop.f32.mrb[14].mxu0 }
 0x306   : > { %v4723_v53 = vsel %vm4693_vm13, %v6047_v1, 0.0  ;;  %v6048_v56 = vadd.f32 %v4424_v5, %v2481_v37  ;;  %v6034_v55 = vpop.f32.mrb[15].mxu0 }
 0x307   : > { %v4732_v16 = vadd.f32 %v4731_v4, %v4723_v53  ;;  %v4749_v17 = vmul.f32 %v4723_v53, %v4723_v53 }
 0x308   : > { %v5272_v31 = vpack.c.bf16 %v6048_v56, %v6047_v1  ;;  %v4724_v13 = vsel %vm4694_vm15, %v6048_v56, 0.0 }
 0x309   : > { %v4758_v44 = vadd.f32 %v4757_v18, %v4749_v17  ;;  %v4733_v30 = vadd.f32 %v4732_v16, %v4724_v13  ;;  %v4750_v47 = vmul.f32 %v4724_v13, %v4724_v13 }
 0x30a   : > { %5281 = vst [vmem:[%s8283_s8 + $0x18] sm:$0xff] %v5272_v31  }
 0x30b   : > { %v4759_v15 = vadd.f32 %v4758_v44, %v4750_v47  ;;  %v4429_v27 = vpop.f32.mrb[16].mxu0 }
 0x30c   : > { %v6049_v38 = vadd.f32 %v4429_v27, %v2486_v21  ;;  %v6037_v58 = vpop.f32.mrb[17].mxu0 }
 0x30d   : > { %v4432_v32 = vpop.f32.mrb[18].mxu0 }
 0x30e   : > { %v4725_v9 = vsel %vm4695_vm4, %v6049_v38, 0.0  ;;  %v6050_v28 = vadd.f32 %v4432_v32, %v2489_v2  ;;  %v6038_v25 = vpop.f32.mrb[19].mxu0 }
 0x30f   : > { %v4734_v42 = vadd.f32 %v4733_v30, %v4725_v9  ;;  %v4751_v61 = vmul.f32 %v4725_v9, %v4725_v9 }
 0x310   : > { %v5277_v26 = vpack.c.bf16 %v6050_v28, %v6049_v38  ;;  %v4726_v48 = vsel %vm4696_vm5, %v6050_v28, 0.0 }
 0x311   : > { %v4760_v22 = vadd.f32 %v4759_v15, %v4751_v61  ;;  %v4735_v11 = vadd.f32 %v4734_v42, %v4726_v48  ;;  %v4752_v20 = vmul.f32 %v4726_v48, %v4726_v48 }
 0x312   : > { %5282 = vst [vmem:[%s8283_s8 + $0x20] sm:$0xff] %v5277_v26  }
 0x313   : > { %v4736_v6 = vrot.slane %v4735_v11, 4  ;;  %v4761_v46 = vadd.f32 %v4760_v22, %v4752_v20 }
 0x315   : > { %v4737_v29 = vadd.f32 %v4736_v6, %v4735_v11  ;;  %v4762_v37 = vrot.slane %v4761_v46, 4 }
 0x317   : > { %v4738_v34 = vrot.slane %v4737_v29, 2  ;;  %v4763_v41 = vadd.f32 %v4762_v37, %v4761_v46 }
 0x319   : > { %v4739_v54 = vadd.f32 %v4738_v34, %v4737_v29  ;;  %v4764_v14 = vrot.slane %v4763_v41, 2 }
 0x31b   : > { %v4740_v50 = vrot.slane %v4739_v54, 1  ;;  %v4765_v8 = vadd.f32 %v4764_v14, %v4763_v41 }
 0x31d   : > { %v4741_v39 = vadd.f32 %v4740_v50, %v4739_v54  ;;  %v4766_v24 = vrot.slane %v4765_v8, 1 }
 0x31f   : > { %4742 = vst [vmem:[%s399_s14] sm:$0x1] %v4741_v39  ;;  %v4767_v57 = vadd.f32 %v4766_v24, %v4765_v8 }
 0x321   : > { %4768 = vst [vmem:[%s406_s18] sm:$0x1] %v4767_v57 }
 0x322 PF: > { %s17_s25 = sadd.s32 1, %s6731_s25   ;;  %s8378_s21 = smov %s6723_s23 }
 0x323   : > { %p14_p10 = scmp.ge.s32.totalorder %s17_s25, 18   ;;  %s8379_s22 = smov %s6727_s24 }
 0x324   : > { %s8380_s23 = smov %s8383_s26  ;;  %s8381_s24 = smov %s8387_s27 }
 0x325   :  { %16 = sbr.rel (!%p14_p10) target bundleno = 3 (0x3), region = 122 }

</bundles_post_ra>
